<compile_context>
chip_gen: v7x
topology: tpu7x:2x2x1
jax: 0.10.0
libtpu: 0.0.40
codegen_flags: <defaults>
</compile_context>

<pallas_src>
import functools
import math

import jax
import jax.numpy as jnp
from jax import lax
from jax.experimental import pallas as pl
from jax.experimental.pallas import tpu as pltpu

FISTA_MAX_ITER = 100          # reference SparseCoder(max_iter=100)
_FISTA_TILE_CAP = 512         # pixels per FISTA grid step; 1024 would spill vregs
_CONV_TILE_HW_CAP = 4096      # conv output positions per grid step (mult of 128)


def _round_up(x, m):
    return (x + m - 1) // m * m


def _vmem_limit_bytes():
    # Generation-aware scoped-VMEM budget (v7x has only 64 MiB physical VMEM).
    try:
        cap = int(pltpu.get_tpu_info().vmem_capacity_bytes)
    except Exception:
        cap = 64 * 1024 * 1024
    return int(min(cap * 3 // 4, 96 * 1024 * 1024))


VMEM_LIMIT_BYTES = _vmem_limit_bytes()


# ----------------------------------------------------------------------------
# FISTA sparse coding (SparseCoder.forward), transposed layout:
#   pixels (B*H*W) on the lane axis, atoms (16) on sublanes.
# Per iteration: one (N,N)@(N,TR) MXU push + VPU threshold/momentum, with
#   W = I - (Phi Phi^T)/L,  c = (rowsum(Phi)/L) * x   hoisted out of the loop.
# ----------------------------------------------------------------------------
def _fista_momentum_coeffs(n_iter):
    # (t_k - 1)/t_{k+1} for the data-independent FISTA t-sequence, computed on
    # the host so the kernel's serial chain has no per-iteration sqrt/div.
    t = 1.0
    coeffs = []
    for _ in range(n_iter):
        t_next = (1.0 + math.sqrt(1.0 + 4.0 * t * t)) / 2.0
        coeffs.append((t - 1.0) / t_next)
        t = t_next
    return jnp.asarray(coeffs, dtype=jnp.float32)


def _pick_fista_tile(n_pixels):
    # Pixels per grid step: multiple of 128, <= 512 (vreg budget: ~6 live
    # (16, TR) f32 arrays), preferring an even (>=2) number of grid steps
    # (shards across v7x's 2 TensorCores) and minimal zero padding.
    r128 = _round_up(n_pixels, 128)
    if r128 <= 256:
        return r128
    best_tile, best_key = None, None
    for tile in (512, 384, 256, 128):
        n_steps = -(-n_pixels // tile)
        pad = n_steps * tile - n_pixels
        key = (int(n_steps < 2 or n_steps % 2 == 1), pad, -tile)
        if best_key is None or key < best_key:
            best_key, best_tile = key, tile
    return best_tile


def _fista_kernel(mom_ref, x_ref, w_ref, c_ref, thr_ref, out_ref, *, n_iter):
    n_atoms, tile_r = out_ref.shape
    w_mat = w_ref[...]                                    # (N, N)
    # Hoisted loop constants (JAX does not CSE broadcast_in_dim inside loops).
    c = c_ref[...] * x_ref[...]                           # (N,1)*(1,TR) -> (N,TR)
    thr = jnp.broadcast_to(thr_ref[...], (n_atoms, tile_r))
    neg_thr = -thr

    def step(a, y, coeff):
        # grad = y - (1/L)(y @ G - x*s)  ==  (I - G/L) @ y + (s/L)*x
        grad = jnp.dot(w_mat, y, preferred_element_type=jnp.float32) + c
        # soft threshold: sign(g)*relu(|g|-thr)  ==  g - clip(g, -thr, thr)
        a_new = grad - jnp.clip(grad, neg_thr, thr)
        y_new = a_new + coeff * (a_new - a)               # FISTA momentum
        return a_new, y_new

    a0 = jnp.zeros((n_atoms, tile_r), jnp.float32)
    y0 = jnp.zeros((n_atoms, tile_r), jnp.float32)

    def body2(i, state):                                  # x2 unroll for overlap
        a, y = state
        a, y = step(a, y, mom_ref[2 * i])
        a, y = step(a, y, mom_ref[2 * i + 1])
        return a, y

    a, y = lax.fori_loop(0, n_iter // 2, body2, (a0, y0))
    if n_iter % 2:
        a, y = step(a, y, mom_ref[n_iter - 1])
    # NOTE: the PyTorch reference breaks once ||A - A_prev|| < 1e-6; we always
    # run max_iter (post-convergence drift < tolerance), which removes a
    # cross-lane reduction, a sqrt and selects from the serial chain.
    out_ref[...] = a


def fista_sparse_code(mom, x_row, w_mat, c_col, thr_col, *, tile_r):
    n_atoms = w_mat.shape[0]
    r_pad = x_row.shape[1]
    return pl.pallas_call(
        functools.partial(_fista_kernel, n_iter=FISTA_MAX_ITER),
        out_shape=jax.ShapeDtypeStruct((n_atoms, r_pad), jnp.float32),
        grid=(r_pad // tile_r,),
        in_specs=[
            pl.BlockSpec(memory_space=pltpu.MemorySpace.SMEM),  # momentum table
            pl.BlockSpec((1, tile_r), lambda i: (0, i)),
            pl.BlockSpec((n_atoms, n_atoms), lambda i: (0, 0)),
            pl.BlockSpec((n_atoms, 1), lambda i: (0, 0)),
            pl.BlockSpec((n_atoms, 1), lambda i: (0, 0)),
        ],
        out_specs=pl.BlockSpec((n_atoms, tile_r), lambda i: (0, i)),
        compiler_params=pltpu.CompilerParams(
            dimension_semantics=("parallel",),
            vmem_limit_bytes=VMEM_LIMIT_BYTES),
    )(mom, x_row, w_mat, c_col, thr_col)


# ----------------------------------------------------------------------------
# 3x3 conv (padding=1, stride=1), NCHW, with IN-KERNEL im2col.
# The input is zero-padded and row-flattened at row length Wp = W+2 so every
# 3x3 tap (dy,dx) is a constant lane offset dy*Wp+dx into one VMEM block.
# Outputs are produced at padded row length (2 junk lanes per row) and the
# junk columns are sliced off in the wrapper.
# ----------------------------------------------------------------------------
def _conv3x3_kernel(xw_ref, w_ref, b_ref, o_ref, *, offsets, tile,
                    apply_sigmoid, cout):
    cin = xw_ref.shape[2]
    if cout == 1:
        # Final 1-channel conv: a 1-row MXU matmul wastes the array; run it on
        # the VPU (per-channel FMAs) + one cross-sublane reduce.
        acc_c = jnp.zeros((cin, tile), jnp.float32)
        for tap, off in enumerate(offsets):
            v = xw_ref[0, 0, :, off:off + tile].astype(jnp.float32)
            acc_c = acc_c + w_ref[tap] * v                # (Cin,1)*(Cin,T)
        acc = jnp.sum(acc_c, axis=0, keepdims=True) + b_ref[...]
    else:
        # 9 accumulating (Cout,Cin)@(Cin,T) bf16 MXU dots (conv stage is
        # HBM-bound; MXU depth under-use is immaterial).
        acc = jnp.zeros((cout, tile), jnp.float32)
        for tap, off in enumerate(offsets):
            v = xw_ref[0, 0, :, off:off + tile]           # (Cin, T) bf16
            acc = acc + jnp.dot(w_ref[tap], v,
                                preferred_element_type=jnp.float32)
        acc = acc + b_ref[...]                            # (Cout,1) broadcast
    if apply_sigmoid:
        acc = jax.nn.sigmoid(acc)
    o_ref[...] = acc[None].astype(o_ref.dtype)


def conv3x3(x, w, b, *, apply_sigmoid=False, out_dtype=jnp.float32):
    # x: (B, Cin, H, W) NCHW;  w: (Cout, Cin, 3, 3) (PyTorch layout);  b: (Cout,)
    B, Cin, H, W = x.shape
    Cout = w.shape[0]
    Wp = W + 2
    n_out = H * Wp                                # output positions incl. junk cols
    tile = n_out if n_out <= _CONV_TILE_HW_CAP else _CONV_TILE_HW_CAP
    n_out_pad = _round_up(n_out, tile)
    n_tiles = n_out_pad // tile
    halo = 2 * Wp + 2                             # largest tap offset (+ guard)

    # Zero-pad + row-flatten once (bf16): the only HBM copy of the activation.
    xp = jnp.pad(x.astype(jnp.bfloat16), ((0, 0), (0, 0), (1, 1), (1, 1)))
    xf = xp.reshape(B, Cin, (H + 2) * Wp)
    flat_len = n_out_pad + halo
    xf = jnp.pad(xf, ((0, 0), (0, 0), (0, flat_len - (H + 2) * Wp)))
    if n_tiles == 1:
        xw = xf[:, None]                          # (B, 1, Cin, tile + halo)
    else:
        # Overlapping (halo) windows so in-kernel tap slices stay static.
        xw = jnp.stack([xf[:, :, j * tile:j * tile + tile + halo]
                        for j in range(n_tiles)], axis=1)
    # TODO(synk): for very large images the per-step (Cin, tile+halo) window
    # should switch to a manually DMA'd row-tiled variant to bound VMEM.

    offsets = tuple(dy * Wp + dx for dy in range(3) for dx in range(3))
    b2 = b.reshape(Cout, 1).astype(jnp.float32)
    if Cout == 1:
        wt = jnp.transpose(w, (2, 3, 1, 0)).reshape(9, Cin, 1).astype(jnp.float32)
    else:
        wt = jnp.transpose(w, (2, 3, 0, 1)).reshape(9, Cout, Cin).astype(jnp.bfloat16)

    out = pl.pallas_call(
        functools.partial(_conv3x3_kernel, offsets=offsets, tile=tile,
                          apply_sigmoid=apply_sigmoid, cout=Cout),
        out_shape=jax.ShapeDtypeStruct((B, Cout, n_out_pad), out_dtype),
        grid=(B, n_tiles),
        in_specs=[
            pl.BlockSpec((1, 1, Cin, tile + halo), lambda bi, j: (bi, j, 0, 0)),
            pl.BlockSpec(wt.shape, lambda bi, j: (0, 0, 0)),
            pl.BlockSpec((Cout, 1), lambda bi, j: (0, 0)),
        ],
        out_specs=pl.BlockSpec((1, Cout, tile), lambda bi, j: (bi, 0, j)),
        compiler_params=pltpu.CompilerParams(
            dimension_semantics=("parallel", "parallel"),
            vmem_limit_bytes=VMEM_LIMIT_BYTES),
    )(xw, wt, b2)

    out = out[:, :, :n_out].reshape(B, Cout, H, Wp)[:, :, :, :W]
    return out


# ----------------------------------------------------------------------------
# Glue (plain JAX): pixel shuffle, parameter init, full forward
# ----------------------------------------------------------------------------
def pixel_shuffle_nchw(x, r):
    # torch.nn.PixelShuffle: out[b,c,h*r+i,w*r+j] = in[b,c*r*r+i*r+j,h,w]
    B, C, H, W = x.shape
    co = C // (r * r)
    x = x.reshape(B, co, r, r, H, W)
    x = jnp.transpose(x, (0, 1, 4, 2, 5, 3))
    return x.reshape(B, co, H * r, W * r)


def init_dct_dictionary(n_atoms):
    ar = jnp.arange(n_atoms, dtype=jnp.float32)
    basis = jnp.cos(ar[None, :] * (ar[:, None] * jnp.pi / n_atoms))
    mean = basis.mean(axis=1, keepdims=True)
    basis = jnp.where(ar[:, None] > 0, basis - mean, basis)
    return basis / jnp.linalg.norm(basis, axis=1, keepdims=True)


def init_conv(key, cin, cout):
    kw, kb = jax.random.split(key)
    bound = 1.0 / (cin * 9) ** 0.5            # PyTorch default Conv2d init bound
    w = jax.random.uniform(kw, (cout, cin, 3, 3), jnp.float32, -bound, bound)
    b = jax.random.uniform(kb, (cout,), jnp.float32, -bound, bound)
    return w, b


def init_params(key, n_atoms):
    k1, k2, k3 = jax.random.split(key, 3)
    w1, b1 = init_conv(k1, n_atoms, 64)
    w2, b2 = init_conv(k2, 16, 64)
    w3, b3 = init_conv(k3, 16, 1)
    return {
        "dictionary": init_dct_dictionary(n_atoms),
        "theta": jnp.ones((n_atoms,), jnp.float32),
        "gamma": jnp.ones((n_atoms,), jnp.float32),   # unused, kept for parity
        "beta": jnp.float32(1.0),                     # unused, kept for parity
        "w1": w1, "b1": b1, "w2": w2, "b2": b2, "w3": w3, "b3": b3,
    }


def super_resolution_forward(lr, params):
    # lr: NCHW float32, C must be 1 (the torch code broadcasts x over atoms).
    B, C, H, W = lr.shape
    assert C == 1, "channel dim must broadcast against n_atoms (C == 1)"

    phi = params["dictionary"]                 # (N, N) -- KSVD.forward returns this
    n_atoms = phi.shape[0]
    theta = params["theta"]

    # L = torch.norm(Phi.T @ Phi, 2): the deprecated no-dim overload flattens,
    # i.e. the Frobenius norm (not the spectral norm).
    L = jnp.linalg.norm(phi.T @ phi)
    gram = phi @ phi.T                         # symmetric
    w_mat = (jnp.eye(n_atoms, dtype=jnp.float32) - gram / L).astype(jnp.float32)
    c_col = (phi.sum(axis=1, keepdims=True) / L).astype(jnp.float32)    # (N, 1)
    # threshold = lmbda/L with lmbda := theta (the ones() buffer passed in the
    # reference forward); config['fista_lambda'] is shadowed and unused there.
    thr_col = (theta / L).reshape(n_atoms, 1).astype(jnp.float32)
    mom = _fista_momentum_coeffs(FISTA_MAX_ITER)

    # Pixels on the lane axis: (1, R), zero-padded to a multiple of the tile.
    R = B * H * W
    tile_r = _pick_fista_tile(R)
    r_pad = _round_up(R, tile_r)
    x_row = lr.reshape(1, R).astype(jnp.float32)
    if r_pad != R:
        x_row = jnp.pad(x_row, ((0, 0), (0, r_pad - R)))

    codes = fista_sparse_code(mom, x_row, w_mat, c_col, thr_col, tile_r=tile_r)
    # (N, r_pad) -> (B, N, H, W)  (== torch's A.permute(0,2,1).view(B,N,h,w))
    A = codes[:, :R].reshape(n_atoms, B, H, W).transpose(1, 0, 2, 3)

    # Reconstructor: Conv(N->64) -> PixelShuffle(2) -> Conv(16->64) ->
    #                PixelShuffle(2) -> Conv(16->1) -> Sigmoid
    # Intermediate activations stay bf16; the pixel shuffles are pure
    # reshape/transposes that feed straight into the next conv's pad/flatten
    # prep so XLA can fuse them into a single data-movement pass.
    h = conv3x3(A, params["w1"], params["b1"], out_dtype=jnp.bfloat16)
    h = pixel_shuffle_nchw(h, 2)                                     # (B,16,2H,2W)
    h = conv3x3(h, params["w2"], params["b2"], out_dtype=jnp.bfloat16)
    h = pixel_shuffle_nchw(h, 2)                                     # (B,16,4H,4W)
    sr = conv3x3(h, params["w3"], params["b3"], apply_sigmoid=True,
                 out_dtype=jnp.float32)                              # (B,1,4H,4W)
    return sr


# TODO(synk): KSVD._omp (per-sample greedy OMP with lstsq) is dead code in this
# forward pass (KSVD.forward only returns the dictionary), so it is not ported.

if __name__ == "__main__":
    config = {"scale": 4, "n_atoms": 16, "sparsity": 5, "fista_lambda": 0.1}
    B, C, H, W = 2, 1, 8, 8

    key = jax.random.PRNGKey(0)
    kx, kp = jax.random.split(key)
    lr = 2.0 * jax.random.normal(kx, (B, C, H, W), dtype=jnp.float32)
    params = init_params(kp, config["n_atoms"])

    fwd = jax.jit(lambda x: super_resolution_forward(x, params))
    sr = fwd(lr)
    jax.block_until_ready(sr)

    assert sr.shape == (B, 1, 4 * H, 4 * W), sr.shape
    assert sr.dtype == jnp.float32
    assert bool(jnp.all(jnp.isfinite(sr)))
    print("KERNEL_OK")
</pallas_src>

<mosaic_0001>
module attributes {stable_mosaic.version = 11 : i64} {
  func.func @_fista_kernel(%arg0: i32, %arg1: memref<100xf32, #tpu.memory_space<smem>>, %arg2: memref<1x128xf32, #tpu.memory_space<vmem>>, %arg3: memref<16x16xf32, #tpu.memory_space<vmem>>, %arg4: memref<16x1xf32, #tpu.memory_space<vmem>>, %arg5: memref<16x1xf32, #tpu.memory_space<vmem>>, %arg6: memref<16x128xf32, #tpu.memory_space<vmem>>) attributes {dimension_semantics = [#tpu.dimension_semantics<parallel>], iteration_bounds = array<i64: 1>, scalar_prefetch = 0 : i64, scratch_operands = 0 : i64, tpu.core_type = #tpu.core_type<tc>, window_params = [{transform_indices = @transform_0, window_bounds = array<i64: 100>}, {transform_indices = @transform_1, window_bounds = array<i64: 1, 128>}, {pipeline_mode = #tpu.pipeline_mode<synchronous>, transform_indices = @transform_2, window_bounds = array<i64: 16, 16>}, {pipeline_mode = #tpu.pipeline_mode<synchronous>, transform_indices = @transform_3, window_bounds = array<i64: 16, 1>}, {pipeline_mode = #tpu.pipeline_mode<synchronous>, transform_indices = @transform_4, window_bounds = array<i64: 16, 1>}, {transform_indices = @transform_5, window_bounds = array<i64: 16, 128>}]} {
    %c0 = arith.constant 0 : index
    %c0_0 = arith.constant 0 : index
    %0 = vector.load %arg3[%c0, %c0_0] : memref<16x16xf32, #tpu.memory_space<vmem>>, vector<16x16xf32>
    %c0_1 = arith.constant 0 : index
    %c0_2 = arith.constant 0 : index
    %1 = vector.load %arg4[%c0_1, %c0_2] : memref<16x1xf32, #tpu.memory_space<vmem>>, vector<16x1xf32>
    %c0_3 = arith.constant 0 : index
    %c0_4 = arith.constant 0 : index
    %2 = vector.load %arg2[%c0_3, %c0_4] : memref<1x128xf32, #tpu.memory_space<vmem>>, vector<1x128xf32>
    %3 = vector.broadcast %1 : vector<16x1xf32> to vector<16x128xf32>
    %4 = vector.broadcast %2 : vector<1x128xf32> to vector<16x128xf32>
    %5 = arith.mulf %3, %4 : vector<16x128xf32>
    %c0_5 = arith.constant 0 : index
    %c0_6 = arith.constant 0 : index
    %6 = vector.load %arg5[%c0_5, %c0_6] : memref<16x1xf32, #tpu.memory_space<vmem>>, vector<16x1xf32>
    %7 = vector.shape_cast %6 : vector<16x1xf32> to vector<16x1xf32>
    %8 = vector.broadcast %7 : vector<16x1xf32> to vector<16x128xf32>
    %cst = arith.constant 0.000000e+00 : f32
    %9 = vector.broadcast %cst : f32 to vector<16x128xf32>
    %10 = arith.subf %9, %8 : vector<16x128xf32>
    %cst_7 = arith.constant 0.000000e+00 : f32
    %11 = vector.broadcast %cst_7 : f32 to vector<16x128xf32>
    %cst_8 = arith.constant 0.000000e+00 : f32
    %12 = vector.broadcast %cst_8 : f32 to vector<16x128xf32>
    %c0_i32 = arith.constant 0 : i32
    %c50_i32 = arith.constant 50 : i32
    %13 = arith.addi %c0_i32, %c50_i32 : i32
    %c1_i32 = arith.constant 1 : i32
    %14:2 = scf.for %arg7 = %c0_i32 to %13 step %c1_i32 iter_args(%arg8 = %11, %arg9 = %12) -> (vector<16x128xf32>, vector<16x128xf32>)  : i32 {
      %c2_i32 = arith.constant 2 : i32
      %16 = arith.muli %c2_i32, %arg7 : i32
      %17 = arith.index_cast %16 : i32 to index
      %18 = memref.load %arg1[%17] : memref<100xf32, #tpu.memory_space<smem>>
      %cst_12 = arith.constant dense<0.000000e+00> : vector<16x128xf32>
      %19 = tpu.matmul %0, %arg9, %cst_12 {dimension_numbers = #tpu.dot_dimension_numbers<[1], [0], [0], [1], [0, 0, 1, 1], [], []>} : vector<16x16xf32>, vector<16x128xf32>, vector<16x128xf32> -> vector<16x128xf32>
      %20 = arith.addf %19, %5 : vector<16x128xf32>
      %21 = arith.maximumf %10, %20 : vector<16x128xf32>
      %22 = arith.minimumf %8, %21 : vector<16x128xf32>
      %23 = arith.subf %20, %22 : vector<16x128xf32>
      %24 = arith.subf %23, %arg8 : vector<16x128xf32>
      %25 = vector.broadcast %18 : f32 to vector<16x128xf32>
      %26 = arith.mulf %25, %24 : vector<16x128xf32>
      %27 = arith.addf %23, %26 : vector<16x128xf32>
      %c2_i32_13 = arith.constant 2 : i32
      %28 = arith.muli %c2_i32_13, %arg7 : i32
      %c1_i32_14 = arith.constant 1 : i32
      %29 = arith.addi %28, %c1_i32_14 : i32
      %30 = arith.index_cast %29 : i32 to index
      %31 = memref.load %arg1[%30] : memref<100xf32, #tpu.memory_space<smem>>
      %cst_15 = arith.constant dense<0.000000e+00> : vector<16x128xf32>
      %32 = tpu.matmul %0, %27, %cst_15 {dimension_numbers = #tpu.dot_dimension_numbers<[1], [0], [0], [1], [0, 0, 1, 1], [], []>} : vector<16x16xf32>, vector<16x128xf32>, vector<16x128xf32> -> vector<16x128xf32>
      %33 = arith.addf %32, %5 : vector<16x128xf32>
      %34 = arith.maximumf %10, %33 : vector<16x128xf32>
      %35 = arith.minimumf %8, %34 : vector<16x128xf32>
      %36 = arith.subf %33, %35 : vector<16x128xf32>
      %37 = arith.subf %36, %23 : vector<16x128xf32>
      %38 = vector.broadcast %31 : f32 to vector<16x128xf32>
      %39 = arith.mulf %38, %37 : vector<16x128xf32>
      %40 = arith.addf %36, %39 : vector<16x128xf32>
      scf.yield %36, %40 : vector<16x128xf32>, vector<16x128xf32>
    }
    %c50_i32_9 = arith.constant 50 : i32
    %c0_10 = arith.constant 0 : index
    %c0_11 = arith.constant 0 : index
    %15 = vector.load %arg6[%c0_10, %c0_11] : memref<16x128xf32, #tpu.memory_space<vmem>>, vector<16x128xf32>
    tpu.vector_store %arg6[%c0_10, %c0_11], %14#0 {strides = array<i32>} : memref<16x128xf32, #tpu.memory_space<vmem>>, vector<16x128xf32>,
    return
  }
  func.func @transform_0(%arg0: i32) -> i32 {
    %c0_i32 = arith.constant 0 : i32
    %c0_i32_0 = arith.constant 0 : i32
    return %c0_i32 : i32
  }
  func.func @transform_1(%arg0: i32) -> (i32, i32) {
    %c0_i32 = arith.constant 0 : i32
    %c0_i32_0 = arith.constant 0 : i32
    return %c0_i32, %arg0 : i32, i32
  }
  func.func @transform_2(%arg0: i32) -> (i32, i32) {
    %c0_i32 = arith.constant 0 : i32
    %c0_i32_0 = arith.constant 0 : i32
    %c0_i32_1 = arith.constant 0 : i32
    return %c0_i32, %c0_i32_0 : i32, i32
  }
  func.func @transform_3(%arg0: i32) -> (i32, i32) {
    %c0_i32 = arith.constant 0 : i32
    %c0_i32_0 = arith.constant 0 : i32
    %c0_i32_1 = arith.constant 0 : i32
    return %c0_i32, %c0_i32_0 : i32, i32
  }
  func.func @transform_4(%arg0: i32) -> (i32, i32) {
    %c0_i32 = arith.constant 0 : i32
    %c0_i32_0 = arith.constant 0 : i32
    %c0_i32_1 = arith.constant 0 : i32
    return %c0_i32, %c0_i32_0 : i32, i32
  }
  func.func @transform_5(%arg0: i32) -> (i32, i32) {
    %c0_i32 = arith.constant 0 : i32
    %c0_i32_0 = arith.constant 0 : i32
    return %c0_i32, %arg0 : i32, i32
  }
}

module attributes {stable_mosaic.version = 11 : i64} {
  func.func @_conv3x3_kernel(%arg0: i32, %arg1: i32, %arg2: memref<1x1x16x102xbf16, #tpu.memory_space<vmem>>, %arg3: memref<9x64x16xbf16, #tpu.memory_space<vmem>>, %arg4: memref<64x1xf32, #tpu.memory_space<vmem>>, %arg5: memref<1x64x80xbf16, #tpu.memory_space<vmem>>) attributes {dimension_semantics = [#tpu.dimension_semantics<parallel>, #tpu.dimension_semantics<parallel>], iteration_bounds = array<i64: 2, 1>, scalar_prefetch = 0 : i64, scratch_operands = 0 : i64, tpu.core_type = #tpu.core_type<tc>, window_params = [{transform_indices = @transform_0, window_bounds = array<i64: 1, 1, 16, 102>}, {pipeline_mode = #tpu.pipeline_mode<synchronous>, transform_indices = @transform_1, window_bounds = array<i64: 9, 64, 16>}, {pipeline_mode = #tpu.pipeline_mode<synchronous>, transform_indices = @transform_2, window_bounds = array<i64: 64, 1>}, {transform_indices = @transform_3, window_bounds = array<i64: 1, 64, 80>}]} {
    %cst = arith.constant 0.000000e+00 : f32
    %0 = vector.broadcast %cst : f32 to vector<64x80xf32>
    %c0 = arith.constant 0 : index
    %c0_0 = arith.constant 0 : index
    %c0_1 = arith.constant 0 : index
    %c0_2 = arith.constant 0 : index
    %1 = vector.load %arg2[%c0, %c0_0, %c0_1, %c0_2] : memref<1x1x16x102xbf16, #tpu.memory_space<vmem>>, vector<1x1x16x80xbf16>
    %2 = vector.shape_cast %1 : vector<1x1x16x80xbf16> to vector<16x80xbf16>
    %c0_3 = arith.constant 0 : index
    %c0_4 = arith.constant 0 : index
    %c0_5 = arith.constant 0 : index
    %3 = vector.load %arg3[%c0_3, %c0_4, %c0_5] : memref<9x64x16xbf16, #tpu.memory_space<vmem>>, vector<1x64x16xbf16>
    %4 = vector.shape_cast %3 : vector<1x64x16xbf16> to vector<64x16xbf16>
    %cst_6 = arith.constant dense<0.000000e+00> : vector<64x80xf32>
    %5 = tpu.matmul %4, %2, %cst_6 {dimension_numbers = #tpu.dot_dimension_numbers<[1], [0], [0], [1], [0, 0, 1, 1], [], []>} : vector<64x16xbf16>, vector<16x80xbf16>, vector<64x80xf32> -> vector<64x80xf32>
    %6 = arith.addf %0, %5 : vector<64x80xf32>
    %c0_7 = arith.constant 0 : index
    %c0_8 = arith.constant 0 : index
    %c0_9 = arith.constant 0 : index
    %c1 = arith.constant 1 : index
    %7 = vector.load %arg2[%c0_7, %c0_8, %c0_9, %c1] : memref<1x1x16x102xbf16, #tpu.memory_space<vmem>>, vector<1x1x16x80xbf16>
    %8 = vector.shape_cast %7 : vector<1x1x16x80xbf16> to vector<16x80xbf16>
    %c1_10 = arith.constant 1 : index
    %c0_11 = arith.constant 0 : index
    %c0_12 = arith.constant 0 : index
    %9 = vector.load %arg3[%c1_10, %c0_11, %c0_12] : memref<9x64x16xbf16, #tpu.memory_space<vmem>>, vector<1x64x16xbf16>
    %10 = vector.shape_cast %9 : vector<1x64x16xbf16> to vector<64x16xbf16>
    %cst_13 = arith.constant dense<0.000000e+00> : vector<64x80xf32>
    %11 = tpu.matmul %10, %8, %cst_13 {dimension_numbers = #tpu.dot_dimension_numbers<[1], [0], [0], [1], [0, 0, 1, 1], [], []>} : vector<64x16xbf16>, vector<16x80xbf16>, vector<64x80xf32> -> vector<64x80xf32>
    %12 = arith.addf %6, %11 : vector<64x80xf32>
    %c0_14 = arith.constant 0 : index
    %c0_15 = arith.constant 0 : index
    %c0_16 = arith.constant 0 : index
    %c2 = arith.constant 2 : index
    %13 = vector.load %arg2[%c0_14, %c0_15, %c0_16, %c2] : memref<1x1x16x102xbf16, #tpu.memory_space<vmem>>, vector<1x1x16x80xbf16>
    %14 = vector.shape_cast %13 : vector<1x1x16x80xbf16> to vector<16x80xbf16>
    %c2_17 = arith.constant 2 : index
    %c0_18 = arith.constant 0 : index
    %c0_19 = arith.constant 0 : index
    %15 = vector.load %arg3[%c2_17, %c0_18, %c0_19] : memref<9x64x16xbf16, #tpu.memory_space<vmem>>, vector<1x64x16xbf16>
    %16 = vector.shape_cast %15 : vector<1x64x16xbf16> to vector<64x16xbf16>
    %cst_20 = arith.constant dense<0.000000e+00> : vector<64x80xf32>
    %17 = tpu.matmul %16, %14, %cst_20 {dimension_numbers = #tpu.dot_dimension_numbers<[1], [0], [0], [1], [0, 0, 1, 1], [], []>} : vector<64x16xbf16>, vector<16x80xbf16>, vector<64x80xf32> -> vector<64x80xf32>
    %18 = arith.addf %12, %17 : vector<64x80xf32>
    %c0_21 = arith.constant 0 : index
    %c0_22 = arith.constant 0 : index
    %c0_23 = arith.constant 0 : index
    %c10 = arith.constant 10 : index
    %19 = vector.load %arg2[%c0_21, %c0_22, %c0_23, %c10] : memref<1x1x16x102xbf16, #tpu.memory_space<vmem>>, vector<1x1x16x80xbf16>
    %20 = vector.shape_cast %19 : vector<1x1x16x80xbf16> to vector<16x80xbf16>
    %c3 = arith.constant 3 : index
    %c0_24 = arith.constant 0 : index
    %c0_25 = arith.constant 0 : index
    %21 = vector.load %arg3[%c3, %c0_24, %c0_25] : memref<9x64x16xbf16, #tpu.memory_space<vmem>>, vector<1x64x16xbf16>
    %22 = vector.shape_cast %21 : vector<1x64x16xbf16> to vector<64x16xbf16>
    %cst_26 = arith.constant dense<0.000000e+00> : vector<64x80xf32>
    %23 = tpu.matmul %22, %20, %cst_26 {dimension_numbers = #tpu.dot_dimension_numbers<[1], [0], [0], [1], [0, 0, 1, 1], [], []>} : vector<64x16xbf16>, vector<16x80xbf16>, vector<64x80xf32> -> vector<64x80xf32>
    %24 = arith.addf %18, %23 : vector<64x80xf32>
    %c0_27 = arith.constant 0 : index
    %c0_28 = arith.constant 0 : index
    %c0_29 = arith.constant 0 : index
    %c11 = arith.constant 11 : index
    %25 = vector.load %arg2[%c0_27, %c0_28, %c0_29, %c11] : memref<1x1x16x102xbf16, #tpu.memory_space<vmem>>, vector<1x1x16x80xbf16>
    %26 = vector.shape_cast %25 : vector<1x1x16x80xbf16> to vector<16x80xbf16>
    %c4 = arith.constant 4 : index
    %c0_30 = arith.constant 0 : index
    %c0_31 = arith.constant 0 : index
    %27 = vector.load %arg3[%c4, %c0_30, %c0_31] : memref<9x64x16xbf16, #tpu.memory_space<vmem>>, vector<1x64x16xbf16>
    %28 = vector.shape_cast %27 : vector<1x64x16xbf16> to vector<64x16xbf16>
    %cst_32 = arith.constant dense<0.000000e+00> : vector<64x80xf32>
    %29 = tpu.matmul %28, %26, %cst_32 {dimension_numbers = #tpu.dot_dimension_numbers<[1], [0], [0], [1], [0, 0, 1, 1], [], []>} : vector<64x16xbf16>, vector<16x80xbf16>, vector<64x80xf32> -> vector<64x80xf32>
    %30 = arith.addf %24, %29 : vector<64x80xf32>
    %c0_33 = arith.constant 0 : index
    %c0_34 = arith.constant 0 : index
    %c0_35 = arith.constant 0 : index
    %c12 = arith.constant 12 : index
    %31 = vector.load %arg2[%c0_33, %c0_34, %c0_35, %c12] : memref<1x1x16x102xbf16, #tpu.memory_space<vmem>>, vector<1x1x16x80xbf16>
    %32 = vector.shape_cast %31 : vector<1x1x16x80xbf16> to vector<16x80xbf16>
    %c5 = arith.constant 5 : index
    %c0_36 = arith.constant 0 : index
    %c0_37 = arith.constant 0 : index
    %33 = vector.load %arg3[%c5, %c0_36, %c0_37] : memref<9x64x16xbf16, #tpu.memory_space<vmem>>, vector<1x64x16xbf16>
    %34 = vector.shape_cast %33 : vector<1x64x16xbf16> to vector<64x16xbf16>
    %cst_38 = arith.constant dense<0.000000e+00> : vector<64x80xf32>
    %35 = tpu.matmul %34, %32, %cst_38 {dimension_numbers = #tpu.dot_dimension_numbers<[1], [0], [0], [1], [0, 0, 1, 1], [], []>} : vector<64x16xbf16>, vector<16x80xbf16>, vector<64x80xf32> -> vector<64x80xf32>
    %36 = arith.addf %30, %35 : vector<64x80xf32>
    %c0_39 = arith.constant 0 : index
    %c0_40 = arith.constant 0 : index
    %c0_41 = arith.constant 0 : index
    %c20 = arith.constant 20 : index
    %37 = vector.load %arg2[%c0_39, %c0_40, %c0_41, %c20] : memref<1x1x16x102xbf16, #tpu.memory_space<vmem>>, vector<1x1x16x80xbf16>
    %38 = vector.shape_cast %37 : vector<1x1x16x80xbf16> to vector<16x80xbf16>
    %c6 = arith.constant 6 : index
    %c0_42 = arith.constant 0 : index
    %c0_43 = arith.constant 0 : index
    %39 = vector.load %arg3[%c6, %c0_42, %c0_43] : memref<9x64x16xbf16, #tpu.memory_space<vmem>>, vector<1x64x16xbf16>
    %40 = vector.shape_cast %39 : vector<1x64x16xbf16> to vector<64x16xbf16>
    %cst_44 = arith.constant dense<0.000000e+00> : vector<64x80xf32>
    %41 = tpu.matmul %40, %38, %cst_44 {dimension_numbers = #tpu.dot_dimension_numbers<[1], [0], [0], [1], [0, 0, 1, 1], [], []>} : vector<64x16xbf16>, vector<16x80xbf16>, vector<64x80xf32> -> vector<64x80xf32>
    %42 = arith.addf %36, %41 : vector<64x80xf32>
    %c0_45 = arith.constant 0 : index
    %c0_46 = arith.constant 0 : index
    %c0_47 = arith.constant 0 : index
    %c21 = arith.constant 21 : index
    %43 = vector.load %arg2[%c0_45, %c0_46, %c0_47, %c21] : memref<1x1x16x102xbf16, #tpu.memory_space<vmem>>, vector<1x1x16x80xbf16>
    %44 = vector.shape_cast %43 : vector<1x1x16x80xbf16> to vector<16x80xbf16>
    %c7 = arith.constant 7 : index
    %c0_48 = arith.constant 0 : index
    %c0_49 = arith.constant 0 : index
    %45 = vector.load %arg3[%c7, %c0_48, %c0_49] : memref<9x64x16xbf16, #tpu.memory_space<vmem>>, vector<1x64x16xbf16>
    %46 = vector.shape_cast %45 : vector<1x64x16xbf16> to vector<64x16xbf16>
    %cst_50 = arith.constant dense<0.000000e+00> : vector<64x80xf32>
    %47 = tpu.matmul %46, %44, %cst_50 {dimension_numbers = #tpu.dot_dimension_numbers<[1], [0], [0], [1], [0, 0, 1, 1], [], []>} : vector<64x16xbf16>, vector<16x80xbf16>, vector<64x80xf32> -> vector<64x80xf32>
    %48 = arith.addf %42, %47 : vector<64x80xf32>
    %c0_51 = arith.constant 0 : index
    %c0_52 = arith.constant 0 : index
    %c0_53 = arith.constant 0 : index
    %c22 = arith.constant 22 : index
    %49 = vector.load %arg2[%c0_51, %c0_52, %c0_53, %c22] : memref<1x1x16x102xbf16, #tpu.memory_space<vmem>>, vector<1x1x16x80xbf16>
    %50 = vector.shape_cast %49 : vector<1x1x16x80xbf16> to vector<16x80xbf16>
    %c8 = arith.constant 8 : index
    %c0_54 = arith.constant 0 : index
    %c0_55 = arith.constant 0 : index
    %51 = vector.load %arg3[%c8, %c0_54, %c0_55] : memref<9x64x16xbf16, #tpu.memory_space<vmem>>, vector<1x64x16xbf16>
    %52 = vector.shape_cast %51 : vector<1x64x16xbf16> to vector<64x16xbf16>
    %cst_56 = arith.constant dense<0.000000e+00> : vector<64x80xf32>
    %53 = tpu.matmul %52, %50, %cst_56 {dimension_numbers = #tpu.dot_dimension_numbers<[1], [0], [0], [1], [0, 0, 1, 1], [], []>} : vector<64x16xbf16>, vector<16x80xbf16>, vector<64x80xf32> -> vector<64x80xf32>
    %54 = arith.addf %48, %53 : vector<64x80xf32>
    %c0_57 = arith.constant 0 : index
    %c0_58 = arith.constant 0 : index
    %55 = vector.load %arg4[%c0_57, %c0_58] : memref<64x1xf32, #tpu.memory_space<vmem>>, vector<64x1xf32>
    %56 = vector.broadcast %55 : vector<64x1xf32> to vector<64x80xf32>
    %57 = arith.addf %54, %56 : vector<64x80xf32>
    %58 = vector.shape_cast %57 : vector<64x80xf32> to vector<1x64x80xf32>
    %59 = arith.truncf %58 : vector<1x64x80xf32> to vector<1x64x80xbf16>
    %c0_59 = arith.constant 0 : index
    %c0_60 = arith.constant 0 : index
    %c0_61 = arith.constant 0 : index
    %60 = vector.load %arg5[%c0_59, %c0_60, %c0_61] : memref<1x64x80xbf16, #tpu.memory_space<vmem>>, vector<1x64x80xbf16>
    tpu.vector_store %arg5[%c0_59, %c0_60, %c0_61], %59 {strides = array<i32>} : memref<1x64x80xbf16, #tpu.memory_space<vmem>>, vector<1x64x80xbf16>,
    return
  }
  func.func @transform_0(%arg0: i32, %arg1: i32) -> (i32, i32, i32, i32) {
    %c0_i32 = arith.constant 0 : i32
    %c0_i32_0 = arith.constant 0 : i32
    %c0_i32_1 = arith.constant 0 : i32
    return %arg0, %arg1, %c0_i32, %c0_i32_0 : i32, i32, i32, i32
  }
  func.func @transform_1(%arg0: i32, %arg1: i32) -> (i32, i32, i32) {
    %c0_i32 = arith.constant 0 : i32
    %c0_i32_0 = arith.constant 0 : i32
    %c0_i32_1 = arith.constant 0 : i32
    %c0_i32_2 = arith.constant 0 : i32
    return %c0_i32, %c0_i32_0, %c0_i32_1 : i32, i32, i32
  }
  func.func @transform_2(%arg0: i32, %arg1: i32) -> (i32, i32) {
    %c0_i32 = arith.constant 0 : i32
    %c0_i32_0 = arith.constant 0 : i32
    %c0_i32_1 = arith.constant 0 : i32
    return %c0_i32, %c0_i32_0 : i32, i32
  }
  func.func @transform_3(%arg0: i32, %arg1: i32) -> (i32, i32, i32) {
    %c0_i32 = arith.constant 0 : i32
    %c0_i32_0 = arith.constant 0 : i32
    return %arg0, %c0_i32, %arg1 : i32, i32, i32
  }
}

module attributes {stable_mosaic.version = 11 : i64} {
  func.func @_conv3x3_kernel(%arg0: i32, %arg1: i32, %arg2: memref<1x1x16x326xbf16, #tpu.memory_space<vmem>>, %arg3: memref<9x64x16xbf16, #tpu.memory_space<vmem>>, %arg4: memref<64x1xf32, #tpu.memory_space<vmem>>, %arg5: memref<1x64x288xbf16, #tpu.memory_space<vmem>>) attributes {dimension_semantics = [#tpu.dimension_semantics<parallel>, #tpu.dimension_semantics<parallel>], iteration_bounds = array<i64: 2, 1>, scalar_prefetch = 0 : i64, scratch_operands = 0 : i64, tpu.core_type = #tpu.core_type<tc>, window_params = [{transform_indices = @transform_0, window_bounds = array<i64: 1, 1, 16, 326>}, {pipeline_mode = #tpu.pipeline_mode<synchronous>, transform_indices = @transform_1, window_bounds = array<i64: 9, 64, 16>}, {pipeline_mode = #tpu.pipeline_mode<synchronous>, transform_indices = @transform_2, window_bounds = array<i64: 64, 1>}, {transform_indices = @transform_3, window_bounds = array<i64: 1, 64, 288>}]} {
    %cst = arith.constant 0.000000e+00 : f32
    %0 = vector.broadcast %cst : f32 to vector<64x288xf32>
    %c0 = arith.constant 0 : index
    %c0_0 = arith.constant 0 : index
    %c0_1 = arith.constant 0 : index
    %c0_2 = arith.constant 0 : index
    %1 = vector.load %arg2[%c0, %c0_0, %c0_1, %c0_2] : memref<1x1x16x326xbf16, #tpu.memory_space<vmem>>, vector<1x1x16x288xbf16>
    %2 = vector.shape_cast %1 : vector<1x1x16x288xbf16> to vector<16x288xbf16>
    %c0_3 = arith.constant 0 : index
    %c0_4 = arith.constant 0 : index
    %c0_5 = arith.constant 0 : index
    %3 = vector.load %arg3[%c0_3, %c0_4, %c0_5] : memref<9x64x16xbf16, #tpu.memory_space<vmem>>, vector<1x64x16xbf16>
    %4 = vector.shape_cast %3 : vector<1x64x16xbf16> to vector<64x16xbf16>
    %cst_6 = arith.constant dense<0.000000e+00> : vector<64x288xf32>
    %5 = tpu.matmul %4, %2, %cst_6 {dimension_numbers = #tpu.dot_dimension_numbers<[1], [0], [0], [1], [0, 0, 1, 1], [], []>} : vector<64x16xbf16>, vector<16x288xbf16>, vector<64x288xf32> -> vector<64x288xf32>
    %6 = arith.addf %0, %5 : vector<64x288xf32>
    %c0_7 = arith.constant 0 : index
    %c0_8 = arith.constant 0 : index
    %c0_9 = arith.constant 0 : index
    %c1 = arith.constant 1 : index
    %7 = vector.load %arg2[%c0_7, %c0_8, %c0_9, %c1] : memref<1x1x16x326xbf16, #tpu.memory_space<vmem>>, vector<1x1x16x288xbf16>
    %8 = vector.shape_cast %7 : vector<1x1x16x288xbf16> to vector<16x288xbf16>
    %c1_10 = arith.constant 1 : index
    %c0_11 = arith.constant 0 : index
    %c0_12 = arith.constant 0 : index
    %9 = vector.load %arg3[%c1_10, %c0_11, %c0_12] : memref<9x64x16xbf16, #tpu.memory_space<vmem>>, vector<1x64x16xbf16>
    %10 = vector.shape_cast %9 : vector<1x64x16xbf16> to vector<64x16xbf16>
    %cst_13 = arith.constant dense<0.000000e+00> : vector<64x288xf32>
    %11 = tpu.matmul %10, %8, %cst_13 {dimension_numbers = #tpu.dot_dimension_numbers<[1], [0], [0], [1], [0, 0, 1, 1], [], []>} : vector<64x16xbf16>, vector<16x288xbf16>, vector<64x288xf32> -> vector<64x288xf32>
    %12 = arith.addf %6, %11 : vector<64x288xf32>
    %c0_14 = arith.constant 0 : index
    %c0_15 = arith.constant 0 : index
    %c0_16 = arith.constant 0 : index
    %c2 = arith.constant 2 : index
    %13 = vector.load %arg2[%c0_14, %c0_15, %c0_16, %c2] : memref<1x1x16x326xbf16, #tpu.memory_space<vmem>>, vector<1x1x16x288xbf16>
    %14 = vector.shape_cast %13 : vector<1x1x16x288xbf16> to vector<16x288xbf16>
    %c2_17 = arith.constant 2 : index
    %c0_18 = arith.constant 0 : index
    %c0_19 = arith.constant 0 : index
    %15 = vector.load %arg3[%c2_17, %c0_18, %c0_19] : memref<9x64x16xbf16, #tpu.memory_space<vmem>>, vector<1x64x16xbf16>
    %16 = vector.shape_cast %15 : vector<1x64x16xbf16> to vector<64x16xbf16>
    %cst_20 = arith.constant dense<0.000000e+00> : vector<64x288xf32>
    %17 = tpu.matmul %16, %14, %cst_20 {dimension_numbers = #tpu.dot_dimension_numbers<[1], [0], [0], [1], [0, 0, 1, 1], [], []>} : vector<64x16xbf16>, vector<16x288xbf16>, vector<64x288xf32> -> vector<64x288xf32>
    %18 = arith.addf %12, %17 : vector<64x288xf32>
    %c0_21 = arith.constant 0 : index
    %c0_22 = arith.constant 0 : index
    %c0_23 = arith.constant 0 : index
    %c18 = arith.constant 18 : index
    %19 = vector.load %arg2[%c0_21, %c0_22, %c0_23, %c18] : memref<1x1x16x326xbf16, #tpu.memory_space<vmem>>, vector<1x1x16x288xbf16>
    %20 = vector.shape_cast %19 : vector<1x1x16x288xbf16> to vector<16x288xbf16>
    %c3 = arith.constant 3 : index
    %c0_24 = arith.constant 0 : index
    %c0_25 = arith.constant 0 : index
    %21 = vector.load %arg3[%c3, %c0_24, %c0_25] : memref<9x64x16xbf16, #tpu.memory_space<vmem>>, vector<1x64x16xbf16>
    %22 = vector.shape_cast %21 : vector<1x64x16xbf16> to vector<64x16xbf16>
    %cst_26 = arith.constant dense<0.000000e+00> : vector<64x288xf32>
    %23 = tpu.matmul %22, %20, %cst_26 {dimension_numbers = #tpu.dot_dimension_numbers<[1], [0], [0], [1], [0, 0, 1, 1], [], []>} : vector<64x16xbf16>, vector<16x288xbf16>, vector<64x288xf32> -> vector<64x288xf32>
    %24 = arith.addf %18, %23 : vector<64x288xf32>
    %c0_27 = arith.constant 0 : index
    %c0_28 = arith.constant 0 : index
    %c0_29 = arith.constant 0 : index
    %c19 = arith.constant 19 : index
    %25 = vector.load %arg2[%c0_27, %c0_28, %c0_29, %c19] : memref<1x1x16x326xbf16, #tpu.memory_space<vmem>>, vector<1x1x16x288xbf16>
    %26 = vector.shape_cast %25 : vector<1x1x16x288xbf16> to vector<16x288xbf16>
    %c4 = arith.constant 4 : index
    %c0_30 = arith.constant 0 : index
    %c0_31 = arith.constant 0 : index
    %27 = vector.load %arg3[%c4, %c0_30, %c0_31] : memref<9x64x16xbf16, #tpu.memory_space<vmem>>, vector<1x64x16xbf16>
    %28 = vector.shape_cast %27 : vector<1x64x16xbf16> to vector<64x16xbf16>
    %cst_32 = arith.constant dense<0.000000e+00> : vector<64x288xf32>
    %29 = tpu.matmul %28, %26, %cst_32 {dimension_numbers = #tpu.dot_dimension_numbers<[1], [0], [0], [1], [0, 0, 1, 1], [], []>} : vector<64x16xbf16>, vector<16x288xbf16>, vector<64x288xf32> -> vector<64x288xf32>
    %30 = arith.addf %24, %29 : vector<64x288xf32>
    %c0_33 = arith.constant 0 : index
    %c0_34 = arith.constant 0 : index
    %c0_35 = arith.constant 0 : index
    %c20 = arith.constant 20 : index
    %31 = vector.load %arg2[%c0_33, %c0_34, %c0_35, %c20] : memref<1x1x16x326xbf16, #tpu.memory_space<vmem>>, vector<1x1x16x288xbf16>
    %32 = vector.shape_cast %31 : vector<1x1x16x288xbf16> to vector<16x288xbf16>
    %c5 = arith.constant 5 : index
    %c0_36 = arith.constant 0 : index
    %c0_37 = arith.constant 0 : index
    %33 = vector.load %arg3[%c5, %c0_36, %c0_37] : memref<9x64x16xbf16, #tpu.memory_space<vmem>>, vector<1x64x16xbf16>
    %34 = vector.shape_cast %33 : vector<1x64x16xbf16> to vector<64x16xbf16>
    %cst_38 = arith.constant dense<0.000000e+00> : vector<64x288xf32>
    %35 = tpu.matmul %34, %32, %cst_38 {dimension_numbers = #tpu.dot_dimension_numbers<[1], [0], [0], [1], [0, 0, 1, 1], [], []>} : vector<64x16xbf16>, vector<16x288xbf16>, vector<64x288xf32> -> vector<64x288xf32>
    %36 = arith.addf %30, %35 : vector<64x288xf32>
    %c0_39 = arith.constant 0 : index
    %c0_40 = arith.constant 0 : index
    %c0_41 = arith.constant 0 : index
    %c36 = arith.constant 36 : index
    %37 = vector.load %arg2[%c0_39, %c0_40, %c0_41, %c36] : memref<1x1x16x326xbf16, #tpu.memory_space<vmem>>, vector<1x1x16x288xbf16>
    %38 = vector.shape_cast %37 : vector<1x1x16x288xbf16> to vector<16x288xbf16>
    %c6 = arith.constant 6 : index
    %c0_42 = arith.constant 0 : index
    %c0_43 = arith.constant 0 : index
    %39 = vector.load %arg3[%c6, %c0_42, %c0_43] : memref<9x64x16xbf16, #tpu.memory_space<vmem>>, vector<1x64x16xbf16>
    %40 = vector.shape_cast %39 : vector<1x64x16xbf16> to vector<64x16xbf16>
    %cst_44 = arith.constant dense<0.000000e+00> : vector<64x288xf32>
    %41 = tpu.matmul %40, %38, %cst_44 {dimension_numbers = #tpu.dot_dimension_numbers<[1], [0], [0], [1], [0, 0, 1, 1], [], []>} : vector<64x16xbf16>, vector<16x288xbf16>, vector<64x288xf32> -> vector<64x288xf32>
    %42 = arith.addf %36, %41 : vector<64x288xf32>
    %c0_45 = arith.constant 0 : index
    %c0_46 = arith.constant 0 : index
    %c0_47 = arith.constant 0 : index
    %c37 = arith.constant 37 : index
    %43 = vector.load %arg2[%c0_45, %c0_46, %c0_47, %c37] : memref<1x1x16x326xbf16, #tpu.memory_space<vmem>>, vector<1x1x16x288xbf16>
    %44 = vector.shape_cast %43 : vector<1x1x16x288xbf16> to vector<16x288xbf16>
    %c7 = arith.constant 7 : index
    %c0_48 = arith.constant 0 : index
    %c0_49 = arith.constant 0 : index
    %45 = vector.load %arg3[%c7, %c0_48, %c0_49] : memref<9x64x16xbf16, #tpu.memory_space<vmem>>, vector<1x64x16xbf16>
    %46 = vector.shape_cast %45 : vector<1x64x16xbf16> to vector<64x16xbf16>
    %cst_50 = arith.constant dense<0.000000e+00> : vector<64x288xf32>
    %47 = tpu.matmul %46, %44, %cst_50 {dimension_numbers = #tpu.dot_dimension_numbers<[1], [0], [0], [1], [0, 0, 1, 1], [], []>} : vector<64x16xbf16>, vector<16x288xbf16>, vector<64x288xf32> -> vector<64x288xf32>
    %48 = arith.addf %42, %47 : vector<64x288xf32>
    %c0_51 = arith.constant 0 : index
    %c0_52 = arith.constant 0 : index
    %c0_53 = arith.constant 0 : index
    %c38 = arith.constant 38 : index
    %49 = vector.load %arg2[%c0_51, %c0_52, %c0_53, %c38] : memref<1x1x16x326xbf16, #tpu.memory_space<vmem>>, vector<1x1x16x288xbf16>
    %50 = vector.shape_cast %49 : vector<1x1x16x288xbf16> to vector<16x288xbf16>
    %c8 = arith.constant 8 : index
    %c0_54 = arith.constant 0 : index
    %c0_55 = arith.constant 0 : index
    %51 = vector.load %arg3[%c8, %c0_54, %c0_55] : memref<9x64x16xbf16, #tpu.memory_space<vmem>>, vector<1x64x16xbf16>
    %52 = vector.shape_cast %51 : vector<1x64x16xbf16> to vector<64x16xbf16>
    %cst_56 = arith.constant dense<0.000000e+00> : vector<64x288xf32>
    %53 = tpu.matmul %52, %50, %cst_56 {dimension_numbers = #tpu.dot_dimension_numbers<[1], [0], [0], [1], [0, 0, 1, 1], [], []>} : vector<64x16xbf16>, vector<16x288xbf16>, vector<64x288xf32> -> vector<64x288xf32>
    %54 = arith.addf %48, %53 : vector<64x288xf32>
    %c0_57 = arith.constant 0 : index
    %c0_58 = arith.constant 0 : index
    %55 = vector.load %arg4[%c0_57, %c0_58] : memref<64x1xf32, #tpu.memory_space<vmem>>, vector<64x1xf32>
    %56 = vector.broadcast %55 : vector<64x1xf32> to vector<64x288xf32>
    %57 = arith.addf %54, %56 : vector<64x288xf32>
    %58 = vector.shape_cast %57 : vector<64x288xf32> to vector<1x64x288xf32>
    %59 = arith.truncf %58 : vector<1x64x288xf32> to vector<1x64x288xbf16>
    %c0_59 = arith.constant 0 : index
    %c0_60 = arith.constant 0 : index
    %c0_61 = arith.constant 0 : index
    %60 = vector.load %arg5[%c0_59, %c0_60, %c0_61] : memref<1x64x288xbf16, #tpu.memory_space<vmem>>, vector<1x64x288xbf16>
    tpu.vector_store %arg5[%c0_59, %c0_60, %c0_61], %59 {strides = array<i32>} : memref<1x64x288xbf16, #tpu.memory_space<vmem>>, vector<1x64x288xbf16>,
    return
  }
  func.func @transform_0(%arg0: i32, %arg1: i32) -> (i32, i32, i32, i32) {
    %c0_i32 = arith.constant 0 : i32
    %c0_i32_0 = arith.constant 0 : i32
    %c0_i32_1 = arith.constant 0 : i32
    return %arg0, %arg1, %c0_i32, %c0_i32_0 : i32, i32, i32, i32
  }
  func.func @transform_1(%arg0: i32, %arg1: i32) -> (i32, i32, i32) {
    %c0_i32 = arith.constant 0 : i32
    %c0_i32_0 = arith.constant 0 : i32
    %c0_i32_1 = arith.constant 0 : i32
    %c0_i32_2 = arith.constant 0 : i32
    return %c0_i32, %c0_i32_0, %c0_i32_1 : i32, i32, i32
  }
  func.func @transform_2(%arg0: i32, %arg1: i32) -> (i32, i32) {
    %c0_i32 = arith.constant 0 : i32
    %c0_i32_0 = arith.constant 0 : i32
    %c0_i32_1 = arith.constant 0 : i32
    return %c0_i32, %c0_i32_0 : i32, i32
  }
  func.func @transform_3(%arg0: i32, %arg1: i32) -> (i32, i32, i32) {
    %c0_i32 = arith.constant 0 : i32
    %c0_i32_0 = arith.constant 0 : i32
    return %arg0, %c0_i32, %arg1 : i32, i32, i32
  }
}

module attributes {stable_mosaic.version = 11 : i64} {
  func.func @_conv3x3_kernel(%arg0: i32, %arg1: i32, %arg2: memref<1x1x16x1158xbf16, #tpu.memory_space<vmem>>, %arg3: memref<9x16x1xf32, #tpu.memory_space<vmem>>, %arg4: memref<1x1xf32, #tpu.memory_space<vmem>>, %arg5: memref<1x1x1088xf32, #tpu.memory_space<vmem>>) attributes {dimension_semantics = [#tpu.dimension_semantics<parallel>, #tpu.dimension_semantics<parallel>], iteration_bounds = array<i64: 2, 1>, scalar_prefetch = 0 : i64, scratch_operands = 0 : i64, tpu.core_type = #tpu.core_type<tc>, window_params = [{transform_indices = @transform_0, window_bounds = array<i64: 1, 1, 16, 1158>}, {pipeline_mode = #tpu.pipeline_mode<synchronous>, transform_indices = @transform_1, window_bounds = array<i64: 9, 16, 1>}, {pipeline_mode = #tpu.pipeline_mode<synchronous>, transform_indices = @transform_2, window_bounds = array<i64: 1, 1>}, {transform_indices = @transform_3, window_bounds = array<i64: 1, 1, 1088>}]} {
    %cst = arith.constant 0.000000e+00 : f32
    %0 = vector.broadcast %cst : f32 to vector<16x1088xf32>
    %c0 = arith.constant 0 : index
    %c0_0 = arith.constant 0 : index
    %c0_1 = arith.constant 0 : index
    %c0_2 = arith.constant 0 : index
    %1 = vector.load %arg2[%c0, %c0_0, %c0_1, %c0_2] : memref<1x1x16x1158xbf16, #tpu.memory_space<vmem>>, vector<1x1x16x1088xbf16>
    %2 = vector.shape_cast %1 : vector<1x1x16x1088xbf16> to vector<16x1088xbf16>
    %3 = arith.extf %2 : vector<16x1088xbf16> to vector<16x1088xf32>
    %c0_3 = arith.constant 0 : index
    %c0_4 = arith.constant 0 : index
    %c0_5 = arith.constant 0 : index
    %4 = vector.load %arg3[%c0_3, %c0_4, %c0_5] : memref<9x16x1xf32, #tpu.memory_space<vmem>>, vector<1x16x1xf32>
    %5 = vector.shape_cast %4 : vector<1x16x1xf32> to vector<16x1xf32>
    %6 = vector.broadcast %5 : vector<16x1xf32> to vector<16x1088xf32>
    %7 = arith.mulf %6, %3 : vector<16x1088xf32>
    %8 = arith.addf %0, %7 : vector<16x1088xf32>
    %c0_6 = arith.constant 0 : index
    %c0_7 = arith.constant 0 : index
    %c0_8 = arith.constant 0 : index
    %c1 = arith.constant 1 : index
    %9 = vector.load %arg2[%c0_6, %c0_7, %c0_8, %c1] : memref<1x1x16x1158xbf16, #tpu.memory_space<vmem>>, vector<1x1x16x1088xbf16>
    %10 = vector.shape_cast %9 : vector<1x1x16x1088xbf16> to vector<16x1088xbf16>
    %11 = arith.extf %10 : vector<16x1088xbf16> to vector<16x1088xf32>
    %c1_9 = arith.constant 1 : index
    %c0_10 = arith.constant 0 : index
    %c0_11 = arith.constant 0 : index
    %12 = vector.load %arg3[%c1_9, %c0_10, %c0_11] : memref<9x16x1xf32, #tpu.memory_space<vmem>>, vector<1x16x1xf32>
    %13 = vector.shape_cast %12 : vector<1x16x1xf32> to vector<16x1xf32>
    %14 = vector.broadcast %13 : vector<16x1xf32> to vector<16x1088xf32>
    %15 = arith.mulf %14, %11 : vector<16x1088xf32>
    %16 = arith.addf %8, %15 : vector<16x1088xf32>
    %c0_12 = arith.constant 0 : index
    %c0_13 = arith.constant 0 : index
    %c0_14 = arith.constant 0 : index
    %c2 = arith.constant 2 : index
    %17 = vector.load %arg2[%c0_12, %c0_13, %c0_14, %c2] : memref<1x1x16x1158xbf16, #tpu.memory_space<vmem>>, vector<1x1x16x1088xbf16>
    %18 = vector.shape_cast %17 : vector<1x1x16x1088xbf16> to vector<16x1088xbf16>
    %19 = arith.extf %18 : vector<16x1088xbf16> to vector<16x1088xf32>
    %c2_15 = arith.constant 2 : index
    %c0_16 = arith.constant 0 : index
    %c0_17 = arith.constant 0 : index
    %20 = vector.load %arg3[%c2_15, %c0_16, %c0_17] : memref<9x16x1xf32, #tpu.memory_space<vmem>>, vector<1x16x1xf32>
    %21 = vector.shape_cast %20 : vector<1x16x1xf32> to vector<16x1xf32>
    %22 = vector.broadcast %21 : vector<16x1xf32> to vector<16x1088xf32>
    %23 = arith.mulf %22, %19 : vector<16x1088xf32>
    %24 = arith.addf %16, %23 : vector<16x1088xf32>
    %c0_18 = arith.constant 0 : index
    %c0_19 = arith.constant 0 : index
    %c0_20 = arith.constant 0 : index
    %c34 = arith.constant 34 : index
    %25 = vector.load %arg2[%c0_18, %c0_19, %c0_20, %c34] : memref<1x1x16x1158xbf16, #tpu.memory_space<vmem>>, vector<1x1x16x1088xbf16>
    %26 = vector.shape_cast %25 : vector<1x1x16x1088xbf16> to vector<16x1088xbf16>
    %27 = arith.extf %26 : vector<16x1088xbf16> to vector<16x1088xf32>
    %c3 = arith.constant 3 : index
    %c0_21 = arith.constant 0 : index
    %c0_22 = arith.constant 0 : index
    %28 = vector.load %arg3[%c3, %c0_21, %c0_22] : memref<9x16x1xf32, #tpu.memory_space<vmem>>, vector<1x16x1xf32>
    %29 = vector.shape_cast %28 : vector<1x16x1xf32> to vector<16x1xf32>
    %30 = vector.broadcast %29 : vector<16x1xf32> to vector<16x1088xf32>
    %31 = arith.mulf %30, %27 : vector<16x1088xf32>
    %32 = arith.addf %24, %31 : vector<16x1088xf32>
    %c0_23 = arith.constant 0 : index
    %c0_24 = arith.constant 0 : index
    %c0_25 = arith.constant 0 : index
    %c35 = arith.constant 35 : index
    %33 = vector.load %arg2[%c0_23, %c0_24, %c0_25, %c35] : memref<1x1x16x1158xbf16, #tpu.memory_space<vmem>>, vector<1x1x16x1088xbf16>
    %34 = vector.shape_cast %33 : vector<1x1x16x1088xbf16> to vector<16x1088xbf16>
    %35 = arith.extf %34 : vector<16x1088xbf16> to vector<16x1088xf32>
    %c4 = arith.constant 4 : index
    %c0_26 = arith.constant 0 : index
    %c0_27 = arith.constant 0 : index
    %36 = vector.load %arg3[%c4, %c0_26, %c0_27] : memref<9x16x1xf32, #tpu.memory_space<vmem>>, vector<1x16x1xf32>
    %37 = vector.shape_cast %36 : vector<1x16x1xf32> to vector<16x1xf32>
    %38 = vector.broadcast %37 : vector<16x1xf32> to vector<16x1088xf32>
    %39 = arith.mulf %38, %35 : vector<16x1088xf32>
    %40 = arith.addf %32, %39 : vector<16x1088xf32>
    %c0_28 = arith.constant 0 : index
    %c0_29 = arith.constant 0 : index
    %c0_30 = arith.constant 0 : index
    %c36 = arith.constant 36 : index
    %41 = vector.load %arg2[%c0_28, %c0_29, %c0_30, %c36] : memref<1x1x16x1158xbf16, #tpu.memory_space<vmem>>, vector<1x1x16x1088xbf16>
    %42 = vector.shape_cast %41 : vector<1x1x16x1088xbf16> to vector<16x1088xbf16>
    %43 = arith.extf %42 : vector<16x1088xbf16> to vector<16x1088xf32>
    %c5 = arith.constant 5 : index
    %c0_31 = arith.constant 0 : index
    %c0_32 = arith.constant 0 : index
    %44 = vector.load %arg3[%c5, %c0_31, %c0_32] : memref<9x16x1xf32, #tpu.memory_space<vmem>>, vector<1x16x1xf32>
    %45 = vector.shape_cast %44 : vector<1x16x1xf32> to vector<16x1xf32>
    %46 = vector.broadcast %45 : vector<16x1xf32> to vector<16x1088xf32>
    %47 = arith.mulf %46, %43 : vector<16x1088xf32>
    %48 = arith.addf %40, %47 : vector<16x1088xf32>
    %c0_33 = arith.constant 0 : index
    %c0_34 = arith.constant 0 : index
    %c0_35 = arith.constant 0 : index
    %c68 = arith.constant 68 : index
    %49 = vector.load %arg2[%c0_33, %c0_34, %c0_35, %c68] : memref<1x1x16x1158xbf16, #tpu.memory_space<vmem>>, vector<1x1x16x1088xbf16>
    %50 = vector.shape_cast %49 : vector<1x1x16x1088xbf16> to vector<16x1088xbf16>
    %51 = arith.extf %50 : vector<16x1088xbf16> to vector<16x1088xf32>
    %c6 = arith.constant 6 : index
    %c0_36 = arith.constant 0 : index
    %c0_37 = arith.constant 0 : index
    %52 = vector.load %arg3[%c6, %c0_36, %c0_37] : memref<9x16x1xf32, #tpu.memory_space<vmem>>, vector<1x16x1xf32>
    %53 = vector.shape_cast %52 : vector<1x16x1xf32> to vector<16x1xf32>
    %54 = vector.broadcast %53 : vector<16x1xf32> to vector<16x1088xf32>
    %55 = arith.mulf %54, %51 : vector<16x1088xf32>
    %56 = arith.addf %48, %55 : vector<16x1088xf32>
    %c0_38 = arith.constant 0 : index
    %c0_39 = arith.constant 0 : index
    %c0_40 = arith.constant 0 : index
    %c69 = arith.constant 69 : index
    %57 = vector.load %arg2[%c0_38, %c0_39, %c0_40, %c69] : memref<1x1x16x1158xbf16, #tpu.memory_space<vmem>>, vector<1x1x16x1088xbf16>
    %58 = vector.shape_cast %57 : vector<1x1x16x1088xbf16> to vector<16x1088xbf16>
    %59 = arith.extf %58 : vector<16x1088xbf16> to vector<16x1088xf32>
    %c7 = arith.constant 7 : index
    %c0_41 = arith.constant 0 : index
    %c0_42 = arith.constant 0 : index
    %60 = vector.load %arg3[%c7, %c0_41, %c0_42] : memref<9x16x1xf32, #tpu.memory_space<vmem>>, vector<1x16x1xf32>
    %61 = vector.shape_cast %60 : vector<1x16x1xf32> to vector<16x1xf32>
    %62 = vector.broadcast %61 : vector<16x1xf32> to vector<16x1088xf32>
    %63 = arith.mulf %62, %59 : vector<16x1088xf32>
    %64 = arith.addf %56, %63 : vector<16x1088xf32>
    %c0_43 = arith.constant 0 : index
    %c0_44 = arith.constant 0 : index
    %c0_45 = arith.constant 0 : index
    %c70 = arith.constant 70 : index
    %65 = vector.load %arg2[%c0_43, %c0_44, %c0_45, %c70] : memref<1x1x16x1158xbf16, #tpu.memory_space<vmem>>, vector<1x1x16x1088xbf16>
    %66 = vector.shape_cast %65 : vector<1x1x16x1088xbf16> to vector<16x1088xbf16>
    %67 = arith.extf %66 : vector<16x1088xbf16> to vector<16x1088xf32>
    %c8 = arith.constant 8 : index
    %c0_46 = arith.constant 0 : index
    %c0_47 = arith.constant 0 : index
    %68 = vector.load %arg3[%c8, %c0_46, %c0_47] : memref<9x16x1xf32, #tpu.memory_space<vmem>>, vector<1x16x1xf32>
    %69 = vector.shape_cast %68 : vector<1x16x1xf32> to vector<16x1xf32>
    %70 = vector.broadcast %69 : vector<16x1xf32> to vector<16x1088xf32>
    %71 = arith.mulf %70, %67 : vector<16x1088xf32>
    %72 = arith.addf %64, %71 : vector<16x1088xf32>
    %cst_48 = arith.constant dense<0.000000e+00> : vector<1088xf32>
    %73 = vector.multi_reduction <add>, %72, %cst_48 [0] : vector<16x1088xf32> to vector<1088xf32>
    %74 = vector.shape_cast %73 : vector<1088xf32> to vector<1x1088xf32>
    %c0_49 = arith.constant 0 : index
    %c0_50 = arith.constant 0 : index
    %75 = vector.load %arg4[%c0_49, %c0_50] : memref<1x1xf32, #tpu.memory_space<vmem>>, vector<1x1xf32>
    %76 = vector.broadcast %75 : vector<1x1xf32> to vector<1x1088xf32>
    %77 = arith.addf %74, %76 : vector<1x1088xf32>
    %78 = arith.negf %77 : vector<1x1088xf32>
    %79 = math.exp %78 : vector<1x1088xf32>
    %cst_51 = arith.constant 1.000000e+00 : f32
    %80 = vector.broadcast %cst_51 : f32 to vector<1x1088xf32>
    %81 = arith.addf %80, %79 : vector<1x1088xf32>
    %82 = arith.divf %80, %81 : vector<1x1088xf32>
    %83 = vector.shape_cast %82 : vector<1x1088xf32> to vector<1x1x1088xf32>
    %c0_52 = arith.constant 0 : index
    %c0_53 = arith.constant 0 : index
    %c0_54 = arith.constant 0 : index
    %84 = vector.load %arg5[%c0_52, %c0_53, %c0_54] : memref<1x1x1088xf32, #tpu.memory_space<vmem>>, vector<1x1x1088xf32>
    tpu.vector_store %arg5[%c0_52, %c0_53, %c0_54], %83 {strides = array<i32>} : memref<1x1x1088xf32, #tpu.memory_space<vmem>>, vector<1x1x1088xf32>,
    return
  }
  func.func @transform_0(%arg0: i32, %arg1: i32) -> (i32, i32, i32, i32) {
    %c0_i32 = arith.constant 0 : i32
    %c0_i32_0 = arith.constant 0 : i32
    %c0_i32_1 = arith.constant 0 : i32
    return %arg0, %arg1, %c0_i32, %c0_i32_0 : i32, i32, i32, i32
  }
  func.func @transform_1(%arg0: i32, %arg1: i32) -> (i32, i32, i32) {
    %c0_i32 = arith.constant 0 : i32
    %c0_i32_0 = arith.constant 0 : i32
    %c0_i32_1 = arith.constant 0 : i32
    %c0_i32_2 = arith.constant 0 : i32
    return %c0_i32, %c0_i32_0, %c0_i32_1 : i32, i32, i32
  }
  func.func @transform_2(%arg0: i32, %arg1: i32) -> (i32, i32) {
    %c0_i32 = arith.constant 0 : i32
    %c0_i32_0 = arith.constant 0 : i32
    %c0_i32_1 = arith.constant 0 : i32
    return %c0_i32, %c0_i32_0 : i32, i32
  }
  func.func @transform_3(%arg0: i32, %arg1: i32) -> (i32, i32, i32) {
    %c0_i32 = arith.constant 0 : i32
    %c0_i32_0 = arith.constant 0 : i32
    return %arg0, %c0_i32, %arg1 : i32, i32, i32
  }
}

</mosaic_0001>

<bundles_post_ra>
// kernel: _lambda_.4
= control target key start
LH: loop header
LB: loop body
LE: loop exit
PB: predicated region body
PF: predicated region fallthrough
CT: control target
= control target key end

     0   :  { %10 = vsyncpa [#allocation3], 0  ;;  %s554_s0 = inlined_call_operand.vmem [shape: f32[100], index: 0, kind: input, shape index: {}]   ;;  %s555_s1 = inlined_call_operand.vmem [shape: f32[1,128], index: 1, kind: input, shape index: {}]   ;;  %s556_s2 = inlined_call_operand.vmem [shape: f32[16,16], index: 2, kind: input, shape index: {}]   ;;  %s557_s3 = inlined_call_operand.vmem [shape: f32[16,1], index: 3, kind: input, shape index: {}]   ;;  %s558_s4 = inlined_call_operand.vmem [shape: f32[16,1], index: 4, kind: input, shape index: {}]   ;;  %s559_s5 = inlined_call_operand.vmem [shape: f32[16,128], index: 5, kind: output, shape index: {}]  }
   0x1   :  { %s17_s20 = sshll.u32 %s554_s0, 4  ;;  %s18_s20 = int_to_ptr.vmem [resolvable:$true] %s17_s20 }
   0x2   :  { %s371_s21 = scalar_lea.vmem %s18_s20, 16  ;;  %p376_p1 = scmp.lt.s32.totalorder %s18_s20, %s18_s20 }
   0x3   :  { %p372_p0 = scmp.ne.s32.totalorder %s18_s20, %s371_s21  ;;  %p377_p2 = scmp.lt.s32.totalorder %s371_s21, %s371_s21 }
   0x5   :  { %p378_p3 = por %p377_p2, %p376_p1 }
   0x7   :  { %p379_p4 = pnand %p378_p3, %p372_p0 }
   0x9   :  { %382 = shalt.err (!%p379_p4)
}
   0xa   :  { %s425_s22 = smov [#allocation2]  }
   0xb   :  { %20 = dma.vmem_to_smem %s18_s20, 16, %s425_s22, [#allocation3]  }
   0xc   :  { %403 = dma.done.wait [#allocation3], 16  }
   0xd   :  { %404 = vsyncadd [#allocation3], 4294967280 }
   0xe   :  { %32 = sfence }
   0xf   :  { %v56_v0 = vld [vmem:[%s558_s4] sm:$0xff]  ;;  %v426_v2 = vmov 0   ;;  %v57_v3 = vld [vmem:[%s558_s4 + $0x8] sm:$0xff]  ;;  %v495_v16 = vmov 0.0   ;;  %v497_v17 = vmov 0.0   ;;  %v499_v18 = vmov 0.0  }
  0x10   :  { %v35_v1 = vld [vmem:[%s557_s3] sm:$0xff]  ;;  %370 = vset.pattern.permute.xlu1 %v426_v2  ;;  %369 = vset.pattern.permute.xlu0 %v426_v2  ;;  %v36_v4 = vld [vmem:[%s557_s3 + $0x8] sm:$0xff]  ;;  %v501_v19 = vmov 0.0  }
  0x11   :  { %60 = vperm.xlu1 %370, %v56_v0   ;;  %40 = vperm.xlu0 %369, %v35_v1   ;;  %v475_v5 = vld [vmem:[%s556_s2] sm:$0xff]  ;;  %v480_v6 = vld [vmem:[%s556_s2 + $0x8] sm:$0xff] }
  0x12   :  { %v291_v7 = vld [vmem:[%s555_s1] ss:$0 sm:$0xff]  ;;  %s503_s1 = smov 0  }
  0x15   :  { %65 = vperm.xlu1 %370, %v57_v3   ;;  %45 = vperm.xlu0 %369, %v36_v4  }
  0x90   :  { %v485_v8 = vpop.permute.xlu1 %60  ;;  %v41_v9 = vpop.permute.xlu0 %40 }
  0x91   :  { %v68_v10 = vsub.f32 0.0, %v485_v8  ;;  %v488_v11 = vmul.f32 %v291_v7, %v41_v9 }
  0x94   :  { %v490_v12 = vpop.permute.xlu1 %65  ;;  %v46_v13 = vpop.permute.xlu0 %45 }
  0x95   :  { %v69_v14 = vsub.f32 0.0, %v490_v12  ;;  %v493_v15 = vmul.f32 %v291_v7, %v46_v13 }
  0x96 LB: > { %vm82_vm0 = vcmask 130048   ;;  %v319_v20 = vpack.c.bf16 %v407_v16, %v411_v17  ;;  %s292_s2 = sshll.u32 %s423_s1, 1  ;;  %s75_s1 = sadd.s32 1, %s423_s1   ;;  %s423_s1 = sphi %s503_s1, %s75_s1   ;;  %v419_v19 = vphi %v501_v19, %v561_v19   ;;  %v415_v18 = vphi %v499_v18, %v560_v18   ;;  %v411_v17 = vphi %v497_v17, %v265_v17   ;;  %v407_v16 = vphi %v495_v16, %v266_v16  }
  0x97   : > { %309 = vmatprep.mubr.msk.f32.mxu0 %vm82_vm0, %v475_v5  ;;  %316 = vmatprep.mubr.msk.f32.mxu1 %vm82_vm0, %v475_v5  ;;  %s81_s3 = sld [smem:[#allocation2 + %s292_s2]]  ;;  %s177_s4 = sadd.s32 1, %s292_s2 }
  0x98   : > { %320 = vmatprep.subr.bf16.mxu0 %v319_v20  ;;  %s178_s11 = sld [smem:[#allocation2 + %s177_s4]]  ;;  %p72_p5 = scmp.ge.s32.totalorder %s75_s1, 50  }
  0x99   : > { %322 = vmatpush3.bf16.msra.mxu0 %v319_v20 }
  0x9c   : > { %310 = vmatmul.mubr.msk.f32.vlgmr.msra.gmra.mrb[0].mxu0 %vm82_vm0, %v480_v6 }
  0x9d   : > { %v172_v31 = vstv %s81_s3 }
  0x9e   : > { %v262_v48 = vstv %s178_s11 }
 0x16f   : > { %v311_v21 = vpop.f32.mrb[0].mxu0 }
 0x170   : > { %v161_v22 = vadd.f32 %v311_v21, %v493_v15  ;;  %v155_v23 = vpop.f32.mrb[1].mxu0 }
 0x171   : > { %v156_v24 = vadd.f32 %v155_v23, %v488_v11 }
 0x172   : > { %v165_v25 = vmax.f32 %v69_v14, %v161_v22 }
 0x173   : > { %v164_v26 = vmax.f32 %v68_v10, %v156_v24 }
 0x174   : > { %v167_v27 = vmin.f32 %v490_v12, %v165_v25 }
 0x175   : > { %v166_v28 = vmin.f32 %v485_v8, %v164_v26 }
 0x176   : > { %v169_v29 = vsub.f32 %v161_v22, %v167_v27 }
 0x177   : > { %v168_v30 = vsub.f32 %v156_v24, %v166_v28 }
 0x178   : > { %v171_v32 = vsub.f32 %v169_v29, %v415_v18 }
 0x179   : > { %v170_v33 = vsub.f32 %v168_v30, %v419_v19 }
 0x17a   : > { %v174_v34 = vmul.f32 %v172_v31, %v171_v32 }
 0x17b   : > { %v173_v35 = vmul.f32 %v172_v31, %v170_v33 }
 0x17c   : > { %v176_v36 = vadd.f32 %v174_v34, %v169_v29 }
 0x17d   : > { %v175_v37 = vadd.f32 %v173_v35, %v168_v30 }
 0x17f   : > { %v323_v38 = vpack.c.bf16 %v176_v36, %v175_v37 }
 0x181   : > { %324 = vmatprep.subr.bf16.mxu1 %v323_v38 }
 0x182   : > { %326 = vmatpush3.bf16.msra.mxu1 %v323_v38 }
 0x185   : > { %317 = vmatmul.mubr.msk.f32.vlgmr.msra.gmra.mrb[0].mxu1 %vm82_vm0, %v480_v6 }
 0x258   : > { %v318_v39 = vpop.f32.mrb[0].mxu1 }
 0x259   : > { %v251_v40 = vadd.f32 %v318_v39, %v493_v15  ;;  %v245_v41 = vpop.f32.mrb[1].mxu1 }
 0x25a   : > { %v246_v42 = vadd.f32 %v245_v41, %v488_v11 }
 0x25b   : > { %v255_v43 = vmax.f32 %v69_v14, %v251_v40 }
 0x25c   : > { %v254_v44 = vmax.f32 %v68_v10, %v246_v42 }
 0x25d   : > { %v257_v45 = vmin.f32 %v490_v12, %v255_v43 }
 0x25e   : > { %v256_v46 = vmin.f32 %v485_v8, %v254_v44 }
 0x25f   : > { %v259_v47 = vsub.f32 %v251_v40, %v257_v45  }
 0x260   : > { %v258_v49 = vsub.f32 %v246_v42, %v256_v46   ;;  %74 = sbr.rel (!%p72_p5) target bundleno = 150 (0x96), region = 51 }
 0x261   : > { %v261_v50 = vsub.f32 %v259_v47, %v169_v29  ;;  %v560_v18 = vmov %v259_v47  ;;  %268 = vst [vmem:[%s559_s5 + $0x8] sm:$0xff] (%p72_p5), %v259_v47 }
 0x262   : > { %v260_v51 = vsub.f32 %v258_v49, %v168_v30  ;;  %v561_v19 = vmov %v258_v49  ;;  %267 = vst [vmem:[%s559_s5] sm:$0xff] (%p72_p5), %v258_v49 }
 0x263   : > { %v264_v52 = vmul.f32 %v262_v48, %v261_v50 }
 0x264   : > { %v263_v53 = vmul.f32 %v262_v48, %v260_v51 }
 0x265   : > { %v266_v16 = vadd.f32 %v264_v52, %v259_v47  }
 0x266   : > { %v265_v17 = vadd.f32 %v263_v53, %v258_v49  }
 0x267   :  { %273 = vsyncpa [#allocation3], 1 }

// kernel: _lambda_.5
= control target key start
LH: loop header
LB: loop body
LE: loop exit
PB: predicated region body
PF: predicated region fallthrough
CT: control target
= control target key end

     0   :  { %s1923_s12 = smov 0   ;;  %s1925_s13 = smov 0   ;;  %s2152_s0 = inlined_call_operand.vmem [shape: bf16[2,1,16,102], index: 0, kind: input, shape index: {}]   ;;  %s2153_s1 = inlined_call_operand.vmem [shape: bf16[9,64,16], index: 1, kind: input, shape index: {}]   ;;  %s2154_s2 = inlined_call_operand.vmem [shape: f32[64,1], index: 2, kind: input, shape index: {}]   ;;  %s2155_s3 = inlined_call_operand.vmem [shape: bf16[2,64,80], index: 3, kind: output, shape index: {}]  }
   0x1   :  { %s1927_s14 = smov 0  }
   0x2 LB: > { %s25_s15 = sadd.s32 1, %s1888_s13  ;;  %p1435_p0 = scmp.ge.s32.totalorder %s1892_s14, 1  ;;  %s1892_s14 = sphi %s1927_s14, %s13_s14   ;;  %s1888_s13 = sphi %s1925_s13, %s2157_s13   ;;  %s1884_s12 = sphi %s1923_s12, %s2156_s12  }
   0x3   : > { %p27_p1 = scmp.ge.s32.totalorder %s25_s15, 2  ;;  %p157_p2 = scmp.lt.s32.totalorder %s1892_s14, 3 }
   0x5   : > { %s2159_s15 = smov (%p27_p1, %s25_s15), 0  ;;  %p158_p3 = pnand %p1435_p0, %p157_p2 }
   0x6   : > { %p188_p4 = scmp.lt.s32.totalorder (!%p158_p3), %s1884_s12, 1  ;;  %v1834_v0 = vld [vmem:[%s2153_s1 + $0x20] sm:$0xff] (!%p158_p3)   ;;  %vm253_vm0 = vcmask (!%p158_p3), 130048   ;;  %s1894_s24 = smov (!%p158_p3), 127   ;;  %v1249_v3 = vld [vmem:[%s2154_s2 + $0x8] sm:$0xff] (!%p158_p3)  ;;  %v1902_v5 = vmov (!%p158_p3), 0  }
   0x7   : > { %161 = sbr.rel (%p158_p3) target bundleno = 431 (0x1af), region = 32  ;;  %1644 = vmatprep.mubr.msk.bf16.mxu1 (!%p158_p3), %vm253_vm0, %v1834_v0  ;;  %v1836_v1 = vld [vmem:[%s2153_s1 + $0x80] sm:$0xff] (!%p158_p3)   ;;  %s1895_s25 = smov (!%p158_p3), 116   ;;  %1832 = vset.pattern.permute.xlu1 (!%p158_p3), %v1902_v5  ;;  %v1250_v6 = vld [vmem:[%s2154_s2 + $0x10] sm:$0xff] (!%p158_p3)  ;;  %v1251_v7 = vld [vmem:[%s2154_s2 + $0x18] sm:$0xff] (!%p158_p3)  ;;  %vm1336_vm1 = vcmask (!%p158_p3), 650240  }
   0x8   : > { %1684 = vmatprep.mubr.msk.bf16.mxu0 (!%p158_p3), %vm253_vm0, %v1836_v1  ;;  %s1896_s26 = smov (!%p158_p3), 117   ;;  %s1897_s27 = smov (!%p158_p3), 108   ;;  %v1248_v4 = vld [vmem:[%s2154_s2] sm:$0xff] (!%p158_p3)  ;;  %1831 = vset.pattern.permute.xlu0 (!%p158_p3), %v1902_v5  ;;  %v1253_v9 = vld [vmem:[%s2154_s2 + $0x28] sm:$0xff] (!%p158_p3)  ;;  %v1254_v10 = vld [vmem:[%s2154_s2 + $0x30] sm:$0xff] (!%p158_p3) }
   0x9   : > { %s1898_s28 = smov (!%p158_p3), 126   ;;  %s1899_s29 = smov (!%p158_p3), 107   ;;  %v1252_v8 = vld [vmem:[%s2154_s2 + $0x20] sm:$0xff] (!%p158_p3)  ;;  %v1255_v11 = vld [vmem:[%s2154_s2 + $0x38] sm:$0xff] (!%p158_p3)  ;;  %v1835_v13 = vld [vmem:[%s2153_s1 + $0x28] sm:$0xff] (!%p158_p3)  }
   0xa   : > { %s1900_s30 = smov (!%p158_p3), 118   ;;  %s1901_s4 = smov (!%p158_p3), 106   ;;  %v1838_v14 = vld [vmem:[%s2153_s1 + $0x30] sm:$0xff] (!%p158_p3)   ;;  %v1837_v17 = vld [vmem:[%s2153_s1 + $0x88] sm:$0xff] (!%p158_p3)   ;;  %v1841_v18 = vld [vmem:[%s2153_s1 + $0xa0] sm:$0xff] (!%p158_p3)  }
   0xb   : > { %v1839_v21 = vld [vmem:[%s2153_s1 + $0x38] sm:$0xff] (!%p158_p3)   ;;  %v1840_v22 = vld [vmem:[%s2153_s1] sm:$0xff] (!%p158_p3)   ;;  %v1842_v23 = vld [vmem:[%s2153_s1 + $0x8] sm:$0xff] (!%p158_p3)  }
   0xc   : > { %v1843_v24 = vld [vmem:[%s2153_s1 + $0xa8] sm:$0xff] (!%p158_p3)   ;;  %v1844_v25 = vld [vmem:[%s2153_s1 + $0x10] sm:$0xff] (!%p158_p3)   ;;  %v1846_v29 = vld [vmem:[%s2153_s1 + $0x18] sm:$0xff] (!%p158_p3)  }
   0xd   : > { %v1845_v26 = vld [vmem:[%s2153_s1 + $0xb0] sm:$0xff] (!%p158_p3)   ;;  %v1847_v30 = vld [vmem:[%s2153_s1 + $0xb8] sm:$0xff] (!%p158_p3)   ;;  %v1848_v31 = vld [vmem:[%s2153_s1 + $0x40] sm:$0xff] (!%p158_p3)  }
   0xe   : > { %s2161_s12 = smov (!%p188_p4, %s1884_s12), 1  ;;  %v1849_v32 = vld [vmem:[%s2153_s1 + $0xc0] sm:$0xff]   ;;  %v1850_v33 = vld [vmem:[%s2153_s1 + $0x48] sm:$0xff]   ;;  %v1852_v35 = vld [vmem:[%s2153_s1 + $0x50] sm:$0xff]  }
   0xf   : > { %s1587_s20 = sshll.u32 %s2161_s12, 3  ;;  %v1851_v34 = vld [vmem:[%s2153_s1 + $0xc8] sm:$0xff]   ;;  %v1853_v36 = vld [vmem:[%s2153_s1 + $0xd0] sm:$0xff]   ;;  %v1854_v38 = vld [vmem:[%s2153_s1 + $0x58] sm:$0xff]  }
  0x10   : > { %s196_s23 = scalar_lea.vmem %s2152_s0, %s1587_s20  ;;  %v1855_v39 = vld [vmem:[%s2153_s1 + $0xd8] sm:$0xff]   ;;  %v1856_v40 = vld [vmem:[%s2153_s1 + $0x60] sm:$0xff]   ;;  %v1858_v42 = vld [vmem:[%s2153_s1 + $0x68] sm:$0xff]  }
  0x11   : > { %v1833_v2 = vld [vmem:[%s196_s23] sm:$0xff]   ;;  %v1859_v43 = vld [vmem:[%s2153_s1 + $0xe8] sm:$0xff]   ;;  %v1860_v44 = vld [vmem:[%s2153_s1 + $0x70] sm:$0xff]  }
  0x12   : > { %250 = vrot.lane.b32.xlu0 %v1833_v2, %s1894_s24  ;;  %809 = vrot.lane.b32.xlu1 %v1833_v2, %s1895_s25  ;;  %v1857_v41 = vld [vmem:[%s2153_s1 + $0xe0] sm:$0xff]   ;;  %v1861_v45 = vld [vmem:[%s2153_s1 + $0xf0] sm:$0xff]   ;;  %s1588_s24 = sshll.u32 %s2161_s12, 5 }
  0x13   : > { %v1862_v46 = vld [vmem:[%s2153_s1 + $0x78] sm:$0xff]   ;;  %v1864_v48 = vld [vmem:[%s2153_s1 + $0x100] sm:$0xff]   ;;  %v1866_v49 = vld [vmem:[%s2153_s1 + $0x90] sm:$0xff]  }
  0x14   : > { %v1863_v47 = vld [vmem:[%s2153_s1 + $0xf8] sm:$0xff]   ;;  %v1865_v50 = vld [vmem:[%s2153_s1 + $0x108] sm:$0xff]   ;;  %v1868_v51 = vld [vmem:[%s2153_s1 + $0x110] sm:$0xff]  }
  0x15   : > { %v1867_v52 = vld [vmem:[%s2153_s1 + $0x98] sm:$0xff]  }
  0x16   : > { %692 = vrot.lane.b32.xlu0 %v1833_v2, %s1896_s26  ;;  %926 = vrot.lane.b32.xlu1 %v1833_v2, %s1897_s27  ;;  %v1869_v53 = vld [vmem:[%s2153_s1 + $0x118] sm:$0xff]   ;;  %s2125_s27 = scalar_lea.vmem %s2155_s3, %s1588_s24 }
  0x1a   : > { %458 = vrot.lane.b32.xlu0 %v1833_v2, %s1898_s28  ;;  %1043 = vrot.lane.b32.xlu1 %v1833_v2, %s1899_s29 }
  0x1e   : > { %575 = vrot.lane.b32.xlu0 %v1833_v2, %s1900_s30  ;;  %1160 = vrot.lane.b32.xlu1 %v1833_v2, %s1901_s4 }
  0x22   : > { %1263 = vperm.xlu1 %1832, %v1249_v3   ;;  %1258 = vperm.xlu0 %1831, %v1248_v4  }
  0x26   : > { %1268 = vperm.xlu1 %1832, %v1250_v6   ;;  %1273 = vperm.xlu0 %1831, %v1251_v7  }
  0x2a   : > { %1278 = vperm.xlu1 %1832, %v1252_v8   ;;  %1283 = vperm.xlu0 %1831, %v1253_v9  }
  0x2e   : > { %1288 = vperm.xlu1 %1832, %v1254_v10   ;;  %1293 = vperm.xlu0 %1831, %v1255_v11  }
  0x84   : > { %v251_v12 = vpop.permute.xlu0 %250  ;;  %v810_v16 = vpop.permute.xlu1 %809 }
  0x85   : > { %1642 = vmatprep.subr.bf16.mxu1 %v251_v12 }
  0x86   : > { %1643 = vmatpush3.bf16.msra.mxu1 %v251_v12 }
  0x87   : > { %1652 = vmatprep.subr.bf16.mxu1 %v1833_v2 }
  0x88   : > { %v1985_v15 = vpop.permute.xlu0 %692  ;;  %v927_v19 = vpop.permute.xlu1 %926 }
  0x89   : > { %1645 = vmatmul.mubr.msk.bf16.vlgmr.msra.gmra.mrb[0].mxu1 %vm253_vm0, %v1835_v13  ;;  %1682 = vmatprep.subr.bf16.mxu0 %v1985_v15 }
  0x8a   : > { %1683 = vmatpush3.bf16.msra.mxu0 %v1985_v15  ;;  %1653 = vmatpush3.bf16.msra.mxu1 %v1833_v2 }
  0x8b   : > { %1692 = vmatprep.subr.bf16.mxu0 %v810_v16  ;;  %1648 = vmatprep.mubr.msk.bf16.mxu1 %vm253_vm0, %v1838_v14 }
  0x8c   : > { %v459_v20 = vpop.permute.xlu0 %458  ;;  %v1044_v27 = vpop.permute.xlu1 %1043 }
  0x8d   : > { %1685 = vmatmul.mubr.msk.bf16.vlgmr.msra.gmra.mrb[0].mxu0 %vm253_vm0, %v1837_v17  ;;  %1662 = vmatprep.subr.bf16.mxu1 %v459_v20 }
  0x8e   : > { %1693 = vmatpush3.bf16.msra.mxu0 %v810_v16  ;;  %1694 = vmatprep.mubr.msk.bf16.mxu0 %vm253_vm0, %v1841_v18 }
  0x8f   : > { %1702 = vmatprep.subr.bf16.mxu0 %v927_v19 }
  0x90   : > { %v576_v28 = vpop.permute.xlu0 %575  ;;  %v1161_v37 = vpop.permute.xlu1 %1160 }
  0x91   : > { %1649 = vmatmul.mubr.msk.bf16.gmra.mrb[4].mxu1 %vm253_vm0, %v1839_v21 }
  0x92   : > { %1654 = vmatprep.mubr.msk.bf16.mxu1 %vm253_vm0, %v1840_v22 }
  0x99   : > { %1655 = vmatmul.mubr.msk.bf16.vlgmr.msra.gmra.mrb[0].mxu1 %vm253_vm0, %v1842_v23  ;;  %1695 = vmatmul.mubr.msk.bf16.vlgmr.msra.gmra.mrb[0].mxu0 %vm253_vm0, %v1843_v24 }
  0x9a   : > { %1703 = vmatpush3.bf16.msra.mxu0 %v927_v19  ;;  %1663 = vmatpush3.bf16.msra.mxu1 %v459_v20 }
  0x9b   : > { %1658 = vmatprep.mubr.msk.bf16.mxu1 %vm253_vm0, %v1844_v25  ;;  %1698 = vmatprep.mubr.msk.bf16.mxu0 %vm253_vm0, %v1845_v26 }
  0x9c   : > { %1672 = vmatprep.subr.bf16.mxu1 %v576_v28  ;;  %1712 = vmatprep.subr.bf16.mxu0 %v1044_v27 }
  0xa1   : > { %1659 = vmatmul.mubr.msk.bf16.gmra.mrb[4].mxu1 %vm253_vm0, %v1846_v29  ;;  %1699 = vmatmul.mubr.msk.bf16.gmra.mrb[4].mxu0 %vm253_vm0, %v1847_v30  ;;  %v1264_v58 = vpop.permute.xlu1 %1263  ;;  %v1259_v59 = vpop.permute.xlu0 %1258 }
  0xa2   : > { %1664 = vmatprep.mubr.msk.bf16.mxu1 %vm253_vm0, %v1848_v31  ;;  %1704 = vmatprep.mubr.msk.bf16.mxu0 %vm253_vm0, %v1849_v32 }
  0xa5   : > { %v1269_v60 = vpop.permute.xlu1 %1268  ;;  %v1274_v61 = vpop.permute.xlu0 %1273 }
  0xa9   : > { %1665 = vmatmul.mubr.msk.bf16.vlgmr.msra.gmra.mrb[0].mxu1 %vm253_vm0, %v1850_v33  ;;  %1705 = vmatmul.mubr.msk.bf16.vlgmr.msra.gmra.mrb[0].mxu0 %vm253_vm0, %v1851_v34  ;;  %v1279_v6 = vpop.permute.xlu1 %1278  ;;  %v1284_v13 = vpop.permute.xlu0 %1283 }
  0xaa   : > { %1673 = vmatpush3.bf16.msra.mxu1 %v576_v28  ;;  %1713 = vmatpush3.bf16.msra.mxu0 %v1044_v27 }
  0xab   : > { %1732 = vmatprep.subr.bf16.mxu1 %v1985_v15  ;;  %1668 = vmatprep.mubr.msk.bf16.mxu1 %vm253_vm0, %v1852_v35 }
  0xac   : > { %1708 = vmatprep.mubr.msk.bf16.mxu0 %vm253_vm0, %v1853_v36  ;;  %1722 = vmatprep.subr.bf16.mxu0 %v1161_v37 }
  0xad   : > { %v1289_v23 = vpop.permute.xlu1 %1288  ;;  %v1294_v29 = vpop.permute.xlu0 %1293 }
  0xb1   : > { %1669 = vmatmul.mubr.msk.bf16.gmra.mrb[4].mxu1 %vm253_vm0, %v1854_v38  ;;  %1709 = vmatmul.mubr.msk.bf16.gmra.mrb[4].mxu0 %vm253_vm0, %v1855_v39 }
  0xb2   : > { %1674 = vmatprep.mubr.msk.bf16.mxu1 %vm253_vm0, %v1856_v40  ;;  %1714 = vmatprep.mubr.msk.bf16.mxu0 %vm253_vm0, %v1857_v41 }
  0xb9   : > { %1675 = vmatmul.mubr.msk.bf16.vlgmr.msra.gmra.mrb[0].mxu1 %vm253_vm0, %v1858_v42  ;;  %1715 = vmatmul.mubr.msk.bf16.vlgmr.msra.gmra.mrb[0].mxu0 %vm253_vm0, %v1859_v43 }
  0xba   : > { %1733 = vmatpush3.bf16.msra.mxu1 %v1985_v15  ;;  %1723 = vmatpush3.bf16.msra.mxu0 %v1161_v37 }
  0xbb   : > { %1678 = vmatprep.mubr.msk.bf16.mxu1 %vm253_vm0, %v1860_v44  ;;  %1718 = vmatprep.mubr.msk.bf16.mxu0 %vm253_vm0, %v1861_v45 }
  0xc1   : > { %1679 = vmatmul.mubr.msk.bf16.gmra.mrb[4].mxu1 %vm253_vm0, %v1862_v46  ;;  %1719 = vmatmul.mubr.msk.bf16.gmra.mrb[4].mxu0 %vm253_vm0, %v1863_v47 }
  0xc2   : > { %1724 = vmatprep.mubr.msk.bf16.mxu0 %vm253_vm0, %v1864_v48  ;;  %1688 = vmatprep.mubr.msk.bf16.mxu1 %vm253_vm0, %v1866_v49 }
  0xc9   : > { %1725 = vmatmul.mubr.msk.bf16.vlgmr.msra.gmra.mrb[0].mxu0 %vm253_vm0, %v1865_v50 }
  0xca   : > { %1728 = vmatprep.mubr.msk.bf16.mxu0 %vm253_vm0, %v1868_v51 }
  0xcd   : > { %1689 = vmatmul.mubr.msk.bf16.vlgmr.msra.gmra.mrb[4].mxu1 %vm253_vm0, %v1867_v52 }
  0xd1   : > { %1729 = vmatmul.mubr.msk.bf16.gmra.mrb[4].mxu0 %vm253_vm0, %v1869_v53 }
 0x18c   : > { %v1676_v54 = vpop.f32.mrb[0].mxu1 }
 0x18d   : > { %v624_v55 = vpop.f32.mrb[1].mxu1 }
 0x18e   : > { %v1677_v56 = vpop.f32.mrb[2].mxu1 }
 0x18f   : > { %v627_v57 = vpop.f32.mrb[3].mxu1 }
 0x19c   : > { %v1726_v62 = vpop.f32.mrb[0].mxu0 }
 0x19d   : > { %v1734_v63 = vadd.f32 %v1726_v62, %v1676_v54  ;;  %v1209_v0 = vpop.f32.mrb[1].mxu0 }
 0x19e   : > { %v1735_v1 = vadd.f32 %v1209_v0, %v624_v55  ;;  %v1727_v2 = vpop.f32.mrb[2].mxu0 }
 0x19f   : > { %v1298_v3 = vadd.f32 %v1734_v63, %v1269_v60  ;;  %v1736_v4 = vadd.f32 %v1727_v2, %v1677_v56  ;;  %v1212_v5 = vpop.f32.mrb[3].mxu0 }
 0x1a0   : > { %v1296_v7 = vadd.f32 %v1735_v1, %v1259_v59  ;;  %v1737_v8 = vadd.f32 %v1212_v5, %v627_v57  ;;  %v1690_v9 = vpop.f32.mrb[4].mxu1 }
 0x1a1   : > { %v1591_v10 = vpack.c.bf16 %v1298_v3, %v1298_v3  ;;  %v1299_v11 = vadd.f32 %v1736_v4, %v1274_v61  ;;  %v757_v12 = vpop.f32.mrb[5].mxu1 }
 0x1a2   : > { %v1589_v14 = vpack.c.bf16 %v1296_v7, %v1296_v7  ;;  %v1297_v15 = vadd.f32 %v1737_v8, %v1264_v58  ;;  %v1691_v16 = vpop.f32.mrb[6].mxu1 }
 0x1a3   : > { %1339 = vst.msk [vmem:[%s2125_s27 + $0x8] sm:$0xf] %vm1336_vm1, %v1591_v10  ;;  %v1592_v17 = vpack.c.bf16 %v1299_v11, %v1299_v11  ;;  %v760_v18 = vpop.f32.mrb[7].mxu1 }
 0x1a4   : > { %1337 = vst.msk [vmem:[%s2125_s27] sm:$0xf] %vm1336_vm1, %v1589_v14  ;;  %v1590_v19 = vpack.c.bf16 %v1297_v15, %v1297_v15  ;;  %v1730_v20 = vpop.f32.mrb[4].mxu0 }
 0x1a5   : > { %1340 = vst.msk [vmem:[%s2125_s27 + $0xc] sm:$0xf] %vm1336_vm1, %v1592_v17  ;;  %v1738_v21 = vadd.f32 %v1730_v20, %v1690_v9  ;;  %v1225_v22 = vpop.f32.mrb[5].mxu0 }
 0x1a6   : > { %1338 = vst.msk [vmem:[%s2125_s27 + $0x4] sm:$0xf] %vm1336_vm1, %v1590_v19  ;;  %v1739_v24 = vadd.f32 %v1225_v22, %v757_v12  ;;  %v1731_v25 = vpop.f32.mrb[6].mxu0 }
 0x1a7   : > { %v1302_v26 = vadd.f32 %v1738_v21, %v1289_v23  ;;  %v1740_v27 = vadd.f32 %v1731_v25, %v1691_v16  ;;  %v1228_v28 = vpop.f32.mrb[7].mxu0 }
 0x1a8   : > { %v1300_v30 = vadd.f32 %v1739_v24, %v1279_v6  ;;  %v1741_v31 = vadd.f32 %v1228_v28, %v760_v18 }
 0x1a9   : > { %v1595_v32 = vpack.c.bf16 %v1302_v26, %v1302_v26  ;;  %v1303_v33 = vadd.f32 %v1740_v27, %v1294_v29 }
 0x1aa   : > { %v1593_v34 = vpack.c.bf16 %v1300_v30, %v1300_v30  ;;  %v1301_v35 = vadd.f32 %v1741_v31, %v1284_v13 }
 0x1ab   : > { %1343 = vst.msk [vmem:[%s2125_s27 + $0x18] sm:$0xf] %vm1336_vm1, %v1595_v32  ;;  %v1596_v36 = vpack.c.bf16 %v1303_v33, %v1303_v33 }
 0x1ac   : > { %1341 = vst.msk [vmem:[%s2125_s27 + $0x10] sm:$0xf] %vm1336_vm1, %v1593_v34  ;;  %v1594_v37 = vpack.c.bf16 %v1301_v35, %v1301_v35 }
 0x1ad   : > { %1344 = vst.msk [vmem:[%s2125_s27 + $0x1c] sm:$0xf] %vm1336_vm1, %v1596_v36 }
 0x1ae   : > { %1342 = vst.msk [vmem:[%s2125_s27 + $0x14] sm:$0xf] %vm1336_vm1, %v1594_v37 }
 0x1af PF: > { %s13_s14 = sadd.s32 1, %s1892_s14   ;;  %s2156_s12 = smov %s1888_s13 }
 0x1b0   : > { %p10_p5 = scmp.ge.s32.totalorder %s13_s14, 4   ;;  %s2157_s13 = smov %s2159_s15 }
 0x1b2   :  { %12 = sbr.rel (!%p10_p5) target bundleno = 2 (0x2), region = 70 }

// kernel: _lambda_.6
= control target key start
LH: loop header
LB: loop body
LE: loop exit
PB: predicated region body
PF: predicated region fallthrough
CT: control target
= control target key end

     0   :  { %s3038_s12 = smov 0   ;;  %s3040_s13 = smov 0   ;;  %s3506_s0 = inlined_call_operand.vmem [shape: bf16[2,1,16,326], index: 0, kind: input, shape index: {}]   ;;  %s3507_s1 = inlined_call_operand.vmem [shape: bf16[9,64,16], index: 1, kind: input, shape index: {}]   ;;  %s3508_s2 = inlined_call_operand.vmem [shape: f32[64,1], index: 2, kind: input, shape index: {}]   ;;  %s3509_s3 = inlined_call_operand.vmem [shape: bf16[2,64,288], index: 3, kind: output, shape index: {}]  }
   0x1   :  { %s3042_s14 = smov 0  }
   0x2 LB: > { %s25_s15 = sadd.s32 1, %s3003_s13  ;;  %p2367_p0 = scmp.ge.s32.totalorder %s3007_s14, 1  ;;  %s3007_s14 = sphi %s3042_s14, %s13_s14   ;;  %s3003_s13 = sphi %s3040_s13, %s3511_s13   ;;  %s2999_s12 = sphi %s3038_s12, %s3510_s12  }
   0x3   : > { %p27_p1 = scmp.ge.s32.totalorder %s25_s15, 2  ;;  %p157_p2 = scmp.lt.s32.totalorder %s3007_s14, 3 }
   0x5   : > { %s3513_s15 = smov (%p27_p1, %s25_s15), 0  ;;  %p158_p3 = pnand %p2367_p0, %p157_p2 }
   0x6   : > { %p189_p4 = scmp.lt.s32.totalorder (!%p158_p3), %s2999_s12, 1  ;;  %v3009_v0 = vmov (!%p158_p3), 0   ;;  %s3010_s20 = smov (!%p158_p3), 126   ;;  %vm634_vm0 = vcmask (!%p158_p3), 1031168   ;;  %vm269_vm1 = vcmask (!%p158_p3), 1039360   ;;  %v3107_v10 = vld [vmem:[%s3507_s1 + $0x40] sm:$0xff] (!%p158_p3)  }
   0x7   : > { %161 = sbr.rel (%p158_p3) target bundleno = 575 (0x23f), region = 32  ;;  %684 = vmatprep.mubr.bf16.mxu0 (!%p158_p3), %v3009_v0  ;;  %320 = vmatprep.mubr.bf16.mxu1 (!%p158_p3), %v3009_v0  ;;  %s3011_s21 = smov (!%p158_p3), 127   ;;  %vm275_vm2 = vcmask (!%p158_p3), 130048   ;;  %v2950_v15 = vld [vmem:[%s3507_s1 + $0x20] sm:$0xff] (!%p158_p3)   ;;  %vm849_vm3 = vcmask (!%p158_p3), 900096   ;;  %v3123_v19 = vld [vmem:[%s3507_s1 + $0x48] sm:$0xff] (!%p158_p3)  }
   0x8   : > { %2943 = vset.pattern.permute.xlu0 (!%p158_p3), %v3009_v0  ;;  %2944 = vset.pattern.permute.xlu1 (!%p158_p3), %v3009_v0  ;;  %s3012_s22 = smov (!%p158_p3), 110   ;;  %s3013_s23 = smov (!%p158_p3), 109   ;;  %v2952_v22 = vld [vmem:[%s3507_s1 + $0x28] sm:$0xff] (!%p158_p3)   ;;  %vm1064_vm4 = vcmask (!%p158_p3), 891904   ;;  %v3141_v26 = vld [vmem:[%s3507_s1 + $0x50] sm:$0xff] (!%p158_p3)   ;;  %v3154_v29 = vld [vmem:[%s3507_s1 + $0x60] sm:$0xff] (!%p158_p3)  }
   0x9   : > { %s3014_s24 = smov (!%p158_p3), 108   ;;  %s3015_s25 = smov (!%p158_p3), 92   ;;  %v2954_v27 = vld [vmem:[%s3507_s1 + $0x30] sm:$0xff] (!%p158_p3)   ;;  %vm1279_vm5 = vcmask (!%p158_p3), 883712   ;;  %v2956_v34 = vld [vmem:[%s3507_s1 + $0x38] sm:$0xff] (!%p158_p3)   ;;  %v3172_v35 = vld [vmem:[%s3507_s1 + $0x68] sm:$0xff] (!%p158_p3)  }
   0xa   : > { %s3016_s26 = smov (!%p158_p3), 91   ;;  %s3017_s27 = smov (!%p158_p3), 90   ;;  %v3182_v36 = vld [vmem:[%s3507_s1 + $0x70] sm:$0xff] (!%p158_p3)   ;;  %v3194_v37 = vld [vmem:[%s3507_s1 + $0x78] sm:$0xff] (!%p158_p3)   ;;  %v2960_v38 = vld [vmem:[%s3507_s1] sm:$0xff] (!%p158_p3)   ;;  %vm1494_vm6 = vcmask (!%p158_p3), 752640  }
   0xb   : > { %v3207_v40 = vld [vmem:[%s3507_s1 + $0x80] sm:$0xff] (!%p158_p3)   ;;  %v2962_v45 = vld [vmem:[%s3507_s1 + $0x8] sm:$0xff] (!%p158_p3)   ;;  %v2964_v47 = vld [vmem:[%s3507_s1 + $0x10] sm:$0xff] (!%p158_p3)   ;;  %vm1709_vm7 = vcmask (!%p158_p3), 744448   ;;  %vm1924_vm8 = vcmask (!%p158_p3), 736256   ;;  %vm2257_vm9 = vcmask (!%p158_p3), 257024  }
   0xc   : > { %v3227_v46 = vld [vmem:[%s3507_s1 + $0x88] sm:$0xff] (!%p158_p3)   ;;  %v3240_v48 = vld [vmem:[%s3507_s1 + $0x90] sm:$0xff] (!%p158_p3)   ;;  %v2966_v49 = vld [vmem:[%s3507_s1 + $0x18] sm:$0xff] (!%p158_p3)  }
   0xd   : > { %v3253_v50 = vld [vmem:[%s3507_s1 + $0x98] sm:$0xff] (!%p158_p3)   ;;  %v3263_v52 = vld [vmem:[%s3507_s1 + $0xa0] sm:$0xff] (!%p158_p3)   ;;  %v3280_v57 = vld [vmem:[%s3507_s1 + $0xa8] sm:$0xff] (!%p158_p3)  }
   0xe   : > { %s3515_s12 = smov (!%p189_p4, %s2999_s12), 1  ;;  %v2970_v58 = vld [vmem:[%s3507_s1 + $0x58] sm:$0xff]   ;;  %v3293_v59 = vld [vmem:[%s3507_s1 + $0xb0] sm:$0xff]   ;;  %v3320_v62 = vld [vmem:[%s3507_s1 + $0xc0] sm:$0xff]  }
   0xf   : > { %s2908_s16 = smul.u32 24, %s3515_s12  ;;  %v3307_v60 = vld [vmem:[%s3507_s1 + $0xb8] sm:$0xff]  }
  0x11   : > { %s197_s19 = scalar_lea.vmem %s3506_s0, %s2908_s16 }
  0x12   : > { %v3066_v1 = vld [vmem:[%s197_s19 + $0x4] ss:$12 sps:$4 sm:$0xff]   ;;  %v3068_v2 = vld [vmem:[%s197_s19] ss:$12 sps:$4 sm:$0xff]   ;;  %v3070_v3 = vld [vmem:[%s197_s19 + $0x8] ss:$12 sps:$4 sm:$0xff]  }
  0x13   : > { %630 = vrot.lane.b32.xlu0 %v3066_v1, %s3010_s20  ;;  %628 = vrot.lane.b32.xlu1 %v3068_v2, %s3010_s20 }
  0x17   : > { %632 = vrot.lane.b32.xlu0 %v3070_v3, %s3010_s20  ;;  %265 = vrot.lane.b32.xlu1 %v3066_v1, %s3011_s21 }
  0x1b   : > { %267 = vrot.lane.b32.xlu0 %v3070_v3, %s3011_s21  ;;  %263 = vrot.lane.b32.xlu1 %v3068_v2, %s3011_s21 }
  0x1f   : > { %845 = vrot.lane.b32.xlu0 %v3066_v1, %s3012_s22  ;;  %847 = vrot.lane.b32.xlu1 %v3070_v3, %s3012_s22 }
  0x23   : > { %843 = vrot.lane.b32.xlu0 %v3068_v2, %s3012_s22  ;;  %1060 = vrot.lane.b32.xlu1 %v3066_v1, %s3013_s23 }
  0x27   : > { %1062 = vrot.lane.b32.xlu0 %v3070_v3, %s3013_s23  ;;  %1058 = vrot.lane.b32.xlu1 %v3068_v2, %s3013_s23 }
  0x2b   : > { %1275 = vrot.lane.b32.xlu0 %v3066_v1, %s3014_s24  ;;  %1277 = vrot.lane.b32.xlu1 %v3070_v3, %s3014_s24 }
  0x2f   : > { %1273 = vrot.lane.b32.xlu0 %v3068_v2, %s3014_s24  ;;  %1490 = vrot.lane.b32.xlu1 %v3066_v1, %s3015_s25  ;;  %s2909_s24 = smul.u32 96, %s3515_s12 }
  0x33   : > { %1492 = vrot.lane.b32.xlu0 %v3070_v3, %s3015_s25  ;;  %1488 = vrot.lane.b32.xlu1 %v3068_v2, %s3015_s25 }
  0x37   : > { %1705 = vrot.lane.b32.xlu0 %v3066_v1, %s3016_s26  ;;  %1707 = vrot.lane.b32.xlu1 %v3070_v3, %s3016_s26 }
  0x3b   : > { %1703 = vrot.lane.b32.xlu0 %v3068_v2, %s3016_s26  ;;  %1920 = vrot.lane.b32.xlu1 %v3066_v1, %s3017_s27 }
  0x3f   : > { %1922 = vrot.lane.b32.xlu0 %v3070_v3, %s3017_s27  ;;  %1918 = vrot.lane.b32.xlu1 %v3068_v2, %s3017_s27  ;;  %s3467_s27 = scalar_lea.vmem %s3509_s3, %s2909_s24 }
  0x85   : > { %v631_v4 = vpop.permute.xlu0 %630  ;;  %v629_v5 = vpop.permute.xlu1 %628 }
  0x86   : > { %v3102_v9 = vsel %vm634_vm0, %v629_v5, %v631_v4  ;;  %v2975_v5 = vld [vmem:[%s3507_s1 + $0xd0] sm:$0xff]  }
  0x89   : > { %v3096_v6 = vpop.permute.xlu0 %632  ;;  %v266_v7 = vpop.permute.xlu1 %265 }
  0x8a   : > { %v3099_v8 = vsel %vm634_vm0, %v631_v4, %v3096_v6  ;;  %v2974_v4 = vld [vmem:[%s3507_s1 + $0xc8] sm:$0xff]  }
  0x8b   : > { %652 = vmatprep.subr.bf16.mxu0 %v3099_v8 }
  0x8c   : > { %653 = vmatpush1.bf16.msra.mxu0 %v3102_v9 }
  0x8d   : > { %v268_v11 = vpop.permute.xlu0 %267  ;;  %v264_v12 = vpop.permute.xlu1 %263 }
  0x8e   : > { %v271_v13 = vsel %vm269_vm1, %v266_v7, %v268_v11  ;;  %v270_v14 = vsel %vm269_vm1, %v264_v12, %v266_v7  ;;  %v2976_v7 = vld [vmem:[%s3507_s1 + $0xd8] sm:$0xff]  }
  0x8f   : > { %288 = vmatprep.subr.bf16.mxu1 %v271_v13  ;;  %2417 = vmatmul.mubr.msk.bf16.vlgmr.msra.gmra.mrb[0].mxu0 %vm275_vm2, %v3107_v10  ;;  %v2107_v13 = vld [vmem:[%s3508_s2 + $0x18] sm:$0xff] }
  0x90   : > { %289 = vmatpush1.bf16.msra.mxu1 %v270_v14  ;;  %694 = vmatprep.mubr.bf16.mxu0 %v3009_v0  ;;  %v2108_v14 = vld [vmem:[%s3508_s2 + $0x20] sm:$0xff] }
  0x91   : > { %v846_v16 = vpop.permute.xlu0 %845  ;;  %2624 = vmatprep.subr.bf16.mxu1 %v268_v11  ;;  %v3116_v17 = vpop.permute.xlu1 %847 }
  0x92   : > { %v851_v18 = vsel %vm849_vm3, %v846_v16, %v3116_v17 }
  0x93   : > { %2385 = vmatmul.mubr.msk.bf16.vlgmr.msra.gmra.mrb[0].mxu1 %vm275_vm2, %v2950_v15  ;;  %867 = vmatprep.subr.bf16.mxu0 %v851_v18  ;;  %v2111_v18 = vld [vmem:[%s3508_s2 + $0x38] sm:$0xff] }
  0x94   : > { %2625 = vmatpush3.bf16.msra.mxu1 %v268_v11  ;;  %330 = vmatprep.mubr.bf16.mxu1 %v3009_v0  ;;  %v2977_v11 = vld [vmem:[%s3507_s1 + $0xe0] sm:$0xff]  }
  0x95   : > { %v844_v20 = vpop.permute.xlu0 %843  ;;  %461 = vmatprep.subr.bf16.mxu1 %v3066_v1  ;;  %v1061_v23 = vpop.permute.xlu1 %1060 }
  0x96   : > { %v850_v21 = vsel %vm849_vm3, %v844_v20, %v846_v16  ;;  %v2978_v16 = vld [vmem:[%s3507_s1 + $0xe8] sm:$0xff]   ;;  %v2980_v20 = vld [vmem:[%s3507_s1 + $0xf8] sm:$0xff]  }
  0x97   : > { %2418 = vmatmul.mubr.msk.bf16.gmra.mrb[4].mxu0 %vm275_vm2, %v3123_v19 }
  0x98   : > { %868 = vmatpush1.bf16.msra.mxu0 %v850_v21  ;;  %704 = vmatprep.mubr.bf16.mxu0 %v3009_v0  ;;  %v2981_v21 = vld [vmem:[%s3507_s1 + $0x100] sm:$0xff]  }
  0x99   : > { %v3133_v24 = vpop.permute.xlu0 %1062  ;;  %v1059_v28 = vpop.permute.xlu1 %1058 }
  0x9a   : > { %v1066_v25 = vsel %vm1064_vm4, %v1061_v23, %v3133_v24  ;;  %v1065_v31 = vsel %vm1064_vm4, %v1059_v28, %v1061_v23  ;;  %v2983_v23 = vld [vmem:[%s3507_s1 + $0x110] sm:$0xff]  }
  0x9b   : > { %2386 = vmatmul.mubr.msk.bf16.gmra.mrb[4].mxu1 %vm275_vm2, %v2952_v22  ;;  %1082 = vmatprep.subr.bf16.mxu0 %v1066_v25 }
  0x9c   : > { %340 = vmatprep.mubr.bf16.mxu1 %v3009_v0 }
  0x9d   : > { %v3156_v30 = vpop.permute.xlu1 %1277  ;;  %v1276_v32 = vpop.permute.xlu0 %1275 }
  0x9e   : > { %v1281_v33 = vsel %vm1279_vm5, %v1276_v32, %v3156_v30 }
  0x9f   : > { %2419 = vmatmul.mubr.msk.bf16.gmra.mrb[8].mxu0 %vm275_vm2, %v3141_v26 }
  0xa0   : > { %899 = vmatprep.mubr.bf16.mxu0 %v3009_v0 }
  0xa1   : > { %v1274_v39 = vpop.permute.xlu0 %1273  ;;  %v1491_v43 = vpop.permute.xlu1 %1490 }
  0xa2   : > { %v1280_v42 = vsel %vm1279_vm5, %v1274_v39, %v1276_v32 }
  0xa3   : > { %2387 = vmatmul.mubr.msk.bf16.gmra.mrb[8].mxu1 %vm275_vm2, %v2954_v27 }
  0xa4   : > { %350 = vmatprep.mubr.bf16.mxu1 %v3009_v0 }
  0xa5   : > { %v3209_v41 = vpop.permute.xlu0 %1492  ;;  %v1489_v51 = vpop.permute.xlu1 %1488 }
  0xa6   : > { %v1496_v44 = vsel %vm1494_vm6, %v1491_v43, %v3209_v41  ;;  %v1495_v54 = vsel %vm1494_vm6, %v1489_v51, %v1491_v43 }
  0xa7   : > { %2437 = vmatmul.mubr.msk.bf16.vlgmr.msra.gmra.mrb[0].mxu0 %vm275_vm2, %v3154_v29 }
  0xa8   : > { %1083 = vmatpush1.bf16.msra.mxu0 %v1065_v31  ;;  %909 = vmatprep.mubr.bf16.mxu0 %v3009_v0 }
  0xa9   : > { %1297 = vmatprep.subr.bf16.mxu0 %v1281_v33  ;;  %v3265_v53 = vpop.permute.xlu1 %1707  ;;  %v1706_v55 = vpop.permute.xlu0 %1705 }
  0xaa   : > { %v1711_v56 = vsel %vm1709_vm7, %v1706_v55, %v3265_v53 }
  0xab   : > { %2388 = vmatmul.mubr.msk.bf16.gmra.mrb[12].mxu1 %vm275_vm2, %v2956_v34 }
  0xac   : > { %2626 = vmatprep.mubr.msk.bf16.mxu1 %vm275_vm2, %v2950_v15  ;;  %v2109_v15 = vld [vmem:[%s3508_s2 + $0x28] sm:$0xff] }
  0xad   : > { %v1704_v61 = vpop.permute.xlu0 %1703 }
  0xae   : > { %v1710_v1 = vsel %vm1709_vm7, %v1704_v61, %v1706_v55 }
  0xaf   : > { %2438 = vmatmul.mubr.msk.bf16.gmra.mrb[4].mxu0 %vm275_vm2, %v3172_v35 }
  0xb0   : > { %919 = vmatprep.mubr.bf16.mxu0 %v3009_v0 }
  0xb1   : > { %v3322_v63 = vpop.permute.xlu0 %1922 }
  0xb3   : > { %2627 = vmatmul.mubr.msk.bf16.vlgmr.msra.gmra.mrb[16].mxu1 %vm275_vm2, %v2952_v22  ;;  %v2982_v22 = vld [vmem:[%s3507_s1 + $0x108] sm:$0xff]  }
  0xb4   : > { %462 = vmatpush1.bf16.msra.mxu1 %v3068_v2  ;;  %2630 = vmatprep.mubr.msk.bf16.mxu1 %vm275_vm2, %v2954_v27  ;;  %v1921_v2 = vpop.permute.xlu1 %1920 }
  0xb5   : > { %2634 = vmatprep.subr.bf16.mxu1 %v3070_v3 }
  0xb7   : > { %2439 = vmatmul.mubr.msk.bf16.gmra.mrb[8].mxu0 %vm275_vm2, %v3182_v36 }
  0xb8   : > { %929 = vmatprep.mubr.bf16.mxu0 %v3009_v0 }
  0xbb   : > { %2631 = vmatmul.mubr.msk.bf16.gmra.mrb[20].mxu1 %vm275_vm2, %v2956_v34 }
  0xbc   : > { %493 = vmatprep.mubr.bf16.mxu1 %v3009_v0 }
  0xbf   : > { %2440 = vmatmul.mubr.msk.bf16.gmra.mrb[12].mxu0 %vm275_vm2, %v3194_v37 }
  0xc0   : > { %1114 = vmatprep.mubr.bf16.mxu0 %v3009_v0 }
  0xc3   : > { %2397 = vmatmul.mubr.msk.bf16.vlgmr.msra.gmra.mrb[0].mxu1 %vm275_vm2, %v2960_v38 }
  0xc4   : > { %2635 = vmatpush3.bf16.msra.mxu1 %v3070_v3  ;;  %503 = vmatprep.mubr.bf16.mxu1 %v3009_v0  ;;  %v1926_v3 = vsel %vm1924_vm8, %v1921_v2, %v3322_v63 }
  0xc5   : > { %2714 = vmatprep.subr.bf16.mxu1 %v3099_v8  ;;  %v2105_v8 = vld [vmem:[%s3508_s2 + $0x8] sm:$0xff] }
  0xc6   : > { %2119 = vperm.xlu1 %2944, %v2105_v8  }
  0xc7   : > { %2457 = vmatmul.mubr.msk.bf16.vlgmr.msra.gmra.mrb[0].mxu0 %vm275_vm2, %v3207_v40 }
  0xc8   : > { %1298 = vmatpush1.bf16.msra.mxu0 %v1280_v42  ;;  %1124 = vmatprep.mubr.bf16.mxu0 %v3009_v0 }
  0xc9   : > { %1512 = vmatprep.subr.bf16.mxu0 %v1496_v44 }
  0xcb   : > { %2398 = vmatmul.mubr.msk.bf16.gmra.mrb[4].mxu1 %vm275_vm2, %v2962_v45 }
  0xcc   : > { %513 = vmatprep.mubr.bf16.mxu1 %v3009_v0 }
  0xcf   : > { %2458 = vmatmul.mubr.msk.bf16.gmra.mrb[4].mxu0 %vm275_vm2, %v3227_v46 }
  0xd0   : > { %1134 = vmatprep.mubr.bf16.mxu0 %v3009_v0 }
  0xd3   : > { %2399 = vmatmul.mubr.msk.bf16.gmra.mrb[8].mxu1 %vm275_vm2, %v2964_v47 }
  0xd4   : > { %523 = vmatprep.mubr.bf16.mxu1 %v3009_v0 }
  0xd7   : > { %2459 = vmatmul.mubr.msk.bf16.gmra.mrb[8].mxu0 %vm275_vm2, %v3240_v48 }
  0xd8   : > { %1144 = vmatprep.mubr.bf16.mxu0 %v3009_v0 }
  0xdb   : > { %2400 = vmatmul.mubr.msk.bf16.gmra.mrb[12].mxu1 %vm275_vm2, %v2966_v49 }
  0xdc   : > { %2636 = vmatprep.mubr.msk.bf16.mxu1 %vm275_vm2, %v2960_v38 }
  0xdf   : > { %2460 = vmatmul.mubr.msk.bf16.gmra.mrb[12].mxu0 %vm275_vm2, %v3253_v50 }
  0xe0   : > { %1329 = vmatprep.mubr.bf16.mxu0 %v3009_v0 }
  0xe3   : > { %2637 = vmatmul.mubr.msk.bf16.vlgmr.msra.gmra.mrb[16].mxu1 %vm275_vm2, %v2962_v45 }
  0xe4   : > { %2715 = vmatpush1.bf16.msra.mxu1 %v3102_v9  ;;  %2640 = vmatprep.mubr.msk.bf16.mxu1 %vm275_vm2, %v2964_v47  ;;  %v2106_v9 = vld [vmem:[%s3508_s2 + $0x10] sm:$0xff] }
  0xe5   : > { %2644 = vmatprep.subr.bf16.mxu1 %v3096_v6  ;;  %2124 = vperm.xlu1 %2944, %v2106_v9  }
  0xe7   : > { %2477 = vmatmul.mubr.msk.bf16.vlgmr.msra.gmra.mrb[0].mxu0 %vm275_vm2, %v3263_v52 }
  0xe8   : > { %1513 = vmatpush1.bf16.msra.mxu0 %v1495_v54  ;;  %1339 = vmatprep.mubr.bf16.mxu0 %v3009_v0 }
  0xe9   : > { %1727 = vmatprep.subr.bf16.mxu0 %v1711_v56  ;;  %2134 = vperm.xlu1 %2944, %v2108_v14  }
  0xeb   : > { %2641 = vmatmul.mubr.msk.bf16.gmra.mrb[20].mxu1 %vm275_vm2, %v2966_v49 }
  0xec   : > { %714 = vmatprep.mubr.bf16.mxu1 %v3009_v0 }
  0xef   : > { %2478 = vmatmul.mubr.msk.bf16.gmra.mrb[4].mxu0 %vm275_vm2, %v3280_v57 }
  0xf0   : > { %1349 = vmatprep.mubr.bf16.mxu0 %v3009_v0 }
  0xf3   : > { %2420 = vmatmul.mubr.msk.bf16.vlgmr.msra.gmra.mrb[12].mxu1 %vm275_vm2, %v2970_v58 }
  0xf4   : > { %2645 = vmatpush3.bf16.msra.mxu1 %v3096_v6  ;;  %2646 = vmatprep.mubr.msk.bf16.mxu1 %vm275_vm2, %v3107_v10  ;;  %v2104_v6 = vld [vmem:[%s3508_s2] sm:$0xff]  ;;  %v1919_v10 = vpop.permute.xlu1 %1918 }
  0xf5   : > { %2654 = vmatprep.subr.bf16.mxu1 %v3116_v17  ;;  %2114 = vperm.xlu0 %2943, %v2104_v6   ;;  %v1925_v12 = vsel %vm1924_vm8, %v1919_v10, %v1921_v2 }
  0xf7   : > { %2479 = vmatmul.mubr.msk.bf16.gmra.mrb[8].mxu0 %vm275_vm2, %v3293_v59 }
  0xf8   : > { %1359 = vmatprep.mubr.bf16.mxu0 %v3009_v0 }
  0xf9   : > { %2129 = vperm.xlu0 %2943, %v2107_v13  }
  0xfb   : > { %2647 = vmatmul.mubr.msk.bf16.vlgmr.msra.gmra.mrb[16].mxu1 %vm275_vm2, %v3123_v19  ;;  %v2979_v19 = vld [vmem:[%s3507_s1 + $0xf0] sm:$0xff]  }
  0xfc   : > { %2655 = vmatpush3.bf16.msra.mxu1 %v3116_v17  ;;  %2650 = vmatprep.mubr.msk.bf16.mxu1 %vm275_vm2, %v3141_v26  ;;  %v2110_v17 = vld [vmem:[%s3508_s2 + $0x30] sm:$0xff] }
  0xfd   : > { %2664 = vmatprep.subr.bf16.mxu1 %v3133_v24  ;;  %2139 = vperm.xlu0 %2943, %v2109_v15  }
  0xfe   : > { %2144 = vperm.xlu1 %2944, %v2110_v17  }
  0xff   : > { %2480 = vmatmul.mubr.msk.bf16.gmra.mrb[12].mxu0 %vm275_vm2, %v3307_v60 }
 0x100   : > { %1544 = vmatprep.mubr.bf16.mxu0 %v3009_v0 }
 0x101   : > { %2149 = vperm.xlu0 %2943, %v2111_v18  }
 0x103   : > { %2651 = vmatmul.mubr.msk.bf16.gmra.mrb[20].mxu1 %vm275_vm2, %v2970_v58 }
 0x104   : > { %2656 = vmatprep.mubr.msk.bf16.mxu1 %vm275_vm2, %v3154_v29 }
 0x107   : > { %2497 = vmatmul.mubr.msk.bf16.vlgmr.msra.gmra.mrb[0].mxu0 %vm275_vm2, %v3320_v62 }
 0x108   : > { %1728 = vmatpush1.bf16.msra.mxu0 %v1710_v1  ;;  %1554 = vmatprep.mubr.bf16.mxu0 %v3009_v0 }
 0x109   : > { %1942 = vmatprep.subr.bf16.mxu0 %v1926_v3 }
 0x10b   : > { %2657 = vmatmul.mubr.msk.bf16.vlgmr.msra.gmra.mrb[16].mxu1 %vm275_vm2, %v3172_v35 }
 0x10c   : > { %2665 = vmatpush3.bf16.msra.mxu1 %v3133_v24  ;;  %2660 = vmatprep.mubr.msk.bf16.mxu1 %vm275_vm2, %v3182_v36  ;;  %v2984_v24 = vld [vmem:[%s3507_s1 + $0x118] sm:$0xff]  }
 0x10d   : > { %2674 = vmatprep.subr.bf16.mxu1 %v3156_v30 }
 0x10f   : > { %2498 = vmatmul.mubr.msk.bf16.gmra.mrb[4].mxu0 %vm275_vm2, %v2974_v4 }
 0x110   : > { %1564 = vmatprep.mubr.bf16.mxu0 %v3009_v0 }
 0x113   : > { %2661 = vmatmul.mubr.msk.bf16.gmra.mrb[20].mxu1 %vm275_vm2, %v3194_v37 }
 0x114   : > { %2666 = vmatprep.mubr.msk.bf16.mxu1 %vm275_vm2, %v3207_v40 }
 0x117   : > { %2499 = vmatmul.mubr.msk.bf16.gmra.mrb[8].mxu0 %vm275_vm2, %v2975_v5 }
 0x118   : > { %1574 = vmatprep.mubr.bf16.mxu0 %v3009_v0 }
 0x11b   : > { %2667 = vmatmul.mubr.msk.bf16.vlgmr.msra.gmra.mrb[16].mxu1 %vm275_vm2, %v3227_v46 }
 0x11c   : > { %2675 = vmatpush3.bf16.msra.mxu1 %v3156_v30  ;;  %2670 = vmatprep.mubr.msk.bf16.mxu1 %vm275_vm2, %v3240_v48 }
 0x11d   : > { %2684 = vmatprep.subr.bf16.mxu1 %v3209_v41 }
 0x11f   : > { %2500 = vmatmul.mubr.msk.bf16.gmra.mrb[12].mxu0 %vm275_vm2, %v2976_v7 }
 0x120   : > { %1759 = vmatprep.mubr.bf16.mxu0 %v3009_v0 }
 0x123   : > { %2671 = vmatmul.mubr.msk.bf16.gmra.mrb[20].mxu1 %vm275_vm2, %v3253_v50 }
 0x124   : > { %2676 = vmatprep.mubr.msk.bf16.mxu1 %vm275_vm2, %v3263_v52 }
 0x127   : > { %2517 = vmatmul.mubr.msk.bf16.vlgmr.msra.gmra.mrb[0].mxu0 %vm275_vm2, %v2977_v11 }
 0x128   : > { %1943 = vmatpush1.bf16.msra.mxu0 %v1925_v12  ;;  %1769 = vmatprep.mubr.bf16.mxu0 %v3009_v0 }
 0x12b   : > { %2677 = vmatmul.mubr.msk.bf16.vlgmr.msra.gmra.mrb[16].mxu1 %vm275_vm2, %v3280_v57 }
 0x12c   : > { %2685 = vmatpush3.bf16.msra.mxu1 %v3209_v41  ;;  %2680 = vmatprep.mubr.msk.bf16.mxu1 %vm275_vm2, %v3293_v59 }
 0x12d   : > { %2694 = vmatprep.subr.bf16.mxu1 %v3265_v53 }
 0x12f   : > { %2518 = vmatmul.mubr.msk.bf16.gmra.mrb[4].mxu0 %vm275_vm2, %v2978_v16 }
 0x130   : > { %1779 = vmatprep.mubr.bf16.mxu0 %v3009_v0 }
 0x133   : > { %2681 = vmatmul.mubr.msk.bf16.gmra.mrb[20].mxu1 %vm275_vm2, %v3307_v60 }
 0x134   : > { %2686 = vmatprep.mubr.msk.bf16.mxu1 %vm275_vm2, %v3320_v62 }
 0x137   : > { %2519 = vmatmul.mubr.msk.bf16.gmra.mrb[8].mxu0 %vm275_vm2, %v2979_v19 }
 0x138   : > { %1789 = vmatprep.mubr.bf16.mxu0 %v3009_v0 }
 0x13b   : > { %2687 = vmatmul.mubr.msk.bf16.vlgmr.msra.gmra.mrb[16].mxu1 %vm275_vm2, %v2974_v4 }
 0x13c   : > { %2695 = vmatpush3.bf16.msra.mxu1 %v3265_v53  ;;  %2690 = vmatprep.mubr.msk.bf16.mxu1 %vm275_vm2, %v2975_v5 }
 0x13d   : > { %2704 = vmatprep.subr.bf16.mxu1 %v3322_v63 }
 0x13f   : > { %2520 = vmatmul.mubr.msk.bf16.gmra.mrb[12].mxu0 %vm275_vm2, %v2980_v20 }
 0x140   : > { %1974 = vmatprep.mubr.bf16.mxu0 %v3009_v0 }
 0x143   : > { %2691 = vmatmul.mubr.msk.bf16.gmra.mrb[20].mxu1 %vm275_vm2, %v2976_v7 }
 0x144   : > { %2696 = vmatprep.mubr.msk.bf16.mxu1 %vm275_vm2, %v2977_v11 }
 0x145   : > { %v2120_v46 = vpop.permute.xlu1 %2119 }
 0x147   : > { %2537 = vmatmul.mubr.msk.bf16.vlgmr.msra.gmra.mrb[0].mxu0 %vm275_vm2, %v2981_v21 }
 0x148   : > { %1984 = vmatprep.mubr.bf16.mxu0 %v3009_v0 }
 0x14b   : > { %2697 = vmatmul.mubr.msk.bf16.vlgmr.msra.gmra.mrb[16].mxu1 %vm275_vm2, %v2978_v16 }
 0x14c   : > { %2705 = vmatpush3.bf16.msra.mxu1 %v3322_v63  ;;  %2700 = vmatprep.mubr.msk.bf16.mxu1 %vm275_vm2, %v2979_v19 }
 0x14f   : > { %2538 = vmatmul.mubr.msk.bf16.gmra.mrb[4].mxu0 %vm275_vm2, %v2982_v22 }
 0x150   : > { %1994 = vmatprep.mubr.bf16.mxu0 %v3009_v0 }
 0x153   : > { %2701 = vmatmul.mubr.msk.bf16.gmra.mrb[20].mxu1 %vm275_vm2, %v2980_v20 }
 0x154   : > { %2706 = vmatprep.mubr.msk.bf16.mxu1 %vm275_vm2, %v2981_v21 }
 0x157   : > { %2539 = vmatmul.mubr.msk.bf16.gmra.mrb[8].mxu0 %vm275_vm2, %v2983_v23 }
 0x158   : > { %2004 = vmatprep.mubr.bf16.mxu0 %v3009_v0 }
 0x15b   : > { %2707 = vmatmul.mubr.msk.bf16.vlgmr.msra.gmra.mrb[16].mxu1 %vm275_vm2, %v2982_v22 }
 0x15c   : > { %2710 = vmatprep.mubr.msk.bf16.mxu1 %vm275_vm2, %v2983_v23 }
 0x15f   : > { %2540 = vmatmul.mubr.msk.bf16.gmra.mrb[12].mxu0 %vm275_vm2, %v2984_v24 }
 0x163   : > { %2711 = vmatmul.mubr.msk.bf16.gmra.mrb[20].mxu1 %vm275_vm2, %v2984_v24 }
 0x164   : > { %v2125_v57 = vpop.permute.xlu1 %2124 }
 0x168   : > { %v2135_v14 = vpop.permute.xlu1 %2134 }
 0x174   : > { %v2115_v41 = vpop.permute.xlu0 %2114 }
 0x178   : > { %v2130_v62 = vpop.permute.xlu0 %2129 }
 0x17c   : > { %v2140_v20 = vpop.permute.xlu0 %2139 }
 0x196   : > { %v495_v25 = vpop.f32.mrb[0].mxu1 }
 0x197   : > { %v497_v26 = vpop.f32.mrb[1].mxu1 }
 0x198   : > { %v499_v27 = vpop.f32.mrb[2].mxu1 }
 0x199   : > { %v501_v28 = vpop.f32.mrb[3].mxu1 }
 0x19e   : > { %v505_v29 = vpop.f32.mrb[4].mxu1 }
 0x19f   : > { %v507_v30 = vpop.f32.mrb[5].mxu1 }
 0x1a0   : > { %v509_v0 = vpop.f32.mrb[6].mxu1 }
 0x1a1   : > { %v511_v31 = vpop.f32.mrb[7].mxu1 }
 0x1a6   : > { %v515_v32 = vpop.f32.mrb[8].mxu1 }
 0x1a7   : > { %v517_v33 = vpop.f32.mrb[9].mxu1 }
 0x1a8   : > { %v519_v34 = vpop.f32.mrb[10].mxu1 }
 0x1a9   : > { %v521_v35 = vpop.f32.mrb[11].mxu1 }
 0x1c6   : > { %v3455_v36 = vpop.f32.mrb[12].mxu1 }
 0x1c7   : > { %v3457_v37 = vpop.f32.mrb[13].mxu1 }
 0x1c8   : > { %v3459_v38 = vpop.f32.mrb[14].mxu1 }
 0x1c9   : > { %v3461_v39 = vpop.f32.mrb[15].mxu1 }
 0x21a   : > { %v1976_v40 = vpop.f32.mrb[0].mxu0 }
 0x21b   : > { %v2716_v42 = vadd.f32 %v1976_v40, %v495_v25  ;;  %v1978_v43 = vpop.f32.mrb[1].mxu0 }
 0x21c   : > { %v2717_v44 = vadd.f32 %v1978_v43, %v497_v26  ;;  %v1980_v45 = vpop.f32.mrb[2].mxu0 }
 0x21d   : > { %v2152_v47 = vadd.f32 %v2716_v42, %v2115_v41  ;;  %v2718_v48 = vadd.f32 %v1980_v45, %v499_v27  ;;  %v1982_v49 = vpop.f32.mrb[3].mxu0 }
 0x21e   : > { %v2153_v50 = vadd.f32 %v2717_v44, %v2115_v41  ;;  %v2719_v51 = vadd.f32 %v1982_v49, %v501_v28  ;;  %v2145_v44 = vpop.permute.xlu1 %2144  ;;  %v2150_v49 = vpop.permute.xlu0 %2149 }
 0x21f   : > { %v2155_v52 = vadd.f32 %v2718_v48, %v2120_v46 }
 0x220   : > { %v2563_v53 = vpack.c.bf16 %v2153_v50, %v2152_v47  ;;  %v2156_v54 = vadd.f32 %v2719_v51, %v2120_v46 }
 0x222   : > { %2256 = vst [vmem:[%s3467_s27] sm:$0xff] %v2563_v53  ;;  %v2565_v55 = vpack.c.bf16 %v2156_v54, %v2155_v52  ;;  %v1986_v56 = vpop.f32.mrb[4].mxu0 }
 0x223   : > { %v2720_v58 = vadd.f32 %v1986_v56, %v505_v29  ;;  %v1988_v59 = vpop.f32.mrb[5].mxu0 }
 0x224   : > { %2259 = vst [vmem:[%s3467_s27 + $0xc] sm:$0xff] %v2565_v55  ;;  %v2721_v60 = vadd.f32 %v1988_v59, %v507_v30  ;;  %v1990_v61 = vpop.f32.mrb[6].mxu0 }
 0x225   : > { %v2722_v63 = vadd.f32 %v1990_v61, %v509_v0  ;;  %v2158_v1 = vadd.f32 %v2720_v58, %v2125_v57  ;;  %v1992_v2 = vpop.f32.mrb[7].mxu0 }
 0x226   : > { %v2159_v3 = vadd.f32 %v2721_v60, %v2125_v57  ;;  %v2723_v4 = vadd.f32 %v1992_v2, %v511_v31 }
 0x227   : > { %v2161_v5 = vadd.f32 %v2722_v63, %v2130_v62 }
 0x228   : > { %v2567_v6 = vpack.c.bf16 %v2159_v3, %v2158_v1  ;;  %v2162_v7 = vadd.f32 %v2723_v4, %v2130_v62 }
 0x22a   : > { %2261 = vst [vmem:[%s3467_s27 + $0x18] sm:$0xff] %v2567_v6  ;;  %v2569_v8 = vpack.c.bf16 %v2162_v7, %v2161_v5  ;;  %v1996_v9 = vpop.f32.mrb[8].mxu0 }
 0x22b   : > { %v2724_v10 = vadd.f32 %v1996_v9, %v515_v32  ;;  %v1998_v11 = vpop.f32.mrb[9].mxu0 }
 0x22c   : > { %2263 = vst [vmem:[%s3467_s27 + $0x24] sm:$0xff] %v2569_v8  ;;  %v2725_v12 = vadd.f32 %v1998_v11, %v517_v33  ;;  %v2000_v13 = vpop.f32.mrb[10].mxu0 }
 0x22d   : > { %v2726_v15 = vadd.f32 %v2000_v13, %v519_v34  ;;  %v2164_v16 = vadd.f32 %v2724_v10, %v2135_v14  ;;  %v2002_v17 = vpop.f32.mrb[11].mxu0 }
 0x22e   : > { %v2165_v18 = vadd.f32 %v2725_v12, %v2135_v14  ;;  %v2727_v19 = vadd.f32 %v2002_v17, %v521_v35  ;;  %v2708_v21 = vpop.f32.mrb[16].mxu1 }
 0x22f   : > { %v2167_v22 = vadd.f32 %v2726_v15, %v2140_v20  ;;  %v2160_v23 = vadd.f32 %v2708_v21, %v2125_v57  ;;  %v2049_v24 = vpop.f32.mrb[17].mxu1 }
 0x230   : > { %v2571_v25 = vpack.c.bf16 %v2165_v18, %v2164_v16  ;;  %v2168_v26 = vadd.f32 %v2727_v19, %v2140_v20  ;;  %v2154_v27 = vadd.f32 %v2115_v41, %v2049_v24  ;;  %v2709_v28 = vpop.f32.mrb[18].mxu1 }
 0x231   : > { %v2568_v29 = vpack.c.bf16 %v2160_v23, %v2160_v23  ;;  %v2163_v30 = vadd.f32 %v2709_v28, %v2130_v62  ;;  %v2052_v0 = vpop.f32.mrb[19].mxu1 }
 0x232   : > { %2265 = vst [vmem:[%s3467_s27 + $0x30] sm:$0xff] %v2571_v25  ;;  %v2573_v31 = vpack.c.bf16 %v2168_v26, %v2167_v22  ;;  %v2564_v32 = vpack.c.bf16 %v2154_v27, %v2154_v27  ;;  %v2157_v33 = vadd.f32 %v2120_v46, %v2052_v0  ;;  %v2006_v34 = vpop.f32.mrb[12].mxu0 }
 0x233   : > { %2262 = vst.msk [vmem:[%s3467_s27 + $0x20] sm:$0xf] %vm2257_vm9, %v2568_v29  ;;  %v2570_v35 = vpack.c.bf16 %v2163_v30, %v2163_v30  ;;  %v2728_v40 = vadd.f32 %v2006_v34, %v3455_v36  ;;  %v2008_v42 = vpop.f32.mrb[13].mxu0 }
 0x234   : > { %2267 = vst [vmem:[%s3467_s27 + $0x3c] sm:$0xff] %v2573_v31  ;;  %2258 = vst.msk [vmem:[%s3467_s27 + $0x8] sm:$0xf] %vm2257_vm9, %v2564_v32  ;;  %v2566_v41 = vpack.c.bf16 %v2157_v33, %v2157_v33  ;;  %v2729_v43 = vadd.f32 %v2008_v42, %v3457_v37  ;;  %v2010_v45 = vpop.f32.mrb[14].mxu0 }
 0x235   : > { %2264 = vst.msk [vmem:[%s3467_s27 + $0x2c] sm:$0xf] %vm2257_vm9, %v2570_v35  ;;  %v2170_v47 = vadd.f32 %v2728_v40, %v2145_v44  ;;  %v2730_v46 = vadd.f32 %v2010_v45, %v3459_v38  ;;  %v2012_v48 = vpop.f32.mrb[15].mxu0 }
 0x236   : > { %2260 = vst.msk [vmem:[%s3467_s27 + $0x14] sm:$0xf] %vm2257_vm9, %v2566_v41  ;;  %v2171_v36 = vadd.f32 %v2729_v43, %v2145_v44  ;;  %v2731_v50 = vadd.f32 %v2012_v48, %v3461_v39  ;;  %v2712_v51 = vpop.f32.mrb[20].mxu1 }
 0x237   : > { %v2173_v52 = vadd.f32 %v2730_v46, %v2150_v49  ;;  %v2172_v37 = vadd.f32 %v2712_v51, %v2145_v44  ;;  %v2065_v53 = vpop.f32.mrb[21].mxu1 }
 0x238   : > { %v2575_v54 = vpack.c.bf16 %v2171_v36, %v2170_v47  ;;  %v2174_v55 = vadd.f32 %v2731_v50, %v2150_v49  ;;  %v2166_v38 = vadd.f32 %v2135_v14, %v2065_v53  ;;  %v2713_v56 = vpop.f32.mrb[22].mxu1 }
 0x239   : > { %v2576_v57 = vpack.c.bf16 %v2172_v37, %v2172_v37  ;;  %v2175_v58 = vadd.f32 %v2713_v56, %v2150_v49  ;;  %v2068_v59 = vpop.f32.mrb[23].mxu1 }
 0x23a   : > { %2269 = vst [vmem:[%s3467_s27 + $0x48] sm:$0xff] %v2575_v54  ;;  %v2577_v60 = vpack.c.bf16 %v2174_v55, %v2173_v52  ;;  %v2572_v61 = vpack.c.bf16 %v2166_v38, %v2166_v38  ;;  %v2169_v39 = vadd.f32 %v2140_v20, %v2068_v59 }
 0x23b   : > { %2270 = vst.msk [vmem:[%s3467_s27 + $0x50] sm:$0xf] %vm2257_vm9, %v2576_v57  ;;  %v2578_v62 = vpack.c.bf16 %v2175_v58, %v2175_v58 }
 0x23c   : > { %2271 = vst [vmem:[%s3467_s27 + $0x54] sm:$0xff] %v2577_v60  ;;  %2266 = vst.msk [vmem:[%s3467_s27 + $0x38] sm:$0xf] %vm2257_vm9, %v2572_v61  ;;  %v2574_v63 = vpack.c.bf16 %v2169_v39, %v2169_v39 }
 0x23d   : > { %2272 = vst.msk [vmem:[%s3467_s27 + $0x5c] sm:$0xf] %vm2257_vm9, %v2578_v62 }
 0x23e   : > { %2268 = vst.msk [vmem:[%s3467_s27 + $0x44] sm:$0xf] %vm2257_vm9, %v2574_v63 }
 0x23f PF: > { %s13_s14 = sadd.s32 1, %s3007_s14   ;;  %s3510_s12 = smov %s3003_s13 }
 0x240   : > { %p10_p5 = scmp.ge.s32.totalorder %s13_s14, 4   ;;  %s3511_s13 = smov %s3513_s15 }
 0x242   :  { %12 = sbr.rel (!%p10_p5) target bundleno = 2 (0x2), region = 70 }

// kernel: _lambda_.7
= control target key start
LH: loop header
LB: loop body
LE: loop exit
PB: predicated region body
PF: predicated region fallthrough
CT: control target
= control target key end

     0   :  { %s1915_s14 = smov 0   ;;  %s1917_s15 = smov 0   ;;  %s3046_s0 = inlined_call_operand.vmem [shape: bf16[2,1,16,1158], index: 0, kind: input, shape index: {}]   ;;  %s3047_s1 = inlined_call_operand.vmem [shape: f32[9,16,1], index: 1, kind: input, shape index: {}]   ;;  %s3048_s2 = inlined_call_operand.<no memory space> [shape: f32[1,1], index: 2, kind: input, shape index: {}]   ;;  %s3049_s3 = inlined_call_operand.vmem [shape: f32[2,1,1088], index: 3, kind: output, shape index: {}]  }
   0x1   :  { %v8_v0 = vstv %s3048_s2  ;;  %s1919_s16 = smov 0  }
   0x2   :  { %9 = vst [vmem:[#allocation2] sm:$0x1] %v8_v0 }
   0x3 LB: > { %s27_s2 = sadd.s32 1, %s1876_s15  ;;  %p1755_p0 = scmp.ge.s32.totalorder %s1880_s16, 1  ;;  %s1880_s16 = sphi %s1919_s16, %s15_s16   ;;  %s1876_s15 = sphi %s1917_s15, %s3218_s15   ;;  %s1872_s14 = sphi %s1915_s14, %s3217_s14  }
   0x4   : > { %p29_p1 = scmp.ge.s32.totalorder %s27_s2, 2  ;;  %p159_p2 = scmp.lt.s32.totalorder %s1880_s16, 3 }
   0x6   : > { %s3220_s2 = smov (%p29_p1, %s27_s2), 0  ;;  %p160_p3 = pnand %p1755_p0, %p159_p2 }
   0x8   : > { %163 = sbr.rel (%p160_p3) target bundleno = 753 (0x2f1), region = 32 }
   0xf   : > { %v1757_v1 = vld [vmem:[%s3047_s1 + $0x10] sm:$0xff]  ;;  %v1882_v2 = vmov 0   ;;  %v236_v3 = vld [vmem:[%s3047_s1] sm:$0xff]  ;;  %v1758_v4 = vld [vmem:[%s3047_s1 + $0x18] sm:$0xff]  ;;  %p190_p4 = scmp.lt.s32.totalorder %s1872_s14, 1  ;;  %s1883_s17 = smov 127  }
  0x10   : > { %1821 = vset.pattern.permute.xlu1 %v1882_v2  ;;  %1820 = vset.pattern.permute.xlu0 %v1882_v2  ;;  %v237_v5 = vld [vmem:[%s3047_s1 + $0x8] sm:$0xff]  ;;  %v1759_v7 = vld [vmem:[%s3047_s1 + $0x20] sm:$0xff]  ;;  %v1762_v8 = vld [vmem:[%s3047_s1 + $0x38] sm:$0xff]  ;;  %s1884_s18 = smov 126   ;;  %s1885_s19 = smov 94   ;;  %vm783_vm0 = vcmask 760832  }
  0x11   : > { %289 = vperm.xlu1 %1821, %v1757_v1   ;;  %240 = vperm.xlu0 %1820, %v236_v3   ;;  %v1760_v6 = vld [vmem:[%s3047_s1 + $0x28] sm:$0xff]  ;;  %v1761_v9 = vld [vmem:[%s3047_s1 + $0x30] sm:$0xff]  ;;  %v1763_v11 = vld [vmem:[%s3047_s1 + $0x40] sm:$0xff]  ;;  %s3222_s14 = smov (!%p190_p4, %s1872_s14), 1  ;;  %s1886_s20 = smov 93   ;;  %vm369_vm1 = vcmask 1039360  }
  0x12   : > { %v1764_v10 = vld [vmem:[%s3047_s1 + $0x48] sm:$0xff]  ;;  %s1784_s10 = smul.u32 80, %s3222_s14  ;;  %s1888_s11 = smov 60   ;;  %vm507_vm2 = vcmask 1031168   ;;  %vm921_vm3 = vcmask 752640   ;;  %vm645_vm4 = vcmask 769024  }
  0x13   : > { %s1889_s12 = smov 59   ;;  %vm1097_vm5 = vcmask 490496   ;;  %vm1245_vm6 = vcmask 482304   ;;  %vm1393_vm7 = vcmask 474112   ;;  %vm1504_vm8 = vcmask 523264  }
  0x14   : > { %s1973_s13 = scalar_lea.vmem %s3046_s0, %s1784_s10  ;;  %s1887_s10 = smov 92  }
  0x15   : > { %294 = vperm.xlu1 %1821, %v1758_v4   ;;  %245 = vperm.xlu0 %1820, %v237_v5   ;;  %v208_v12 = vld [vmem:[%s1973_s13] sm:$0xff]  ;;  %v209_v15 = vld [vmem:[%s1973_s13 + $0x8] sm:$0xff]  ;;  %v210_v21 = vld [vmem:[%s1973_s13 + $0x10] sm:$0xff] }
  0x16   : > { %v1976_v13 = vunpack.c.h.bf16 %v208_v12  ;;  %v1978_v14 = vunpack.c.l.bf16 %v208_v12  ;;  %v1983_v19 = vunpack.c.h.bf16 %v209_v15  ;;  %v1985_v20 = vunpack.c.l.bf16 %v209_v15  ;;  %v211_v26 = vld [vmem:[%s1973_s13 + $0x18] sm:$0xff]  ;;  %v213_v31 = vld [vmem:[%s1973_s13 + $0x28] sm:$0xff]  ;;  %v214_v38 = vld [vmem:[%s1973_s13 + $0x30] sm:$0xff] }
  0x17   : > { %v1992_v24 = vunpack.c.h.bf16 %v210_v21  ;;  %v1994_v25 = vunpack.c.l.bf16 %v210_v21  ;;  %v2001_v29 = vunpack.c.h.bf16 %v211_v26  ;;  %v2003_v30 = vunpack.c.l.bf16 %v211_v26  ;;  %v212_v32 = vld [vmem:[%s1973_s13 + $0x20] ss:$40 sps:$4 sm:$0xff]   ;;  %v215_v43 = vld [vmem:[%s1973_s13 + $0x38] sm:$0xff] }
  0x18   : > { %v2011_v35 = vunpack.c.l.bf16 %v213_v31  ;;  %v2013_v36 = vunpack.c.l.bf16 %v212_v32  ;;  %v2020_v41 = vunpack.c.l.bf16 %v214_v38  ;;  %v2022_v42 = vunpack.c.h.bf16 %v213_v31  ;;  %v216_v48 = vld [vmem:[%s1973_s13 + $0x40] sm:$0xff] }
  0x19   : > { %432 = vperm.xlu1 %1821, %v1760_v6   ;;  %427 = vperm.xlu0 %1820, %v1759_v7   ;;  %v2029_v46 = vunpack.c.l.bf16 %v215_v43  ;;  %v2031_v47 = vunpack.c.h.bf16 %v214_v38  ;;  %v2040_v52 = vunpack.c.l.bf16 %v216_v48  ;;  %v2042_v53 = vunpack.c.h.bf16 %v215_v43 }
  0x1a   : > { %3095 = vst [vmem:[#allocation3_spill] sm:$0xff] %v2020_v41  ;;  %3096 = vst [vmem:[#allocation4_spill] sm:$0xff] %v2022_v42  ;;  %v2048_v56 = vunpack.c.h.bf16 %v212_v32  ;;  %v2050_v57 = vunpack.c.h.bf16 %v216_v48 }
  0x1b   : > { %3097 = vst [vmem:[#allocation5_spill] sm:$0xff] %v2029_v46  ;;  %3098 = vst [vmem:[#allocation6_spill] sm:$0xff] %v2031_v47 }
  0x1c   : > { %3099 = vst [vmem:[#allocation7_spill] sm:$0xff] %v2040_v52  ;;  %3100 = vst [vmem:[#allocation8_spill] sm:$0xff] %v2042_v53 }
  0x1d   : > { %570 = vperm.xlu1 %1821, %v1762_v8   ;;  %565 = vperm.xlu0 %1820, %v1761_v9   ;;  %3101 = vst [vmem:[#allocation9_spill] sm:$0xff] %v2050_v57 }
  0x21   : > { %708 = vperm.xlu1 %1821, %v1764_v10   ;;  %703 = vperm.xlu0 %1820, %v1763_v11  }
  0x90   : > { %v290_v16 = vpop.permute.xlu1 %289  ;;  %v2036_v49 = vpop.permute.xlu0 %240 }
  0x91   : > { %v298_v17 = vmul.f32 %v290_v16, %v1976_v13  ;;  %v297_v18 = vmul.f32 %v290_v16, %v1978_v14  ;;  %v300_v22 = vmul.f32 %v290_v16, %v1983_v19  ;;  %v299_v23 = vmul.f32 %v290_v16, %v1985_v20 }
  0x92   : > { %v302_v27 = vmul.f32 %v290_v16, %v1992_v24  ;;  %v301_v28 = vmul.f32 %v290_v16, %v1994_v25  ;;  %v304_v33 = vmul.f32 %v290_v16, %v2001_v29  ;;  %v303_v34 = vmul.f32 %v290_v16, %v2003_v30 }
  0x93   : > { %335 = vrot.lane.b32.xlu1 %v298_v17, %s1883_s17  ;;  %333 = vrot.lane.b32.xlu0 %v297_v18, %s1883_s17  ;;  %v305_v40 = vmul.f32 %v290_v16, %v2013_v36 }
  0x94   : > { %v295_v37 = vpop.permute.xlu1 %294  ;;  %v2052_v58 = vpop.permute.xlu0 %245 }
  0x95   : > { %v306_v39 = vmul.f32 %v295_v37, %v2011_v35  ;;  %v308_v44 = vmul.f32 %v295_v37, %v2020_v41  ;;  %v307_v45 = vmul.f32 %v295_v37, %v2022_v42  ;;  %v310_v50 = vmul.f32 %v295_v37, %v2029_v46 }
  0x96   : > { %v309_v51 = vmul.f32 %v295_v37, %v2031_v47  ;;  %v312_v54 = vmul.f32 %v295_v37, %v2040_v52  ;;  %v311_v55 = vmul.f32 %v295_v37, %v2042_v53  ;;  %v314_v59 = vmul.f32 %v295_v37, %v2048_v56 }
  0x97   : > { %339 = vrot.lane.b32.xlu1 %v300_v22, %s1883_s17  ;;  %337 = vrot.lane.b32.xlu0 %v299_v23, %s1883_s17  ;;  %v313_v60 = vmul.f32 %v295_v37, %v2050_v57 }
  0x98   : > { %v428_v61 = vpop.permute.xlu0 %427  ;;  %v433_v6 = vpop.permute.xlu1 %432 }
  0x99   : > { %v436_v62 = vmul.f32 %v428_v61, %v1976_v13  ;;  %v435_v63 = vmul.f32 %v428_v61, %v1978_v14  ;;  %v438_v0 = vmul.f32 %v428_v61, %v1983_v19  ;;  %v437_v1 = vmul.f32 %v428_v61, %v1985_v20 }
  0x9a   : > { %v440_v2 = vmul.f32 %v428_v61, %v1992_v24  ;;  %v439_v3 = vmul.f32 %v428_v61, %v1994_v25  ;;  %v442_v4 = vmul.f32 %v428_v61, %v2001_v29  ;;  %v441_v5 = vmul.f32 %v428_v61, %v2003_v30 }
  0x9b   : > { %343 = vrot.lane.b32.xlu1 %v302_v27, %s1883_s17  ;;  %341 = vrot.lane.b32.xlu0 %v301_v28, %s1883_s17  ;;  %v444_v7 = vmul.f32 %v433_v6, %v2011_v35  ;;  %v443_v8 = vmul.f32 %v428_v61, %v2013_v36  ;;  %v446_v9 = vmul.f32 %v433_v6, %v2020_v41 }
  0x9c   : > { %v445_v10 = vmul.f32 %v433_v6, %v2022_v42  ;;  %v448_v11 = vmul.f32 %v433_v6, %v2029_v46  ;;  %v447_v12 = vmul.f32 %v433_v6, %v2031_v47  ;;  %v450_v15 = vmul.f32 %v433_v6, %v2040_v52  ;;  %v566_v21 = vpop.permute.xlu0 %565 }
  0x9d   : > { %v449_v16 = vmul.f32 %v433_v6, %v2042_v53  ;;  %v452_v17 = vmul.f32 %v433_v6, %v2048_v56  ;;  %v451_v18 = vmul.f32 %v433_v6, %v2050_v57  ;;  %v574_v22 = vmul.f32 %v566_v21, %v1976_v13 }
  0x9e   : > { %v573_v23 = vmul.f32 %v566_v21, %v1978_v14  ;;  %v576_v26 = vmul.f32 %v566_v21, %v1983_v19  ;;  %v575_v27 = vmul.f32 %v566_v21, %v1985_v20  ;;  %v578_v28 = vmul.f32 %v566_v21, %v1992_v24 }
  0x9f   : > { %347 = vrot.lane.b32.xlu1 %v304_v33, %s1883_s17  ;;  %345 = vrot.lane.b32.xlu0 %v303_v34, %s1883_s17  ;;  %v577_v31 = vmul.f32 %v566_v21, %v1994_v25  ;;  %v580_v32 = vmul.f32 %v566_v21, %v2001_v29  ;;  %v579_v33 = vmul.f32 %v566_v21, %v2003_v30  ;;  %v571_v34 = vpop.permute.xlu1 %570 }
  0xa0   : > { %v582_v37 = vmul.f32 %v571_v34, %v2011_v35  ;;  %v581_v38 = vmul.f32 %v566_v21, %v2013_v36  ;;  %v586_v43 = vmul.f32 %v571_v34, %v2029_v46  ;;  %v587_v48 = vmul.f32 %v571_v34, %v2042_v53 }
  0xa3   : > { %351 = vrot.lane.b32.xlu1 %v306_v39, %s1883_s17  ;;  %349 = vrot.lane.b32.xlu0 %v305_v40, %s1883_s17  ;;  %v584_v39 = vmul.f32 %v571_v34, %v2020_v41  ;;  %v583_v40 = vmul.f32 %v571_v34, %v2022_v42 }
  0xa7   : > { %355 = vrot.lane.b32.xlu1 %v308_v44, %s1883_s17  ;;  %353 = vrot.lane.b32.xlu0 %v307_v45, %s1883_s17  ;;  %v585_v44 = vmul.f32 %v571_v34, %v2031_v47  ;;  %v588_v45 = vmul.f32 %v571_v34, %v2040_v52 }
  0xab   : > { %359 = vrot.lane.b32.xlu1 %v310_v50, %s1883_s17  ;;  %357 = vrot.lane.b32.xlu0 %v309_v51, %s1883_s17  ;;  %v590_v50 = vmul.f32 %v571_v34, %v2048_v56  ;;  %v589_v51 = vmul.f32 %v571_v34, %v2050_v57 }
  0xaf   : > { %363 = vrot.lane.b32.xlu1 %v312_v54, %s1883_s17  ;;  %361 = vrot.lane.b32.xlu0 %v311_v55, %s1883_s17  ;;  %v704_v54 = vpop.permute.xlu0 %703 }
  0xb0   : > { %v712_v55 = vmul.f32 %v704_v54, %v1976_v13  ;;  %v714_v61 = vmul.f32 %v704_v54, %v1983_v19  ;;  %v717_v6 = vmul.f32 %v704_v54, %v2003_v30 }
  0xb3   : > { %367 = vrot.lane.b32.xlu1 %v314_v59, %s1883_s17  ;;  %365 = vrot.lane.b32.xlu0 %v313_v60, %s1883_s17  ;;  %v711_v59 = vmul.f32 %v704_v54, %v1978_v14  ;;  %v709_v60 = vpop.permute.xlu1 %708  ;;  %s1785_s17 = smul.u32 9, %s3222_s14 }
  0xb4   : > { %v724_v21 = vmul.f32 %v709_v60, %v2029_v46  ;;  %v727_v34 = vmul.f32 %v709_v60, %v2050_v57 }
  0xb7   : > { %473 = vrot.lane.b32.xlu1 %v436_v62, %s1884_s18  ;;  %471 = vrot.lane.b32.xlu0 %v435_v63, %s1884_s18  ;;  %v713_v62 = vmul.f32 %v704_v54, %v1985_v20 }
  0xbb   : > { %477 = vrot.lane.b32.xlu1 %v438_v0, %s1884_s18  ;;  %475 = vrot.lane.b32.xlu0 %v437_v1, %s1884_s18  ;;  %v716_v1 = vmul.f32 %v704_v54, %v1992_v24 }
  0xbf   : > { %481 = vrot.lane.b32.xlu1 %v440_v2, %s1884_s18  ;;  %479 = vrot.lane.b32.xlu0 %v439_v3, %s1884_s18  ;;  %v715_v2 = vmul.f32 %v704_v54, %v1994_v25 }
  0xc3   : > { %485 = vrot.lane.b32.xlu1 %v442_v4, %s1884_s18  ;;  %483 = vrot.lane.b32.xlu0 %v441_v5, %s1884_s18  ;;  %v718_v5 = vmul.f32 %v704_v54, %v2001_v29 }
  0xc7   : > { %489 = vrot.lane.b32.xlu1 %v444_v7, %s1884_s18  ;;  %487 = vrot.lane.b32.xlu0 %v443_v8, %s1884_s18 }
  0xcb   : > { %493 = vrot.lane.b32.xlu1 %v446_v9, %s1884_s18  ;;  %491 = vrot.lane.b32.xlu0 %v445_v10, %s1884_s18  ;;  %v720_v9 = vmul.f32 %v709_v60, %v2011_v35  ;;  %v719_v10 = vmul.f32 %v704_v54, %v2013_v36 }
  0xcf   : > { %497 = vrot.lane.b32.xlu1 %v448_v11, %s1884_s18  ;;  %495 = vrot.lane.b32.xlu0 %v447_v12, %s1884_s18 }
  0xd3   : > { %501 = vrot.lane.b32.xlu1 %v450_v15, %s1884_s18  ;;  %499 = vrot.lane.b32.xlu0 %v449_v16, %s1884_s18  ;;  %v722_v15 = vmul.f32 %v709_v60, %v2020_v41  ;;  %v721_v16 = vmul.f32 %v709_v60, %v2022_v42 }
  0xd7   : > { %505 = vrot.lane.b32.xlu1 %v452_v17, %s1884_s18  ;;  %503 = vrot.lane.b32.xlu0 %v451_v18, %s1884_s18 }
  0xdb   : > { %611 = vrot.lane.b32.xlu1 %v574_v22, %s1885_s19  ;;  %609 = vrot.lane.b32.xlu0 %v573_v23, %s1885_s19  ;;  %v723_v22 = vmul.f32 %v709_v60, %v2031_v47 }
  0xdf   : > { %615 = vrot.lane.b32.xlu1 %v576_v26, %s1885_s19  ;;  %613 = vrot.lane.b32.xlu0 %v575_v27, %s1885_s19  ;;  %v726_v27 = vmul.f32 %v709_v60, %v2040_v52 }
  0xe3   : > { %619 = vrot.lane.b32.xlu1 %v578_v28, %s1885_s19  ;;  %617 = vrot.lane.b32.xlu0 %v577_v31, %s1885_s19  ;;  %v725_v28 = vmul.f32 %v709_v60, %v2042_v53 }
  0xe7   : > { %623 = vrot.lane.b32.xlu1 %v580_v32, %s1885_s19  ;;  %621 = vrot.lane.b32.xlu0 %v579_v33, %s1885_s19  ;;  %v728_v33 = vmul.f32 %v709_v60, %v2048_v56  ;;  %v1771_v60 = vld [vmem:[%s3047_s1 + $0x80] sm:$0xff] }
  0xeb   : > { %627 = vrot.lane.b32.xlu1 %v582_v37, %s1885_s19  ;;  %625 = vrot.lane.b32.xlu0 %v581_v38, %s1885_s19  ;;  %v1766_v37 = vld [vmem:[%s3047_s1 + $0x58] sm:$0xff]  ;;  %v1765_v38 = vld [vmem:[%s3047_s1 + $0x50] sm:$0xff] }
  0xef   : > { %631 = vrot.lane.b32.xlu1 %v584_v39, %s1885_s19  ;;  %629 = vrot.lane.b32.xlu0 %v583_v40, %s1885_s19 }
  0xf3   : > { %635 = vrot.lane.b32.xlu1 %v586_v43, %s1885_s19  ;;  %633 = vrot.lane.b32.xlu0 %v585_v44, %s1885_s19  ;;  %v1768_v43 = vld [vmem:[%s3047_s1 + $0x68] sm:$0xff]  ;;  %v1767_v44 = vld [vmem:[%s3047_s1 + $0x60] sm:$0xff] }
  0xf7   : > { %639 = vrot.lane.b32.xlu1 %v588_v45, %s1885_s19  ;;  %637 = vrot.lane.b32.xlu0 %v587_v48, %s1885_s19 }
  0xfb   : > { %643 = vrot.lane.b32.xlu1 %v590_v50, %s1885_s19  ;;  %641 = vrot.lane.b32.xlu0 %v589_v51, %s1885_s19  ;;  %v1770_v50 = vld [vmem:[%s3047_s1 + $0x78] sm:$0xff]  ;;  %v1769_v51 = vld [vmem:[%s3047_s1 + $0x70] sm:$0xff] }
  0xff   : > { %749 = vrot.lane.b32.xlu1 %v712_v55, %s1886_s20  ;;  %747 = vrot.lane.b32.xlu0 %v711_v59, %s1886_s20  ;;  %v1772_v59 = vld [vmem:[%s3047_s1 + $0x88] sm:$0xff] }
 0x103   : > { %753 = vrot.lane.b32.xlu1 %v714_v61, %s1886_s20  ;;  %751 = vrot.lane.b32.xlu0 %v713_v62, %s1886_s20 }
 0x105   : > { %v2140_v63 = vpop.permute.xlu1 %335  ;;  %v2142_v0 = vpop.permute.xlu0 %333 }
 0x107   : > { %757 = vrot.lane.b32.xlu1 %v716_v1, %s1886_s20  ;;  %755 = vrot.lane.b32.xlu0 %v715_v2, %s1886_s20 }
 0x109   : > { %v2148_v3 = vpop.permute.xlu1 %339  ;;  %v2150_v4 = vpop.permute.xlu0 %337 }
 0x10b   : > { %761 = vrot.lane.b32.xlu1 %v718_v5, %s1886_s20  ;;  %759 = vrot.lane.b32.xlu0 %v717_v6, %s1886_s20 }
 0x10d   : > { %v2156_v7 = vpop.permute.xlu1 %343  ;;  %v2158_v8 = vpop.permute.xlu0 %341 }
 0x10f   : > { %765 = vrot.lane.b32.xlu1 %v720_v9, %s1886_s20  ;;  %763 = vrot.lane.b32.xlu0 %v719_v10, %s1886_s20 }
 0x111   : > { %v2164_v11 = vpop.permute.xlu1 %347  ;;  %v2166_v12 = vpop.permute.xlu0 %345 }
 0x113   : > { %769 = vrot.lane.b32.xlu1 %v722_v15, %s1886_s20  ;;  %767 = vrot.lane.b32.xlu0 %v721_v16, %s1886_s20 }
 0x115   : > { %v2172_v17 = vpop.permute.xlu1 %351  ;;  %v2174_v18 = vpop.permute.xlu0 %349 }
 0x117   : > { %773 = vrot.lane.b32.xlu1 %v724_v21, %s1886_s20  ;;  %771 = vrot.lane.b32.xlu0 %v723_v22, %s1886_s20 }
 0x119   : > { %v2180_v23 = vpop.permute.xlu1 %355  ;;  %v2182_v26 = vpop.permute.xlu0 %353 }
 0x11b   : > { %777 = vrot.lane.b32.xlu1 %v726_v27, %s1886_s20  ;;  %775 = vrot.lane.b32.xlu0 %v725_v28, %s1886_s20 }
 0x11d   : > { %v2188_v31 = vpop.permute.xlu1 %359  ;;  %v2190_v32 = vpop.permute.xlu0 %357 }
 0x11f   : > { %781 = vrot.lane.b32.xlu1 %v728_v33, %s1886_s20  ;;  %779 = vrot.lane.b32.xlu0 %v727_v34, %s1886_s20  ;;  %s206_s20 = scalar_lea.vmem %s3049_s3, %s1785_s17 }
 0x121   : > { %v2202_v39 = vpop.permute.xlu1 %363  ;;  %v2204_v40 = vpop.permute.xlu0 %361 }
 0x123   : > { %846 = vperm.xlu1 %1821, %v1766_v37   ;;  %841 = vperm.xlu0 %1820, %v1765_v38  }
 0x125   : > { %v2212_v45 = vpop.permute.xlu1 %367  ;;  %v2214_v48 = vpop.permute.xlu0 %365 }
 0x127   : > { %1014 = vperm.xlu1 %1821, %v1768_v43   ;;  %1009 = vperm.xlu0 %1820, %v1767_v44  }
 0x129   : > { %v2222_v54 = vpop.permute.xlu1 %473  ;;  %v2224_v55 = vpop.permute.xlu0 %471 }
 0x12b   : > { %1162 = vperm.xlu1 %1821, %v1770_v50   ;;  %1157 = vperm.xlu0 %1820, %v1769_v51  }
 0x12d   : > { %v2232_v61 = vpop.permute.xlu1 %477  ;;  %v2234_v62 = vpop.permute.xlu0 %475 }
 0x12f   : > { %1310 = vperm.xlu1 %1821, %v1772_v59   ;;  %1305 = vperm.xlu0 %1820, %v1771_v60  }
 0x131   : > { %v2236_v1 = vpop.permute.xlu1 %481  ;;  %v2238_v2 = vpop.permute.xlu0 %479 }
 0x132   : > { %3102 = vst [vmem:[#allocation10_spill] sm:$0xff] %v2236_v1  ;;  %3103 = vst [vmem:[#allocation11_spill] sm:$0xff] %v2238_v2 }
 0x135   : > { %v2240_v5 = vpop.permute.xlu1 %485  ;;  %v2242_v6 = vpop.permute.xlu0 %483 }
 0x139   : > { %v2244_v9 = vpop.permute.xlu1 %489  ;;  %v2246_v10 = vpop.permute.xlu0 %487 }
 0x13a   : > { %3104 = vst [vmem:[#allocation12_spill] sm:$0xff] %v2244_v9 }
 0x13d   : > { %v2248_v15 = vpop.permute.xlu1 %493  ;;  %v2250_v16 = vpop.permute.xlu0 %491 }
 0x13e   : > { %3105 = vst [vmem:[#allocation13_spill] sm:$0xff] %v2248_v15  ;;  %3106 = vst [vmem:[#allocation14_spill] sm:$0xff] %v2250_v16 }
 0x141   : > { %v2252_v21 = vpop.permute.xlu1 %497  ;;  %v2254_v22 = vpop.permute.xlu0 %495 }
 0x142   : > { %3107 = vst [vmem:[#allocation15_spill] sm:$0xff] %v2252_v21  ;;  %3108 = vst [vmem:[#allocation16_spill] sm:$0xff] %v2254_v22 }
 0x145   : > { %v2256_v27 = vpop.permute.xlu1 %501  ;;  %v2258_v28 = vpop.permute.xlu0 %499 }
 0x146   : > { %3109 = vst [vmem:[#allocation17_spill] sm:$0xff] %v2256_v27  ;;  %3110 = vst [vmem:[#allocation18_spill] sm:$0xff] %v2258_v28 }
 0x149   : > { %v2260_v33 = vpop.permute.xlu1 %505  ;;  %v2262_v34 = vpop.permute.xlu0 %503 }
 0x14a   : > { %3111 = vst [vmem:[#allocation19_spill] sm:$0xff] %v2260_v33  ;;  %3112 = vst [vmem:[#allocation20_spill] sm:$0xff] %v2262_v34 }
 0x14d   : > { %v2264_v37 = vpop.permute.xlu1 %611  ;;  %v2266_v38 = vpop.permute.xlu0 %609 }
 0x14e   : > { %3113 = vst [vmem:[#allocation21_spill] sm:$0xff] %v2264_v37  ;;  %3114 = vst [vmem:[#allocation22_spill] sm:$0xff] %v2266_v38 }
 0x151   : > { %v2268_v43 = vpop.permute.xlu1 %615  ;;  %v2270_v44 = vpop.permute.xlu0 %613 }
 0x152   : > { %3115 = vst [vmem:[#allocation23_spill] sm:$0xff] %v2268_v43  ;;  %3116 = vst [vmem:[#allocation24_spill] sm:$0xff] %v2270_v44 }
 0x155   : > { %v2272_v50 = vpop.permute.xlu1 %619  ;;  %v2274_v51 = vpop.permute.xlu0 %617 }
 0x156   : > { %3117 = vst [vmem:[#allocation25_spill] sm:$0xff] %v2272_v50  ;;  %3118 = vst [vmem:[#allocation26_spill] sm:$0xff] %v2274_v51 }
 0x159   : > { %v2276_v59 = vpop.permute.xlu1 %623  ;;  %v2278_v60 = vpop.permute.xlu0 %621 }
 0x15d   : > { %v2280_v1 = vpop.permute.xlu1 %627  ;;  %v2282_v33 = vpop.permute.xlu0 %625 }
 0x15e   : > { %3119 = vst [vmem:[#allocation27_spill] sm:$0xff] %v2280_v1  ;;  %3120 = vst [vmem:[#allocation28_spill] sm:$0xff] %v2282_v33 }
 0x161   : > { %v2284_v34 = vpop.permute.xlu1 %631  ;;  %v2286_v37 = vpop.permute.xlu0 %629 }
 0x162   : > { %3121 = vst [vmem:[#allocation29_spill] sm:$0xff] %v2284_v34  ;;  %3122 = vst [vmem:[#allocation30_spill] sm:$0xff] %v2286_v37 }
 0x165   : > { %v2288_v38 = vpop.permute.xlu1 %635  ;;  %v2290_v43 = vpop.permute.xlu0 %633 }
 0x166   : > { %3123 = vst [vmem:[#allocation31_spill] sm:$0xff] %v2288_v38  ;;  %3124 = vst [vmem:[#allocation32_spill] sm:$0xff] %v2290_v43 }
 0x169   : > { %v2292_v44 = vpop.permute.xlu1 %639  ;;  %v2294_v50 = vpop.permute.xlu0 %637 }
 0x16a   : > { %3125 = vst [vmem:[#allocation33_spill] sm:$0xff] %v2292_v44  ;;  %3126 = vst [vmem:[#allocation34_spill] sm:$0xff] %v2294_v50 }
 0x16d   : > { %v2296_v51 = vpop.permute.xlu1 %643  ;;  %v2298_v27 = vpop.permute.xlu0 %641 }
 0x16e   : > { %3127 = vst [vmem:[#allocation35_spill] sm:$0xff] %v2296_v51  ;;  %3128 = vst [vmem:[#allocation36_spill] sm:$0xff] %v2298_v27 }
 0x171   : > { %v2300_v28 = vpop.permute.xlu1 %749  ;;  %v2302_v21 = vpop.permute.xlu0 %747 }
 0x172   : > { %3129 = vst [vmem:[#allocation37_spill] sm:$0xff] %v2300_v28  ;;  %3130 = vst [vmem:[#allocation38_spill] sm:$0xff] %v2302_v21 }
 0x175   : > { %v2304_v1 = vpop.permute.xlu1 %753  ;;  %v2306_v34 = vpop.permute.xlu0 %751 }
 0x176   : > { %3131 = vst [vmem:[#allocation39_spill] sm:$0xff] %v2304_v1  ;;  %3132 = vst [vmem:[#allocation40_spill] sm:$0xff] %v2306_v34 }
 0x179   : > { %v2308_v37 = vpop.permute.xlu1 %757  ;;  %v2310_v38 = vpop.permute.xlu0 %755 }
 0x17a   : > { %3133 = vst [vmem:[#allocation41_spill] sm:$0xff] %v2308_v37  ;;  %3134 = vst [vmem:[#allocation42_spill] sm:$0xff] %v2310_v38 }
 0x17d   : > { %v2312_v43 = vpop.permute.xlu1 %761  ;;  %v2314_v44 = vpop.permute.xlu0 %759 }
 0x17e   : > { %3135 = vst [vmem:[#allocation43_spill] sm:$0xff] %v2312_v43  ;;  %3136 = vst [vmem:[#allocation44_spill] sm:$0xff] %v2314_v44 }
 0x181   : > { %v766_v51 = vpop.permute.xlu1 %765  ;;  %v2316_v50 = vpop.permute.xlu0 %763 }
 0x182   : > { %3137 = vst [vmem:[#allocation45_spill] sm:$0xff] %v2316_v50  ;;  %v2321_v21 = vsel %vm783_vm0, %v2312_v43, %v2316_v50 }
 0x183   : > { %3138 = vst [vmem:[#allocation46_spill] sm:$0xff] %v2321_v21 }
 0x185   : > { %v770_v1 = vpop.permute.xlu1 %769  ;;  %v768_v28 = vpop.permute.xlu0 %767 }
 0x186   : > { %v2324_v34 = vsel %vm783_vm0, %v766_v51, %v768_v28  ;;  %v2327_v37 = vsel %vm783_vm0, %v768_v28, %v770_v1 }
 0x187   : > { %3139 = vst [vmem:[#allocation47_spill] sm:$0xff] %v2324_v34  ;;  %3140 = vst [vmem:[#allocation48_spill] sm:$0xff] %v2327_v37 }
 0x189   : > { %v774_v38 = vpop.permute.xlu1 %773  ;;  %v772_v27 = vpop.permute.xlu0 %771 }
 0x18a   : > { %v2330_v22 = vsel %vm783_vm0, %v770_v1, %v772_v27  ;;  %v2333_v33 = vsel %vm783_vm0, %v772_v27, %v774_v38 }
 0x18b   : > { %3141 = vst [vmem:[#allocation49_spill] sm:$0xff] %v2330_v22  ;;  %3142 = vst [vmem:[#allocation50_spill] sm:$0xff] %v2333_v33 }
 0x18d   : > { %v778_v15 = vpop.permute.xlu1 %777  ;;  %v776_v2 = vpop.permute.xlu0 %775 }
 0x18e   : > { %v2336_v21 = vsel %vm783_vm0, %v774_v38, %v776_v2  ;;  %v2339_v50 = vsel %vm783_vm0, %v776_v2, %v778_v15 }
 0x18f   : > { %3143 = vst [vmem:[#allocation51_spill] sm:$0xff] %v2336_v21  ;;  %3144 = vst [vmem:[#allocation52_spill] sm:$0xff] %v2339_v50  ;;  %v983_v50 = vld [vmem:[%s1973_s13 + $0x48] sm:$0xff] }
 0x191   : > { %v2341_v51 = vpop.permute.xlu1 %781  ;;  %v780_v28 = vpop.permute.xlu0 %779 }
 0x192   : > { %3145 = vst [vmem:[#allocation53_spill] sm:$0xff] %v2341_v51  ;;  %v2344_v37 = vsel %vm783_vm0, %v778_v15, %v780_v28  ;;  %v2348_v1 = vsel %vm783_vm0, %v780_v28, %v2341_v51  ;;  %v978_v51 = vld [vmem:[%s1973_s13 + $0x20] sm:$0xff]  ;;  %s1890_s13 = smov 58  }
 0x193   : > { %3146 = vst [vmem:[#allocation54_spill] sm:$0xff] %v2344_v37  ;;  %3147 = vst [vmem:[#allocation55_spill] sm:$0xff] %v2348_v1 }
 0x1a2   : > { %v842_v27 = vpop.permute.xlu0 %841  ;;  %v847_v1 = vpop.permute.xlu1 %846 }
 0x1a3   : > { %v850_v33 = vmul.f32 %v842_v27, %v1976_v13  ;;  %v849_v22 = vmul.f32 %v842_v27, %v1978_v14  ;;  %v852_v2 = vmul.f32 %v842_v27, %v1983_v19  ;;  %v851_v15 = vmul.f32 %v842_v27, %v1985_v20 }
 0x1a4   : > { %v854_v38 = vmul.f32 %v842_v27, %v1992_v24  ;;  %v853_v28 = vmul.f32 %v842_v27, %v1994_v25  ;;  %v855_v37 = vmul.f32 %v842_v27, %v2003_v30  ;;  %v859_v43 = vmul.f32 %v847_v1, %v2022_v42 }
 0x1a5   : > { %887 = vrot.lane.b32.xlu1 %v850_v33, %s1887_s10  ;;  %885 = vrot.lane.b32.xlu0 %v849_v22, %s1887_s10  ;;  %v856_v22 = vmul.f32 %v842_v27, %v2001_v29 }
 0x1a6   : > { %v1010_v33 = vpop.permute.xlu0 %1009  ;;  %v1015_v21 = vpop.permute.xlu1 %1014 }
 0x1a9   : > { %891 = vrot.lane.b32.xlu1 %v852_v2, %s1887_s10  ;;  %889 = vrot.lane.b32.xlu0 %v851_v15, %s1887_s10  ;;  %v2368_v2 = vunpack.c.h.bf16 %v983_v50  ;;  %v2370_v15 = vunpack.c.h.bf16 %v978_v51 }
 0x1aa   : > { %v2374_v34 = vpop.permute.xlu0 %1157 }
 0x1ab   : > { %3148 = vst [vmem:[#allocation56_spill] sm:$0xff] %v2368_v2  ;;  %3149 = vst [vmem:[#allocation57_spill] sm:$0xff] %v2370_v15  ;;  %v2379_v44 = vmul.f32 %v1015_v21, %v2368_v2  ;;  %v2388_v9 = vmul.f32 %v2374_v34, %v2370_v15  ;;  %v863_v2 = vmul.f32 %v847_v1, %v2042_v53 }
 0x1ad   : > { %895 = vrot.lane.b32.xlu1 %v854_v38, %s1887_s10  ;;  %893 = vrot.lane.b32.xlu0 %v853_v28, %s1887_s10  ;;  %v858_v38 = vmul.f32 %v847_v1, %v2011_v35  ;;  %v857_v28 = vmul.f32 %v842_v27, %v2013_v36  ;;  %3150 = vst [vmem:[#allocation58_spill] sm:$0xff] %v2379_v44  ;;  %3152 = vst [vmem:[#allocation60_spill] sm:$0xff] %v2388_v9 }
 0x1ae   : > { %v862_v27 = vmul.f32 %v847_v1, %v2029_v46  ;;  %v255_v9 = vmul.f32 %v2036_v49, %v2001_v29  ;;  %v258_v44 = vmul.f32 %v2052_v58, %v2022_v42 }
 0x1b1   : > { %899 = vrot.lane.b32.xlu1 %v856_v22, %s1887_s10  ;;  %897 = vrot.lane.b32.xlu0 %v855_v37, %s1887_s10  ;;  %v2382_v37 = vmul.f32 %v1010_v33, %v2370_v15  ;;  %v860_v22 = vmul.f32 %v847_v1, %v2020_v41  ;;  %v254_v15 = vmul.f32 %v2036_v49, %v2003_v30 }
 0x1b3   : > { %3151 = vst [vmem:[#allocation59_spill] sm:$0xff] %v2382_v37  ;;  %v257_v37 = vmul.f32 %v2052_v58, %v2011_v35 }
 0x1b5   : > { %903 = vrot.lane.b32.xlu1 %v858_v38, %s1887_s10  ;;  %901 = vrot.lane.b32.xlu0 %v857_v28, %s1887_s10  ;;  %v861_v38 = vmul.f32 %v847_v1, %v2031_v47  ;;  %v864_v28 = vmul.f32 %v847_v1, %v2040_v52 }
 0x1b9   : > { %907 = vrot.lane.b32.xlu1 %v860_v22, %s1887_s10  ;;  %905 = vrot.lane.b32.xlu0 %v859_v43, %s1887_s10  ;;  %v866_v22 = vmul.f32 %v847_v1, %v2048_v56  ;;  %v865_v43 = vmul.f32 %v847_v1, %v2050_v57  ;;  %v1022_v1 = vmul.f32 %v1010_v33, %v1992_v24 }
 0x1bd   : > { %911 = vrot.lane.b32.xlu1 %v862_v27, %s1887_s10  ;;  %909 = vrot.lane.b32.xlu0 %v861_v38, %s1887_s10  ;;  %v1018_v27 = vmul.f32 %v1010_v33, %v1976_v13  ;;  %v1017_v38 = vmul.f32 %v1010_v33, %v1978_v14 }
 0x1c1   : > { %915 = vrot.lane.b32.xlu1 %v864_v28, %s1887_s10  ;;  %913 = vrot.lane.b32.xlu0 %v863_v2, %s1887_s10  ;;  %v1020_v28 = vmul.f32 %v1010_v33, %v1983_v19  ;;  %v1019_v2 = vmul.f32 %v1010_v33, %v1985_v20 }
 0x1c5   : > { %919 = vrot.lane.b32.xlu1 %v866_v22, %s1887_s10  ;;  %917 = vrot.lane.b32.xlu0 %v865_v43, %s1887_s10  ;;  %v1021_v22 = vmul.f32 %v1010_v33, %v1994_v25  ;;  %v1024_v43 = vmul.f32 %v1010_v33, %v2001_v29 }
 0x1c9   : > { %1059 = vrot.lane.b32.xlu1 %v1018_v27, %s1888_s11  ;;  %1057 = vrot.lane.b32.xlu0 %v1017_v38, %s1888_s11  ;;  %v1023_v27 = vmul.f32 %v1010_v33, %v2003_v30  ;;  %v2418_v38 = vunpack.c.l.bf16 %v978_v51  ;;  %v1031_v51 = vmul.f32 %v1015_v21, %v2029_v46 }
 0x1cd   : > { %1063 = vrot.lane.b32.xlu1 %v1020_v28, %s1888_s11  ;;  %1061 = vrot.lane.b32.xlu0 %v1019_v2, %s1888_s11  ;;  %v1027_v28 = vmul.f32 %v1015_v21, %v2011_v35  ;;  %v1025_v2 = vmul.f32 %v1010_v33, %v2418_v38  ;;  %v1033_v33 = vmul.f32 %v1015_v21, %v2040_v52 }
 0x1d1   : > { %1067 = vrot.lane.b32.xlu1 %v1022_v1, %s1888_s11  ;;  %1065 = vrot.lane.b32.xlu0 %v1021_v22, %s1888_s11  ;;  %v1029_v1 = vmul.f32 %v1015_v21, %v2020_v41  ;;  %v1028_v22 = vmul.f32 %v1015_v21, %v2022_v42 }
 0x1d5   : > { %1071 = vrot.lane.b32.xlu1 %v1024_v43, %s1888_s11  ;;  %1069 = vrot.lane.b32.xlu0 %v1023_v27, %s1888_s11  ;;  %v1030_v43 = vmul.f32 %v1015_v21, %v2031_v47  ;;  %v1032_v27 = vmul.f32 %v1015_v21, %v2042_v53 }
 0x1d9   : > { %1077 = vrot.lane.b32.xlu1 %v1027_v28, %s1888_s11  ;;  %1073 = vrot.lane.b32.xlu0 %v1025_v2, %s1888_s11  ;;  %v2436_v28 = vunpack.c.l.bf16 %v983_v50  ;;  %v1168_v50 = vmul.f32 %v2374_v34, %v1983_v19 }
 0x1db   : > { %3153 = vst [vmem:[#allocation61_spill] sm:$0xff] %v2436_v28  ;;  %v1035_v2 = vmul.f32 %v1015_v21, %v2436_v28 }
 0x1dd   : > { %1081 = vrot.lane.b32.xlu1 %v1029_v1, %s1888_s11  ;;  %1079 = vrot.lane.b32.xlu0 %v1028_v22, %s1888_s11  ;;  %v1034_v1 = vmul.f32 %v1015_v21, %v2050_v57  ;;  %v1166_v22 = vmul.f32 %v2374_v34, %v1976_v13  ;;  %v1167_v21 = vmul.f32 %v2374_v34, %v1985_v20 }
 0x1e1   : > { %1085 = vrot.lane.b32.xlu1 %v1031_v51, %s1888_s11  ;;  %1083 = vrot.lane.b32.xlu0 %v1030_v43, %s1888_s11  ;;  %v1165_v51 = vmul.f32 %v2374_v34, %v1978_v14  ;;  %v1170_v43 = vmul.f32 %v2374_v34, %v1992_v24 }
 0x1e5   : > { %1089 = vrot.lane.b32.xlu1 %v1033_v33, %s1888_s11  ;;  %1087 = vrot.lane.b32.xlu0 %v1032_v27, %s1888_s11  ;;  %v1169_v33 = vmul.f32 %v2374_v34, %v1994_v25  ;;  %v1172_v27 = vmul.f32 %v2374_v34, %v2001_v29 }
 0x1e9   : > { %1093 = vrot.lane.b32.xlu1 %v1035_v2, %s1888_s11  ;;  %1091 = vrot.lane.b32.xlu0 %v1034_v1, %s1888_s11  ;;  %v1171_v2 = vmul.f32 %v2374_v34, %v2003_v30  ;;  %v2466_v1 = vpop.permute.xlu1 %1162 }
 0x1ea   : > { %3154 = vst [vmem:[#allocation62_spill] sm:$0xff] %v2466_v1 }
 0x1ed   : > { %1207 = vrot.lane.b32.xlu1 %v1166_v22, %s1889_s12  ;;  %1205 = vrot.lane.b32.xlu0 %v1165_v51, %s1889_s12  ;;  %v1175_v22 = vmul.f32 %v2466_v1, %v2011_v35  ;;  %v1173_v51 = vmul.f32 %v2374_v34, %v2418_v38  ;;  %v1178_v34 = vmul.f32 %v2466_v1, %v2031_v47 }
 0x1f1   : > { %1211 = vrot.lane.b32.xlu1 %v1168_v50, %s1889_s12  ;;  %1209 = vrot.lane.b32.xlu0 %v1167_v21, %s1889_s12  ;;  %v1177_v50 = vmul.f32 %v2466_v1, %v2020_v41  ;;  %v1176_v21 = vmul.f32 %v2466_v1, %v2022_v42  ;;  %v262_v42 = vmul.f32 %v2052_v58, %v2042_v53 }
 0x1f5   : > { %1215 = vrot.lane.b32.xlu1 %v1170_v43, %s1889_s12  ;;  %1213 = vrot.lane.b32.xlu0 %v1169_v33, %s1889_s12  ;;  %v1179_v43 = vmul.f32 %v2466_v1, %v2029_v46  ;;  %v1181_v33 = vmul.f32 %v2466_v1, %v2040_v52 }
 0x1f9   : > { %1219 = vrot.lane.b32.xlu1 %v1172_v27, %s1889_s12  ;;  %1217 = vrot.lane.b32.xlu0 %v1171_v2, %s1889_s12  ;;  %v1180_v27 = vmul.f32 %v2466_v1, %v2042_v53  ;;  %v1183_v2 = vmul.f32 %v2466_v1, %v2436_v28  ;;  %v370_v28 = vsel %vm369_vm1, %v2142_v0, %v2140_v63 }
 0x1fa   : > { %v373_v0 = vsel %vm369_vm1, %v2148_v3, %v2158_v8  ;;  %v374_v53 = vsel %vm369_vm1, %v2158_v8, %v2156_v7 }
 0x1fd   : > { %1225 = vrot.lane.b32.xlu1 %v1175_v22, %s1889_s12  ;;  %1221 = vrot.lane.b32.xlu0 %v1173_v51, %s1889_s12  ;;  %v1182_v22 = vmul.f32 %v2466_v1, %v2050_v57  ;;  %v248_v51 = vmul.f32 %v2036_v49, %v1978_v14  ;;  %v256_v1 = vmul.f32 %v2036_v49, %v2013_v36 }
 0x1fe   : > { %v260_v36 = vmul.f32 %v2052_v58, %v2031_v47  ;;  %v263_v47 = vmul.f32 %v2052_v58, %v2040_v52 }
 0x201   : > { %1229 = vrot.lane.b32.xlu1 %v1177_v50, %s1889_s12  ;;  %1227 = vrot.lane.b32.xlu0 %v1176_v21, %s1889_s12  ;;  %v249_v50 = vmul.f32 %v2036_v49, %v1976_v13  ;;  %v250_v21 = vmul.f32 %v2036_v49, %v1985_v20 }
 0x205   : > { %1233 = vrot.lane.b32.xlu1 %v1179_v43, %s1889_s12  ;;  %1231 = vrot.lane.b32.xlu0 %v1178_v34, %s1889_s12  ;;  %v2504_v43 = vpop.permute.xlu0 %1305  ;;  %v251_v34 = vmul.f32 %v2036_v49, %v1983_v19 }
 0x206   : > { %v1315_v8 = vmul.f32 %v2504_v43, %v1985_v20 }
 0x207   : > { %v2570_v52 = vadd.f32 %v373_v0, %v251_v34 }
 0x209   : > { %1237 = vrot.lane.b32.xlu1 %v1181_v33, %s1889_s12  ;;  %1235 = vrot.lane.b32.xlu0 %v1180_v27, %s1889_s12  ;;  %v252_v33 = vmul.f32 %v2036_v49, %v1994_v25  ;;  %v2512_v27 = vmul.f32 %v2036_v49, %v1992_v24  ;;  %v261_v49 = vmul.f32 %v2052_v58, %v2029_v46 }
 0x20b   : > { %3155 = vst [vmem:[#allocation63_spill] sm:$0xff] %v2512_v27  ;;  %v1313_v27 = vmul.f32 %v2504_v43, %v1978_v14  ;;  %v372_v14 = vsel %vm369_vm1, %v2150_v4, %v2148_v3  ;;  %v376_v3 = vsel %vm369_vm1, %v2166_v12, %v2164_v11  ;;  %v2572_v16 = vadd.f32 %v374_v53, %v252_v33 }
 0x20c   : > { %v410_v20 = vadd.f32 %v376_v3, %v254_v15  ;;  %v379_v53 = vsel %vm369_vm1, %v2182_v26, %v2180_v23 }
 0x20d   : > { %1241 = vrot.lane.b32.xlu1 %v1183_v2, %s1889_s12  ;;  %1239 = vrot.lane.b32.xlu0 %v1182_v22, %s1889_s12  ;;  %v259_v2 = vmul.f32 %v2052_v58, %v2020_v41  ;;  %v1314_v22 = vmul.f32 %v2504_v43, %v1976_v13  ;;  %v371_v13 = vsel %vm369_vm1, %v2140_v63, %v2150_v4 }
 0x20e   : > { %v265_v63 = vmul.f32 %v2052_v58, %v2048_v56  ;;  %v264_v4 = vmul.f32 %v2052_v58, %v2050_v57  ;;  %v404_v56 = vadd.f32 %v370_v28, %v248_v51  ;;  %v405_v46 = vadd.f32 %v371_v13, %v249_v50 }
 0x20f   : > { %v406_v41 = vadd.f32 %v372_v14, %v250_v21  ;;  %v377_v58 = vsel %vm369_vm1, %v2164_v11, %v2174_v18  ;;  %v378_v57 = vsel %vm369_vm1, %v2172_v17, %v2182_v26  ;;  %v380_v11 = vsel %vm369_vm1, %v2180_v23, %v2190_v32 }
 0x210   : > { %v381_v17 = vsel %vm369_vm1, %v2190_v32, %v2188_v31  ;;  %v382_v28 = vsel %vm369_vm1, %v2188_v31, %v2204_v40  ;;  %v1317_v26 = vmul.f32 %v2504_v43, %v1994_v25  ;;  %v411_v15 = vadd.f32 %v377_v58, %v255_v9 }
 0x211   : > { %1355 = vrot.lane.b32.xlu1 %v1314_v22, %s1890_s13  ;;  %1353 = vrot.lane.b32.xlu0 %v1313_v27, %s1890_s13  ;;  %v2564_v22 = vpop.permute.xlu1 %1310  ;;  %v1316_v27 = vmul.f32 %v2504_v43, %v1983_v19  ;;  %v2585_v19 = vsel %vm369_vm1, %v2156_v7, %v2166_v12  ;;  %v1318_v12 = vmul.f32 %v2504_v43, %v1992_v24 }
 0x212   : > { %v412_v50 = vadd.f32 %v2174_v18, %v256_v1  ;;  %v413_v23 = vadd.f32 %v378_v57, %v257_v37  ;;  %v2607_v32 = vadd.f32 %v379_v53, %v258_v44  ;;  %v2609_v34 = vadd.f32 %v380_v11, %v259_v2 }
 0x213   : > { %v383_v31 = vsel %vm369_vm1, %v2204_v40, %v2202_v39  ;;  %v2616_v24 = vadd.f32 %v381_v17, %v260_v36  ;;  %v2618_v25 = vadd.f32 %v382_v28, %v261_v49  ;;  %v384_v57 = vsel %vm369_vm1, %v2202_v39, %v2214_v48  ;;  %v3161_v28 = vld [vmem:[#allocation13_spill] sm:$0xff] }
 0x214   : > { %v385_v18 = vsel %vm369_vm1, %v2214_v48, %v2212_v45  ;;  %v508_v40 = vsel %vm507_vm2, %v2224_v55, %v2222_v54  ;;  %v509_v9 = vsel %vm507_vm2, %v2222_v54, %v2234_v62  ;;  %v1320_v1 = vmul.f32 %v2504_v43, %v2001_v29 }
 0x215   : > { %1359 = vrot.lane.b32.xlu1 %v1316_v27, %s1890_s13  ;;  %1357 = vrot.lane.b32.xlu0 %v1315_v8, %s1890_s13  ;;  %v1319_v39 = vmul.f32 %v2504_v43, %v2003_v30  ;;  %v2636_v33 = vadd.f32 %v383_v31, %v262_v42  ;;  %v514_v48 = vsel %vm507_vm2, %v2242_v6, %v2240_v5  ;;  %v3158_v27 = vld [vmem:[#allocation43_spill] sm:$0xff]  ;;  %v3159_v8 = vld [vmem:[#allocation44_spill] sm:$0xff] }
 0x216   : > { %v2648_v54 = vadd.f32 %v2212_v45, %v265_v63  ;;  %v2650_v36 = vadd.f32 %v384_v57, %v263_v47  ;;  %v2652_v29 = vadd.f32 %v385_v18, %v264_v4  ;;  %v2656_v30 = vadd.f32 %v508_v40, %v404_v56  ;;  %v3163_v57 = vld [vmem:[#allocation3_spill] sm:$0xff]  ;;  %v3164_v40 = vld [vmem:[#allocation4_spill] sm:$0xff] }
 0x217   : > { %v888_v51 = vpop.permute.xlu1 %887  ;;  %v886_v7 = vpop.permute.xlu0 %885  ;;  %v510_v42 = vsel %vm507_vm2, %v2234_v62, %v2232_v61  ;;  %v2661_v49 = vadd.f32 %v509_v9, %v405_v46  ;;  %v652_v47 = vsel %vm645_vm4, %v2278_v60, %v2276_v59  ;;  %v548_v45 = vadd.f32 %v514_v48, %v410_v20  ;;  %v3156_v62 = vld [vmem:[#allocation14_spill] sm:$0xff]  ;;  %v3157_v46 = vld [vmem:[#allocation12_spill] sm:$0xff] }
 0x218   : > { %v2605_v21 = vsel %vm921_vm3, %v886_v7, %v888_v51  ;;  %v515_v13 = vsel %vm507_vm2, %v2240_v5, %v2246_v10  ;;  %v1323_v63 = vmul.f32 %v2564_v22, %v2011_v35  ;;  %v1321_v4 = vmul.f32 %v2504_v43, %v2418_v38  ;;  %v3160_v35 = vld [vmem:[#allocation11_spill] sm:$0xff]  ;;  %v3162_v7 = vld [vmem:[#allocation28_spill] sm:$0xff] }
 0x219   : > { %1363 = vrot.lane.b32.xlu1 %v1318_v12, %s1890_s13  ;;  %1361 = vrot.lane.b32.xlu0 %v1317_v26, %s1890_s13  ;;  %v516_v3 = vsel %vm507_vm2, %v3157_v46, %v3156_v62  ;;  %v790_v56 = vsel %vm783_vm0, %v3159_v8, %v3158_v27  ;;  %v2685_v20 = vadd.f32 %v510_v42, %v406_v41  ;;  %v3165_v9 = vld [vmem:[#allocation16_spill] sm:$0xff]  ;;  %v3172_v46 = vld [vmem:[#allocation46_spill] sm:$0xff] }
 0x21a   : > { %v2690_v38 = vsel %vm507_vm2, %v2232_v61, %v3160_v35  ;;  %v686_v53 = vadd.f32 %v652_v47, %v548_v45  ;;  %v549_v11 = vadd.f32 %v515_v13, %v411_v15  ;;  %v550_v17 = vadd.f32 %v2246_v10, %v412_v50  ;;  %v3168_v47 = vld [vmem:[#allocation15_spill] sm:$0xff]  ;;  %v3169_v13 = vld [vmem:[#allocation29_spill] sm:$0xff] }
 0x21b   : > { %v892_v44 = vpop.permute.xlu1 %891  ;;  %v890_v37 = vpop.permute.xlu0 %889  ;;  %v653_v41 = vsel %vm645_vm4, %v2276_v59, %v3162_v7  ;;  %v551_v12 = vadd.f32 %v516_v3, %v413_v23  ;;  %v1325_v18 = vmul.f32 %v2564_v22, %v3163_v57  ;;  %v1324_v15 = vmul.f32 %v2564_v22, %v3164_v40 }
 0x21c   : > { %v2642_v55 = vsel %vm921_vm3, %v888_v51, %v890_v37  ;;  %v2645_v2 = vsel %vm921_vm3, %v890_v37, %v892_v44  ;;  %v517_v51 = vsel %vm507_vm2, %v3156_v62, %v3161_v28  ;;  %v824_v26 = vadd.f32 %v790_v56, %v686_v53  ;;  %v3166_v37 = vld [vmem:[#allocation30_spill] sm:$0xff]  ;;  %v3173_v53 = vld [vmem:[#allocation5_spill] sm:$0xff] }
 0x21d   : > { %1367 = vrot.lane.b32.xlu1 %v1320_v1, %s1890_s13  ;;  %1365 = vrot.lane.b32.xlu0 %v1319_v39, %s1890_s13  ;;  %v518_v10 = vsel %vm507_vm2, %v3161_v28, %v3165_v9  ;;  %v688_v50 = vadd.f32 %v3162_v7, %v550_v17  ;;  %v687_v23 = vadd.f32 %v653_v41, %v549_v11  ;;  %v3167_v1 = vld [vmem:[#allocation27_spill] sm:$0xff]  ;;  %v3174_v11 = vld [vmem:[#allocation6_spill] sm:$0xff] }
 0x21e   : > { %v654_v39 = vsel %vm645_vm4, %v3167_v1, %v3166_v37  ;;  %v552_v42 = vadd.f32 %v517_v51, %v2607_v32  ;;  %v519_v45 = vsel %vm507_vm2, %v3165_v9, %v3168_v47  ;;  %v1327_v32 = vmul.f32 %v2564_v22, %v3173_v53 }
 0x21f   : > { %v896_v14 = vpop.permute.xlu1 %895  ;;  %v894_v0 = vpop.permute.xlu0 %893  ;;  %v825_v3 = vadd.f32 %v3172_v46, %v687_v23  ;;  %v1326_v17 = vmul.f32 %v2564_v22, %v3174_v11  ;;  %v553_v28 = vadd.f32 %v518_v10, %v2609_v34  ;;  %v689_v51 = vadd.f32 %v654_v39, %v551_v12  ;;  %v3177_v12 = vld [vmem:[#allocation17_spill] sm:$0xff]  ;;  %v3178_v10 = vld [vmem:[#allocation47_spill] sm:$0xff] }
 0x220   : > { %v2680_v58 = vsel %vm921_vm3, %v892_v44, %v894_v0  ;;  %v2683_v5 = vsel %vm921_vm3, %v894_v0, %v896_v14  ;;  %v3170_v0 = vld [vmem:[#allocation45_spill] sm:$0xff]  ;;  %v554_v40 = vadd.f32 %v519_v45, %v2616_v24  ;;  %v3180_v39 = vld [vmem:[#allocation7_spill] sm:$0xff] }
 0x221   : > { %1373 = vrot.lane.b32.xlu1 %v1323_v63, %s1890_s13  ;;  %1369 = vrot.lane.b32.xlu0 %v1321_v4, %s1890_s13  ;;  %v826_v63 = vadd.f32 %v3170_v0, %v688_v50  ;;  %v3171_v4 = vld [vmem:[#allocation32_spill] sm:$0xff]  ;;  %v827_v50 = vadd.f32 %v3178_v10, %v689_v51  ;;  %v3185_v11 = vld [vmem:[#allocation19_spill] sm:$0xff] }
 0x222   : > { %v656_v62 = vsel %vm645_vm4, %v3169_v13, %v3171_v4 }
 0x223   : > { %v900_v61 = vpop.permute.xlu1 %899  ;;  %v898_v31 = vpop.permute.xlu0 %897  ;;  %v691_v9 = vadd.f32 %v656_v62, %v553_v28  ;;  %v3186_v28 = vld [vmem:[#allocation49_spill] sm:$0xff] }
 0x224   : > { %v2710_v44 = vsel %vm921_vm3, %v896_v14, %v898_v31  ;;  %v928_v59 = vsel %vm921_vm3, %v898_v31, %v900_v61  ;;  %v655_v14 = vsel %vm645_vm4, %v3166_v37, %v3169_v13  ;;  %v3175_v31 = vld [vmem:[#allocation31_spill] sm:$0xff]  ;;  %v3181_v13 = vld [vmem:[#allocation8_spill] sm:$0xff] }
 0x225   : > { %v2716_v48 = vadd.f32 %v928_v59, %v824_v26  ;;  %1377 = vrot.lane.b32.xlu1 %v1325_v18, %s1890_s13  ;;  %1375 = vrot.lane.b32.xlu0 %v1324_v15, %s1890_s13  ;;  %v690_v26 = vadd.f32 %v655_v14, %v552_v42  ;;  %v657_v57 = vsel %vm645_vm4, %v3171_v4, %v3175_v31  ;;  %v3176_v15 = vld [vmem:[#allocation18_spill] sm:$0xff]  ;;  %v3179_v59 = vld [vmem:[#allocation48_spill] sm:$0xff]  ;;  %v3183_v4 = vld [vmem:[#allocation33_spill] sm:$0xff] }
 0x226   : > { %v520_v34 = vsel %vm507_vm2, %v3168_v47, %v3176_v15  ;;  %v1329_v42 = vmul.f32 %v2564_v22, %v3180_v39  ;;  %v1328_v24 = vmul.f32 %v2564_v22, %v3181_v13  ;;  %v692_v45 = vadd.f32 %v657_v57, %v554_v40  ;;  %v3182_v14 = vld [vmem:[#allocation34_spill] sm:$0xff]  ;;  %v3188_v40 = vld [vmem:[#allocation61_spill] sm:$0xff]  ;;  %v3192_v13 = vld [vmem:[#allocation35_spill] sm:$0xff] }
 0x227   : > { %v904_v27 = vpop.permute.xlu1 %903  ;;  %v902_v56 = vpop.permute.xlu0 %901  ;;  %v828_v23 = vadd.f32 %v3179_v59, %v690_v26  ;;  %v658_v47 = vsel %vm645_vm4, %v3175_v31, %v3182_v14  ;;  %v659_v62 = vsel %vm645_vm4, %v3182_v14, %v3183_v4  ;;  %v829_v51 = vadd.f32 %v3186_v28, %v691_v9  ;;  %v3193_v14 = vld [vmem:[#allocation21_spill] sm:$0xff] }
 0x228   : > { %v929_v7 = vsel %vm921_vm3, %v900_v61, %v902_v56  ;;  %v2738_v41 = vadd.f32 %v902_v56, %v826_v63  ;;  %v521_v61 = vsel %vm507_vm2, %v3176_v15, %v3177_v12  ;;  %v555_v56 = vadd.f32 %v520_v34, %v2618_v25  ;;  %v3189_v25 = vld [vmem:[#allocation9_spill] sm:$0xff] }
 0x229   : > { %v2743_v18 = vadd.f32 %v929_v7, %v825_v3  ;;  %1381 = vrot.lane.b32.xlu1 %v1327_v32, %s1890_s13  ;;  %1379 = vrot.lane.b32.xlu0 %v1326_v17, %s1890_s13  ;;  %v556_v53 = vadd.f32 %v521_v61, %v2636_v33  ;;  %v3184_v32 = vld [vmem:[#allocation20_spill] sm:$0xff]  ;;  %v3187_v7 = vld [vmem:[#allocation50_spill] sm:$0xff]  ;;  %v1331_v15 = vmul.f32 %v2564_v22, %v3188_v40 }
 0x22a   : > { %v523_v17 = vsel %vm507_vm2, %v3184_v32, %v3185_v11  ;;  %v830_v26 = vadd.f32 %v3187_v7, %v692_v45  ;;  %v1330_v33 = vmul.f32 %v2564_v22, %v3189_v25  ;;  %v693_v34 = vadd.f32 %v658_v47, %v555_v56  ;;  %v3194_v47 = vld [vmem:[#allocation22_spill] sm:$0xff] }
 0x22b   : > { %v908_v37 = vpop.permute.xlu1 %907  ;;  %v906_v1 = vpop.permute.xlu0 %905  ;;  %v694_v61 = vadd.f32 %v659_v62, %v556_v53  ;;  %v558_v45 = vadd.f32 %v523_v17, %v2652_v29  ;;  %v3196_v62 = vld [vmem:[#allocation52_spill] sm:$0xff]  ;;  %v3197_v17 = vld [vmem:[#allocation58_spill] sm:$0xff]  ;;  %v545_v7 = vadd.f32 %v2690_v38, %v2570_v52 }
 0x22c   : > { %v930_v0 = vsel %vm921_vm3, %v904_v27, %v906_v1  ;;  %v931_v63 = vsel %vm921_vm3, %v906_v1, %v908_v37  ;;  %v522_v27 = vsel %vm507_vm2, %v3177_v12, %v3184_v32  ;;  %v3191_v1 = vld [vmem:[#allocation10_spill] sm:$0xff] }
 0x22d   : > { %v2768_v46 = vadd.f32 %v930_v0, %v827_v50  ;;  %v2770_v3 = vadd.f32 %v931_v63, %v828_v23  ;;  %1385 = vrot.lane.b32.xlu1 %v1329_v42, %s1890_s13  ;;  %1383 = vrot.lane.b32.xlu0 %v1328_v24, %s1890_s13  ;;  %v3190_v50 = vld [vmem:[#allocation36_spill] sm:$0xff]  ;;  %v512_v39 = vsel %vm507_vm2, %v3160_v35, %v3191_v1  ;;  %v3195_v63 = vld [vmem:[#allocation51_spill] sm:$0xff]  ;;  %v3206_v52 = vld [vmem:[#allocation62_spill] sm:$0xff] }
 0x22e   : > { %v660_v9 = vsel %vm645_vm4, %v3183_v4, %v3190_v50  ;;  %v557_v42 = vadd.f32 %v522_v27, %v2650_v36  ;;  %v661_v24 = vsel %vm645_vm4, %v3190_v50, %v3192_v13  ;;  %v646_v0 = vsel %vm645_vm4, %v3194_v47, %v3193_v14 }
 0x22f   : > { %v912_v31 = vpop.permute.xlu1 %911  ;;  %v910_v57 = vpop.permute.xlu0 %909  ;;  %v831_v4 = vadd.f32 %v3195_v63, %v693_v34  ;;  %v832_v56 = vadd.f32 %v3196_v62, %v694_v61  ;;  %v3203_v61 = vld [vmem:[#allocation54_spill] sm:$0xff]  ;;  %v546_v62 = vadd.f32 %v512_v39, %v2572_v16  ;;  %v3211_v16 = vld [vmem:[#allocation57_spill] sm:$0xff]  ;;  %v513_v39 = vsel %vm507_vm2, %v3191_v1, %v2242_v6 }
 0x230   : > { %v932_v12 = vsel %vm921_vm3, %v908_v37, %v910_v57  ;;  %v933_v10 = vsel %vm921_vm3, %v910_v57, %v912_v31  ;;  %v559_v37 = vadd.f32 %v3185_v11, %v2648_v54  ;;  %v695_v32 = vadd.f32 %v660_v9, %v557_v42  ;;  %v3199_v57 = vld [vmem:[#allocation37_spill] sm:$0xff]  ;;  %v3205_v42 = vld [vmem:[#allocation56_spill] sm:$0xff]  ;;  %v3215_v1 = vld [vmem:[#allocation42_spill] sm:$0xff] }
 0x231   : > { %v2793_v59 = vadd.f32 %v932_v12, %v829_v51  ;;  %v2795_v23 = vadd.f32 %v933_v10, %v830_v26  ;;  %1389 = vrot.lane.b32.xlu1 %v1331_v15, %s1890_s13  ;;  %1387 = vrot.lane.b32.xlu0 %v1330_v33, %s1890_s13  ;;  %v696_v11 = vadd.f32 %v661_v24, %v558_v45  ;;  %v3198_v51 = vld [vmem:[#allocation59_spill] sm:$0xff]  ;;  %v3201_v15 = vld [vmem:[#allocation53_spill] sm:$0xff]  ;;  %v3202_v33 = vld [vmem:[#allocation24_spill] sm:$0xff] }
 0x232   : > { %v697_v54 = vadd.f32 %v3192_v13, %v559_v37  ;;  %v680_v26 = vadd.f32 %v646_v0, %v2656_v30  ;;  %v647_v34 = vsel %vm645_vm4, %v3193_v14, %v3202_v33  ;;  %v833_v12 = vadd.f32 %v3203_v61, %v695_v32  ;;  %v3204_v10 = vld [vmem:[#allocation55_spill] sm:$0xff]  ;;  %v1514_v61 = vld [vmem:[#allocation2] sm:$0x1] }
 0x233   : > { %v916_v35 = vpop.permute.xlu1 %915  ;;  %v914_v53 = vpop.permute.xlu0 %913  ;;  %v834_v50 = vadd.f32 %v3204_v10, %v696_v11  ;;  %v1184_v38 = vmul.f32 %v3206_v52, %v3205_v42  ;;  %v3207_v30 = vld [vmem:[#allocation23_spill] sm:$0xff] }
 0x234   : > { %v934_v36 = vsel %vm921_vm3, %v912_v31, %v914_v53  ;;  %v935_v27 = vsel %vm921_vm3, %v914_v53, %v916_v35  ;;  %v3200_v31 = vld [vmem:[#allocation38_spill] sm:$0xff]  ;;  %v835_v25 = vadd.f32 %v3201_v15, %v697_v54  ;;  %v648_v13 = vsel %vm645_vm4, %v3202_v33, %v3207_v30  ;;  %v3209_v53 = vld [vmem:[#allocation40_spill] sm:$0xff]  ;;  %v3210_v54 = vld [vmem:[#allocation39_spill] sm:$0xff] }
 0x235   : > { %v2817_v28 = vadd.f32 %v934_v36, %v831_v4  ;;  %v2819_v29 = vadd.f32 %v935_v27, %v832_v56  ;;  %1095 = vrot.lane.b32.xlu1 %v3197_v17, %s1888_s11  ;;  %1075 = vrot.lane.b32.xlu0 %v3198_v51, %s1888_s11  ;;  %v784_v40 = vsel %vm783_vm0, %v3200_v31, %v3199_v57  ;;  %v3208_v4 = vld [vmem:[#allocation60_spill] sm:$0xff]  ;;  %v3213_v31 = vld [vmem:[#allocation25_spill] sm:$0xff] }
 0x236   : > { %v818_v14 = vadd.f32 %v784_v40, %v680_v26  ;;  %v681_v56 = vadd.f32 %v647_v34, %v2661_v49  ;;  %v786_v32 = vsel %vm783_vm0, %v3209_v53, %v3210_v54  ;;  %v682_v36 = vadd.f32 %v648_v13, %v2685_v20  ;;  %v3212_v26 = vld [vmem:[#allocation26_spill] sm:$0xff]  ;;  %v3216_v33 = vld [vmem:[#allocation41_spill] sm:$0xff] }
 0x237   : > { %v920_v9 = vpop.permute.xlu1 %919  ;;  %v918_v37 = vpop.permute.xlu0 %917  ;;  %v1332_v51 = vmul.f32 %v2564_v22, %v3205_v42  ;;  %v1322_v49 = vmul.f32 %v2504_v43, %v3211_v16  ;;  %v3214_v43 = vld [vmem:[#allocation63_spill] sm:$0xff]  ;;  %v788_v34 = vsel %vm783_vm0, %v3215_v1, %v3216_v33 }
 0x238   : > { %v2842_v24 = vadd.f32 %v920_v9, %v835_v25  ;;  %v936_v45 = vsel %vm921_vm3, %v916_v35, %v918_v37  ;;  %v937_v47 = vsel %vm921_vm3, %v918_v37, %v920_v9  ;;  %v785_v35 = vsel %vm783_vm0, %v3199_v57, %v3209_v53 }
 0x239   : > { %v2846_v0 = vadd.f32 %v936_v45, %v833_v12  ;;  %v2848_v63 = vadd.f32 %v937_v47, %v834_v50  ;;  %1243 = vrot.lane.b32.xlu1 %v1184_v38, %s1889_s12  ;;  %1223 = vrot.lane.b32.xlu0 %v3208_v4, %s1889_s12  ;;  %v956_v27 = vadd.f32 %v2605_v21, %v818_v14 }
 0x23a   : > { %v649_v57 = vsel %vm645_vm4, %v3207_v30, %v3212_v26  ;;  %v650_v21 = vsel %vm645_vm4, %v3212_v26, %v3213_v31  ;;  %v819_v40 = vadd.f32 %v785_v35, %v681_v56  ;;  %v820_v15 = vadd.f32 %v786_v32, %v682_v36 }
 0x23b   : > { %v1060_v11 = vpop.permute.xlu1 %1059  ;;  %v1058_v17 = vpop.permute.xlu0 %1057  ;;  %v409_v6 = vadd.f32 %v2585_v19, %v3214_v43  ;;  %v787_v25 = vsel %vm783_vm0, %v3210_v54, %v3215_v1  ;;  %v683_v12 = vadd.f32 %v649_v57, %v545_v7  ;;  %v684_v10 = vadd.f32 %v650_v21, %v546_v62 }
 0x23c   : > { %v1098_v20 = vsel %vm1097_vm5, %v1058_v17, %v1060_v11  ;;  %v957_v50 = vadd.f32 %v2642_v55, %v819_v40  ;;  %v958_v9 = vadd.f32 %v2645_v2, %v820_v15  ;;  %v651_v19 = vsel %vm645_vm4, %v3213_v31, %v2278_v60 }
 0x23d   : > { %v2877_v22 = vadd.f32 %v1098_v20, %v956_v27  ;;  %1391 = vrot.lane.b32.xlu1 %v1332_v51, %s1890_s13  ;;  %1371 = vrot.lane.b32.xlu0 %v1322_v49, %s1890_s13  ;;  %v547_v52 = vadd.f32 %v513_v39, %v409_v6  ;;  %v821_v13 = vadd.f32 %v787_v25, %v683_v12 }
 0x23e   : > { %v822_v45 = vadd.f32 %v788_v34, %v684_v10  ;;  %v789_v55 = vsel %vm783_vm0, %v3216_v33, %v3159_v8 }
 0x23f   : > { %v1064_v37 = vpop.permute.xlu1 %1063  ;;  %v1062_v42 = vpop.permute.xlu0 %1061  ;;  %v685_v2 = vadd.f32 %v651_v19, %v547_v52  ;;  %v959_v14 = vadd.f32 %v2680_v58, %v821_v13 }
 0x240   : > { %v1099_v38 = vsel %vm1097_vm5, %v1060_v11, %v1062_v42  ;;  %v1100_v30 = vsel %vm1097_vm5, %v1062_v42, %v1064_v37  ;;  %v960_v4 = vadd.f32 %v2683_v5, %v822_v45 }
 0x241   : > { %v1135_v47 = vadd.f32 %v1099_v38, %v957_v50  ;;  %v1136_v7 = vadd.f32 %v1100_v30, %v958_v9  ;;  %1517 = vperm.xlu0 %1820, %v1514_v61   ;;  %v823_v35 = vadd.f32 %v789_v55, %v685_v2 }
 0x243   : > { %v1068_v62 = vpop.permute.xlu1 %1067  ;;  %v1066_v60 = vpop.permute.xlu0 %1065  ;;  %v961_v36 = vadd.f32 %v2710_v44, %v823_v35 }
 0x244   : > { %v1101_v56 = vsel %vm1097_vm5, %v1064_v37, %v1066_v60  ;;  %v1102_v53 = vsel %vm1097_vm5, %v1066_v60, %v1068_v62 }
 0x245   : > { %v1137_v54 = vadd.f32 %v1101_v56, %v959_v14  ;;  %v1138_v32 = vadd.f32 %v1102_v53, %v960_v4 }
 0x247   : > { %v1072_v27 = vpop.permute.xlu1 %1071  ;;  %v1070_v11 = vpop.permute.xlu0 %1069 }
 0x248   : > { %v1103_v8 = vsel %vm1097_vm5, %v1068_v62, %v1070_v11  ;;  %v1104_v17 = vsel %vm1097_vm5, %v1070_v11, %v1072_v27 }
 0x249   : > { %v1139_v58 = vadd.f32 %v1103_v8, %v961_v36  ;;  %v1140_v5 = vadd.f32 %v1104_v17, %v2716_v48 }
 0x24b   : > { %v1078_v51 = vpop.permute.xlu1 %1077  ;;  %v2907_v16 = vpop.permute.xlu0 %1073 }
 0x24c   : > { %v1105_v49 = vsel %vm1097_vm5, %v1072_v27, %v2907_v16 }
 0x24d   : > { %v1141_v39 = vadd.f32 %v1105_v49, %v2743_v18 }
 0x24f   : > { %v1082_v26 = vpop.permute.xlu1 %1081  ;;  %v1080_v57 = vpop.permute.xlu0 %1079 }
 0x250   : > { %v1107_v44 = vsel %vm1097_vm5, %v1078_v51, %v1080_v57  ;;  %v1108_v31 = vsel %vm1097_vm5, %v1080_v57, %v1082_v26 }
 0x251   : > { %v2915_v21 = vadd.f32 %v1107_v44, %v2768_v46  ;;  %v2918_v20 = vadd.f32 %v1108_v31, %v2770_v3 }
 0x253   : > { %v1086_v48 = vpop.permute.xlu1 %1085  ;;  %v1084_v40 = vpop.permute.xlu0 %1083 }
 0x254   : > { %v1109_v15 = vsel %vm1097_vm5, %v1082_v26, %v1084_v40  ;;  %v1110_v43 = vsel %vm1097_vm5, %v1084_v40, %v1086_v48 }
 0x255   : > { %v2923_v18 = vadd.f32 %v1109_v15, %v2793_v59  ;;  %v2926_v6 = vadd.f32 %v1110_v43, %v2795_v23 }
 0x257   : > { %v1090_v1 = vpop.permute.xlu1 %1089  ;;  %v1088_v25 = vpop.permute.xlu0 %1087 }
 0x258   : > { %v1111_v46 = vsel %vm1097_vm5, %v1086_v48, %v1088_v25  ;;  %v1112_v33 = vsel %vm1097_vm5, %v1088_v25, %v1090_v1 }
 0x259   : > { %v2931_v3 = vadd.f32 %v1111_v46, %v2817_v28  ;;  %v2934_v34 = vadd.f32 %v1112_v33, %v2819_v29 }
 0x25b   : > { %v2936_v61 = vpop.permute.xlu1 %1093  ;;  %v1092_v12 = vpop.permute.xlu0 %1091 }
 0x25c   : > { %v1113_v59 = vsel %vm1097_vm5, %v1090_v1, %v1092_v12  ;;  %v1114_v23 = vsel %vm1097_vm5, %v1092_v12, %v2936_v61 }
 0x25d   : > { %v2942_v10 = vadd.f32 %v1113_v59, %v2846_v0  ;;  %v2945_v50 = vadd.f32 %v1114_v23, %v2848_v63 }
 0x25f   : > { %v1208_v28 = vpop.permute.xlu1 %1207  ;;  %v1206_v9 = vpop.permute.xlu0 %1205 }
 0x260   : > { %v1246_v29 = vsel %vm1245_vm6, %v1206_v9, %v1208_v28 }
 0x261   : > { %v1282_v37 = vadd.f32 %v1246_v29, %v2877_v22 }
 0x263   : > { %v1212_v42 = vpop.permute.xlu1 %1211  ;;  %v1210_v52 = vpop.permute.xlu0 %1209 }
 0x264   : > { %v1247_v19 = vsel %vm1245_vm6, %v1208_v28, %v1210_v52  ;;  %v1248_v38 = vsel %vm1245_vm6, %v1210_v52, %v1212_v42 }
 0x265   : > { %v1283_v30 = vadd.f32 %v1247_v19, %v1135_v47  ;;  %v2951_v13 = vadd.f32 %v1248_v38, %v1136_v7 }
 0x267   : > { %v1216_v0 = vpop.permute.xlu1 %1215  ;;  %v1214_v45 = vpop.permute.xlu0 %1213 }
 0x268   : > { %v1249_v63 = vsel %vm1245_vm6, %v1212_v42, %v1214_v45  ;;  %v1250_v55 = vsel %vm1245_vm6, %v1214_v45, %v1216_v0 }
 0x269   : > { %v1285_v2 = vadd.f32 %v1249_v63, %v1137_v54  ;;  %v2955_v14 = vadd.f32 %v1250_v55, %v1138_v32 }
 0x26b   : > { %v1220_v4 = vpop.permute.xlu1 %1219  ;;  %v1218_v22 = vpop.permute.xlu0 %1217 }
 0x26c   : > { %v1251_v62 = vsel %vm1245_vm6, %v1216_v0, %v1218_v22  ;;  %v1252_v60 = vsel %vm1245_vm6, %v1218_v22, %v1220_v4 }
 0x26d   : > { %v2959_v56 = vadd.f32 %v1251_v62, %v1139_v58  ;;  %v2961_v47 = vadd.f32 %v1252_v60, %v1140_v5 }
 0x26f   : > { %v1226_v7 = vpop.permute.xlu1 %1225  ;;  %v2963_v53 = vpop.permute.xlu0 %1221 }
 0x270   : > { %v1253_v35 = vsel %vm1245_vm6, %v1220_v4, %v2963_v53 }
 0x271   : > { %v2967_v36 = vadd.f32 %v1253_v35, %v1141_v39 }
 0x273   : > { %v1230_v54 = vpop.permute.xlu1 %1229  ;;  %v1228_v32 = vpop.permute.xlu0 %1227 }
 0x274   : > { %v1255_v43 = vsel %vm1245_vm6, %v1226_v7, %v1228_v32  ;;  %v1256_v1 = vsel %vm1245_vm6, %v1228_v32, %v1230_v54 }
 0x275   : > { %v1291_v33 = vadd.f32 %v1255_v43, %v2915_v21  ;;  %v1292_v12 = vadd.f32 %v1256_v1, %v2918_v20 }
 0x277   : > { %v1234_v27 = vpop.permute.xlu1 %1233  ;;  %v1232_v11 = vpop.permute.xlu0 %1231 }
 0x278   : > { %v1257_v59 = vsel %vm1245_vm6, %v1230_v54, %v1232_v11  ;;  %v1258_v23 = vsel %vm1245_vm6, %v1232_v11, %v1234_v27 }
 0x279   : > { %v1293_v45 = vadd.f32 %v1257_v59, %v2923_v18  ;;  %v1294_v21 = vadd.f32 %v1258_v23, %v2926_v6 }
 0x27b   : > { %v1238_v8 = vpop.permute.xlu1 %1237  ;;  %v1236_v17 = vpop.permute.xlu0 %1235 }
 0x27c   : > { %v1259_v55 = vsel %vm1245_vm6, %v1234_v27, %v1236_v17  ;;  %v1260_v4 = vsel %vm1245_vm6, %v1236_v17, %v1238_v8 }
 0x27d   : > { %v1295_v32 = vadd.f32 %v1259_v55, %v2931_v3  ;;  %v1296_v11 = vadd.f32 %v1260_v4, %v2934_v34 }
 0x27f   : > { %v2969_v51 = vpop.permute.xlu1 %1241  ;;  %v1240_v58 = vpop.permute.xlu0 %1239 }
 0x283   : > { %v1356_v49 = vpop.permute.xlu1 %1355  ;;  %v1354_v5 = vpop.permute.xlu0 %1353 }
 0x284   : > { %v1394_v25 = vsel %vm1393_vm7, %v1354_v5, %v1356_v49 }
 0x285   : > { %v1430_v52 = vadd.f32 %v1394_v25, %v1282_v37 }
 0x287   : > { %v1360_v26 = vpop.permute.xlu1 %1359  ;;  %v1358_v57 = vpop.permute.xlu0 %1357 }
 0x288   : > { %v1395_v46 = vsel %vm1393_vm7, %v1356_v49, %v1358_v57  ;;  %v1396_v20 = vsel %vm1393_vm7, %v1358_v57, %v1360_v26 }
 0x289   : > { %v1431_v19 = vadd.f32 %v1395_v46, %v1283_v30  ;;  %v1432_v18 = vadd.f32 %v1396_v20, %v2951_v13  ;;  %v1262_v13 = vsel %vm1245_vm6, %v1240_v58, %v2969_v51 }
 0x28a   : > { %v1298_v25 = vadd.f32 %v1262_v13, %v2945_v50 }
 0x28b   : > { %v1364_v44 = vpop.permute.xlu1 %1363  ;;  %v1362_v31 = vpop.permute.xlu0 %1361 }
 0x28c   : > { %v1397_v63 = vsel %vm1393_vm7, %v1360_v26, %v1362_v31  ;;  %v1398_v27 = vsel %vm1393_vm7, %v1362_v31, %v1364_v44 }
 0x28d   : > { %v1433_v35 = vadd.f32 %v1397_v63, %v1285_v2  ;;  %v1434_v3 = vadd.f32 %v1398_v27, %v2955_v14 }
 0x28f   : > { %v1368_v48 = vpop.permute.xlu1 %1367  ;;  %v1366_v40 = vpop.permute.xlu0 %1365 }
 0x290   : > { %v1399_v17 = vsel %vm1393_vm7, %v1364_v44, %v1366_v40  ;;  %v1400_v46 = vsel %vm1393_vm7, %v1366_v40, %v1368_v48 }
 0x291   : > { %v1435_v34 = vadd.f32 %v1399_v17, %v2959_v56  ;;  %v1436_v56 = vadd.f32 %v1400_v46, %v2961_v47 }
 0x293   : > { %v1374_v39 = vpop.permute.xlu1 %1373  ;;  %v2971_v15 = vpop.permute.xlu0 %1369 }
 0x297   : > { %v1378_v28 = vpop.permute.xlu1 %1377  ;;  %v1376_v9 = vpop.permute.xlu0 %1375 }
 0x298   : > { %v1403_v29 = vsel %vm1393_vm7, %v1374_v39, %v1376_v9  ;;  %v1404_v42 = vsel %vm1393_vm7, %v1376_v9, %v1378_v28  ;;  %v1261_v39 = vsel %vm1245_vm6, %v1238_v8, %v1240_v58  ;;  %v1401_v8 = vsel %vm1393_vm7, %v1368_v48, %v2971_v15 }
 0x299   : > { %v1439_v38 = vadd.f32 %v1403_v29, %v1291_v33  ;;  %v1440_v0 = vadd.f32 %v1404_v42, %v1292_v12  ;;  %v1297_v44 = vadd.f32 %v1261_v39, %v2942_v10 }
 0x29b   : > { %v1448_v22 = vadd.f32 %v1439_v38, %v1430_v52  ;;  %v1455_v62 = vadd.f32 %v1440_v0, %v1431_v19  ;;  %v1382_v60 = vpop.permute.xlu1 %1381  ;;  %v1380_v7 = vpop.permute.xlu0 %1379 }
 0x29c   : > { %v1405_v37 = vsel %vm1393_vm7, %v1378_v28, %v1380_v7  ;;  %v1406_v30 = vsel %vm1393_vm7, %v1380_v7, %v1382_v60  ;;  %v1437_v28 = vadd.f32 %v1401_v8, %v2967_v36 }
 0x29d   : > { %v1441_v6 = vadd.f32 %v1405_v37, %v1293_v45  ;;  %v1442_v54 = vadd.f32 %v1406_v30, %v1294_v21  ;;  %v1449_v52 = vrot.slane %v1448_v22, 4  ;;  %v1456_v48 = vrot.slane %v1455_v62, 4 }
 0x29f   : > { %v1462_v49 = vadd.f32 %v1441_v6, %v1432_v18  ;;  %v1469_v5 = vadd.f32 %v1442_v54, %v1433_v35  ;;  %v1386_v26 = vpop.permute.xlu1 %1385  ;;  %v1384_v57 = vpop.permute.xlu0 %1383  ;;  %v1450_v7 = vadd.f32 %v1449_v52, %v1448_v22  ;;  %v1457_v37 = vadd.f32 %v1456_v48, %v1455_v62 }
 0x2a0   : > { %v1407_v2 = vsel %vm1393_vm7, %v1382_v60, %v1384_v57  ;;  %v1408_v43 = vsel %vm1393_vm7, %v1384_v57, %v1386_v26  ;;  %v1520_v22 = vlaneseq }
 0x2a1   : > { %v1443_v31 = vadd.f32 %v1407_v2, %v1295_v32  ;;  %v1444_v1 = vadd.f32 %v1408_v43, %v1296_v11  ;;  %v1463_v21 = vrot.slane %v1462_v49, 4  ;;  %v1470_v47 = vrot.slane %v1469_v5, 4 }
 0x2a2   : > { %v1451_v62 = vrot.slane %v1450_v7, 2  ;;  %v1458_v39 = vrot.slane %v1457_v37, 2  ;;  %vm1664_vm9 = vcmp.lt.s32.totalorder %v1520_v22, 64 }
 0x2a3   : > { %v1390_v58 = vpop.permute.xlu1 %1389  ;;  %v1388_v33 = vpop.permute.xlu0 %1387  ;;  %v1476_v12 = vadd.f32 %v1443_v31, %v1434_v3  ;;  %v1483_v59 = vadd.f32 %v1444_v1, %v1435_v34  ;;  %v1464_v18 = vadd.f32 %v1463_v21, %v1462_v49  ;;  %v1471_v32 = vadd.f32 %v1470_v47, %v1469_v5 }
 0x2a4   : > { %v1409_v23 = vsel %vm1393_vm7, %v1386_v26, %v1388_v33  ;;  %v1410_v14 = vsel %vm1393_vm7, %v1388_v33, %v1390_v58 }
 0x2a5   : > { %v1445_v10 = vadd.f32 %v1409_v23, %v1297_v44  ;;  %v1446_v9 = vadd.f32 %v1410_v14, %v1298_v25  ;;  %v1477_v20 = vrot.slane %v1476_v12, 4  ;;  %v1484_v55 = vrot.slane %v1483_v59, 4 }
 0x2a6   : > { %v1465_v13 = vrot.slane %v1464_v18, 2  ;;  %v1472_v5 = vrot.slane %v1471_v32, 2  ;;  %v3028_v44 = vshrl.u32 %v1520_v22, 7  ;;  %v1459_v25 = vadd.f32 %v1458_v39, %v1457_v37 }
 0x2a7   : > { %v1096_v50 = vpop.permute.xlu1 %1095  ;;  %v1076_v29 = vpop.permute.xlu0 %1075  ;;  %v1490_v40 = vadd.f32 %v1445_v10, %v1436_v56  ;;  %v1497_v42 = vadd.f32 %v1446_v9, %v1437_v28  ;;  %v1485_v27 = vadd.f32 %v1484_v55, %v1483_v59 }
 0x2a8   : > { %v1115_v19 = vsel %vm1097_vm5, %v2936_v61, %v1096_v50  ;;  %v1106_v38 = vsel %vm1097_vm5, %v2907_v16, %v1076_v29  ;;  %v1466_v46 = vadd.f32 %v1465_v13, %v1464_v18  ;;  %v1473_v8 = vadd.f32 %v1472_v5, %v1471_v32 }
 0x2a9   : > { %v1491_v4 = vrot.slane %v1490_v40, 4  ;;  %v1151_v60 = vadd.f32 %v1115_v19, %v2842_v24  ;;  %v1142_v61 = vadd.f32 %v1106_v38, %v2738_v41  ;;  %v1498_v35 = vrot.slane %v1497_v42, 4 }
 0x2aa   : > { %v1486_v3 = vrot.slane %v1485_v27, 2  ;;  %v1522_v28 = vsub.s32 0, %v3028_v44  ;;  %v1460_v10 = vrot.slane %v1459_v25, 1  ;;  %v1467_v9 = vrot.slane %v1466_v46, 1 }
 0x2ab   : > { %v1244_v0 = vpop.permute.xlu1 %1243  ;;  %v1224_v45 = vpop.permute.xlu0 %1223  ;;  %v1492_v24 = vadd.f32 %v1491_v4, %v1490_v40  ;;  %v1499_v26 = vadd.f32 %v1498_v35, %v1497_v42  ;;  %v1474_v50 = vrot.slane %v1473_v8, 1 }
 0x2ac   : > { %v1263_v36 = vsel %vm1245_vm6, %v2969_v51, %v1244_v0  ;;  %v1254_v63 = vsel %vm1245_vm6, %v2963_v53, %v1224_v45  ;;  %v1478_v51 = vadd.f32 %v1477_v20, %v1476_v12  ;;  %v1487_v12 = vadd.f32 %v1486_v3, %v1485_v27 }
 0x2ad   : > { %v1299_v6 = vadd.f32 %v1263_v36, %v1151_v60  ;;  %v1290_v54 = vadd.f32 %v1254_v63, %v1142_v61  ;;  %v1493_v34 = vrot.slane %v1492_v24, 2  ;;  %v1500_v1 = vrot.slane %v1499_v26, 2 }
 0x2ae   : > { %v1479_v43 = vrot.slane %v1478_v51, 2  ;;  %v1488_v42 = vrot.slane %v1487_v12, 1  ;;  %v1461_v45 = vadd.f32 %v1460_v10, %v1459_v25  ;;  %v1468_v21 = vadd.f32 %v1467_v9, %v1466_v46 }
 0x2af   : > { %v1392_v16 = vpop.permute.xlu1 %1391  ;;  %v1372_v30 = vpop.permute.xlu0 %1371  ;;  %v1494_v59 = vadd.f32 %v1493_v34, %v1492_v24  ;;  %v1501_v56 = vadd.f32 %v1500_v1, %v1499_v26  ;;  %v1475_v47 = vadd.f32 %v1474_v50, %v1473_v8  ;;  %v1891_v46 = vmov 1966171168  }
 0x2b0   : > { %v1411_v11 = vsel %vm1393_vm7, %v1390_v58, %v1392_v16  ;;  %v1402_v53 = vsel %vm1393_vm7, %v2971_v15, %v1372_v30  ;;  %v1452_v15 = vadd.f32 %v1451_v62, %v1450_v7  ;;  %v1480_v33 = vadd.f32 %v1479_v43, %v1478_v51 }
 0x2b1   : > { %v1447_v17 = vadd.f32 %v1411_v11, %v1299_v6  ;;  %v1438_v41 = vadd.f32 %v1402_v53, %v1290_v54  ;;  %v1495_v52 = vrot.slane %v1494_v59, 1  ;;  %v1502_v38 = vrot.slane %v1501_v56, 1 }
 0x2b2   : > { %v1453_v14 = vrot.slane %v1452_v15, 1  ;;  %v1481_v40 = vrot.slane %v1480_v33, 1  ;;  %v1489_v63 = vadd.f32 %v1488_v42, %v1487_v12  ;;  %v1601_v8 = vunpack.c.l.s4 %v1891_v46 }
 0x2b3   : > { %v1506_v57 = vsel %vm1504_vm8, %v1447_v17, 0.0  ;;  %v1505_v49 = vsel %vm1504_vm8, %v1438_v41, 0.0  ;;  %v1496_v55 = vadd.f32 %v1495_v52, %v1494_v59  ;;  %v1503_v16 = vadd.f32 %v1502_v38, %v1501_v56 }
 0x2b4   : > { %v1507_v2 = vadd.f32 %v1506_v57, %v1505_v49  ;;  %v1454_v19 = vadd.f32 %v1453_v14, %v1452_v15  ;;  %v1482_v36 = vadd.f32 %v1481_v40, %v1480_v33 }
 0x2b6   : > { %v1508_v31 = vrot.slane %v1507_v2, 4 }
 0x2b8   : > { %v1509_v58 = vadd.f32 %v1508_v31, %v1507_v2 }
 0x2ba   : > { %v1510_v23 = vrot.slane %v1509_v58, 2 }
 0x2bc   : > { %v1511_v29 = vadd.f32 %v1510_v23, %v1509_v58  ;;  %v1602_v23 = vunpack.c.0.s8 %v1601_v8 }
 0x2be   : > { %v1512_v48 = vrot.slane %v1511_v29, 1  ;;  %v1605_v10 = vsub.s32 %v1602_v23, %v3028_v44 }
 0x2c0   : > { %v1518_v0 = vpop.permute.xlu0 %1517  ;;  %v1513_v4 = vadd.f32 %v1512_v48, %v1511_v29 }
 0x2c1   : > { %v1523_v20 = vrot.slane %v1518_v0, %v1522_v28 }
 0x2c3   : > { %v1524_v60 = vadd.f32 %v1523_v20, %v1454_v19  ;;  %v1525_v61 = vadd.f32 %v1523_v20, %v1461_v45  ;;  %v1526_v7 = vadd.f32 %v1523_v20, %v1468_v21  ;;  %v1527_v37 = vadd.f32 %v1523_v20, %v1475_v47 }
 0x2c4   : > { %v1528_v30 = vadd.f32 %v1523_v20, %v1482_v36  ;;  %v1529_v18 = vadd.f32 %v1523_v20, %v1489_v63  ;;  %v1530_v35 = vadd.f32 %v1523_v20, %v1496_v55  ;;  %v1531_v51 = vadd.f32 %v1523_v20, %v1503_v16 }
 0x2c5   : > { %v1773_v6 = vmul.f32 -1.442695, %v1524_v60  ;;  %v1774_v54 = vmul.f32 -1.442695, %v1525_v61  ;;  %v1775_v32 = vmul.f32 -1.442695, %v1526_v7  ;;  %v1532_v53 = vadd.f32 %v1523_v20, %v1513_v4 }
 0x2c6   : > { %v1776_v11 = vmul.f32 -1.442695, %v1527_v37  ;;  %v1777_v27 = vmul.f32 -1.442695, %v1528_v30  ;;  %v1778_v24 = vmul.f32 -1.442695, %v1529_v18 }
 0x2c7   : > { %1822 = vpow2.f32 %v1773_v6  ;;  %v1779_v17 = vmul.f32 -1.442695, %v1530_v35  ;;  %v1780_v41 = vmul.f32 -1.442695, %v1531_v51  ;;  %v1781_v62 = vmul.f32 -1.442695, %v1532_v53 }
 0x2c8   : > { %1824 = vpow2.f32 %v1774_v54 }
 0x2c9   : > { %1826 = vpow2.f32 %v1775_v32 }
 0x2ca   : > { %1828 = vpow2.f32 %v1776_v11 }
 0x2cb   : > { %1830 = vpow2.f32 %v1777_v27 }
 0x2cc   : > { %1832 = vpow2.f32 %v1778_v24 }
 0x2cd   : > { %1834 = vpow2.f32 %v1779_v17 }
 0x2ce   : > { %1836 = vpow2.f32 %v1780_v41 }
 0x2cf   : > { %1838 = vpow2.f32 %v1781_v62 }
 0x2d1   : > { %v1823_v26 = vpop.eup %1822 }
 0x2d2   : > { %v1825_v57 = vpop.eup %1824  ;;  %v1560_v49 = vadd.f32 1.0, %v1823_v26 }
 0x2d3   : > { %v1827_v39 = vpop.eup %1826  ;;  %v1561_v13 = vadd.f32 1.0, %v1825_v57 }
 0x2d4   : > { %v1829_v5 = vpop.eup %1828  ;;  %v1562_v2 = vadd.f32 1.0, %v1827_v39  ;;  %1840 = vrcp.f32 %v1560_v49 }
 0x2d5   : > { %v1831_v43 = vpop.eup %1830  ;;  %v1563_v3 = vadd.f32 1.0, %v1829_v5  ;;  %1842 = vrcp.f32 %v1561_v13 }
 0x2d6   : > { %v1833_v34 = vpop.eup %1832  ;;  %v1564_v31 = vadd.f32 1.0, %v1831_v43  ;;  %1844 = vrcp.f32 %v1562_v2 }
 0x2d7   : > { %v1835_v15 = vpop.eup %1834  ;;  %v1565_v1 = vadd.f32 1.0, %v1833_v34  ;;  %1846 = vrcp.f32 %v1563_v3 }
 0x2d8   : > { %v1837_v25 = vpop.eup %1836  ;;  %v1566_v58 = vadd.f32 1.0, %v1835_v15  ;;  %1848 = vrcp.f32 %v1564_v31 }
 0x2d9   : > { %v1839_v33 = vpop.eup %1838  ;;  %v1567_v12 = vadd.f32 1.0, %v1837_v25  ;;  %1850 = vrcp.f32 %v1565_v1 }
 0x2da   : > { %v1568_v59 = vadd.f32 1.0, %v1839_v33  ;;  %1852 = vrcp.f32 %v1566_v58 }
 0x2db   : > { %1854 = vrcp.f32 %v1567_v12 }
 0x2dc   : > { %1856 = vrcp.f32 %v1568_v59 }
 0x2de   : > { %v1841_v14 = vpop.eup %1840 }
 0x2df   : > { %v1843_v56 = vpop.eup %1842 }
 0x2e0   : > { %v1845_v28 = vpop.eup %1844  ;;  %v1596_v9 = vcombine.low %v1841_v14, %v1843_v56 }
 0x2e1   : > { %v1847_v50 = vpop.eup %1846 }
 0x2e2   : > { %v1849_v29 = vpop.eup %1848  ;;  %v1597_v40 = vcombine.low %v1845_v28, %v1847_v50  ;;  %v1606_v42 = vrot.slane %v1596_v9, %v1605_v10 }
 0x2e3   : > { %v1851_v52 = vpop.eup %1850 }
 0x2e4   : > { %v1853_v48 = vpop.eup %1852  ;;  %v1598_v19 = vcombine.low %v1849_v29, %v1851_v52  ;;  %v1613_v38 = vrot.slane %v1597_v40, %v1605_v10 }
 0x2e5   : > { %v1855_v0 = vpop.eup %1854 }
 0x2e6   : > { %v1857_v45 = vpop.eup %1856  ;;  %v1599_v21 = vcombine.low %v1853_v48, %v1855_v0  ;;  %v1620_v47 = vrot.slane %v1598_v19, %v1605_v10  ;;  %v1628_v20 = vcombine.low %v1606_v42, %v1613_v38 }
 0x2e7   : > { %v1651_v36 = vrot.slane %v1857_v45, %v1605_v10 }
 0x2e8   : > { %v1627_v44 = vrot.slane %v1599_v21, %v1605_v10  ;;  %v1636_v4 = vrot.slane %v1628_v20, %v1605_v10 }
 0x2e9   : > { %v1658_v63 = vrot.slane %v1651_v36, %v1605_v10 }
 0x2ea   : > { %v1629_v55 = vcombine.low %v1620_v47, %v1627_v44 }
 0x2eb   : > { %1666 = vst.msk [vmem:[%s206_s20 + $0x8] sm:$0x1] %vm1664_vm9, %v1658_v63 }
 0x2ec   : > { %v1643_v60 = vrot.slane %v1629_v55, %v1605_v10 }
 0x2ee   : > { %v1644_v61 = vcombine.low %v1636_v4, %v1643_v60 }
 0x2f0   : > { %1661 = vst [vmem:[%s206_s20] sm:$0xff] %v1644_v61 }
 0x2f1 PF: > { %s15_s16 = sadd.s32 1, %s1880_s16   ;;  %s3217_s14 = smov %s1876_s15 }
 0x2f2   : > { %p12_p5 = scmp.ge.s32.totalorder %s15_s16, 4   ;;  %s3218_s15 = smov %s3220_s2 }
 0x2f4   :  { %14 = sbr.rel (!%p12_p5) target bundleno = 3 (0x3), region = 70 }

</bundles_post_ra>
